<compile_context>
chip_gen: v5e
topology: v5e:2x2
jax: 0.10.0
libtpu: 0.0.40
codegen_flags: <defaults>
</compile_context>

<pallas_src>
import jax
import jax.numpy as jnp
from jax.experimental import pallas as pl
from jax.experimental.pallas import tpu as pltpu


def make_decoder_kernel(dims, chunk):
    B, T, D, P, Ha, Hd, A, K, M = (dims[k] for k in
                                   ("B", "T", "D", "P", "Ha", "Hd", "A", "K", "M"))
    pad = (K - 1) // 2

    def shift_T(x, s):
        # x: (B, T) -> out[b, t] = x[b, t + s], zero-padded at the edges.
        if s == 0:
            return x
        z = jnp.zeros((B, abs(s)), jnp.float32)
        if s > 0:
            return jnp.concatenate([x[:, s:], z], axis=1)
        return jnp.concatenate([z, x[:, :T + s]], axis=1)

    def kernel(dec_in_ref, drop1_ref, drop2_ref, mem_ref, pmem_ref, negb_ref,
               w_pre1, w_pre2,
               w_attn, b_attn, w_q, w_v, comb_ref,
               w_dec, b_dec, w_pg, b_pg,
               melgate_out_ref, align_out_ref,
               ah, ac, dh, dc, aw, awc, actx):
        # ------------- state init (decoder start) ----------------------------
        @pl.when(pl.program_id(0) == 0)
        def _init():
            ah[...] = jnp.zeros_like(ah)
            ac[...] = jnp.zeros_like(ac)
            dh[...] = jnp.zeros_like(dh)
            dc[...] = jnp.zeros_like(dc)
            aw[...] = jnp.zeros_like(aw)
            awc[...] = jnp.zeros_like(awc)
            actx[...] = jnp.zeros_like(actx)

        # grid-resident tensors, loaded once per chunk
        mem = mem_ref[...]                     # (B, T, D)
        pmem = pmem_ref[...]                   # (B, T, A)
        negb = negb_ref[...]                   # (B, T) additive padding bias
        vvec = w_v[...][None]                  # (1, 1, A)

        # recurrent state: read once, carry through the unrolled chunk
        ah_v = ah[...]
        ac_v = ac[...]
        dh_v = dh[...]
        dc_v = dc[...]
        aw_v = aw[...]
        awc_v = awc[...]
        ctx_v = actx[...]

        for c in range(chunk):
            # ---------- Prenet: 2 x (linear -> relu -> dropout(0.5)) ---------
            x = dec_in_ref[c]                                        # (B, M)
            h1 = jnp.maximum(
                jnp.dot(x, w_pre1[...], preferred_element_type=jnp.float32), 0.0)
            h1 = h1 * drop1_ref[c]
            h2 = jnp.maximum(
                jnp.dot(h1, w_pre2[...], preferred_element_type=jnp.float32), 0.0)
            prenet_out = h2 * drop2_ref[c]                           # (B, P)

            # ---------- attention LSTM cell (fused input matmul) -------------
            xa = jnp.concatenate([prenet_out, ctx_v, ah_v], axis=-1)
            gates = (jnp.dot(xa, w_attn[...], preferred_element_type=jnp.float32)
                     + b_attn[...])
            i_g = jax.nn.sigmoid(gates[:, 0:Ha])
            f_g = jax.nn.sigmoid(gates[:, Ha:2 * Ha])
            g_g = jnp.tanh(gates[:, 2 * Ha:3 * Ha])
            o_g = jax.nn.sigmoid(gates[:, 3 * Ha:4 * Ha])
            ac_v = f_g * ac_v + i_g * g_g
            ah_v = o_g * jnp.tanh(ac_v)
            # p_attention_dropout = 0.0 -> identity

            # ---------- location-sensitive attention -------------------------
            pq = jnp.dot(ah_v, w_q[...], preferred_element_type=jnp.float32)  # (B,A)

            pa = jnp.zeros((B, T, A), jnp.float32)
            for k in range(K):                    # K static, small
                s = k - pad
                aw_s = shift_T(aw_v, s)           # (B, T)
                awc_s = shift_T(awc_v, s)         # (B, T)
                ck = comb_ref[k]                  # (2, A) folded conv*dense
                pa = pa + aw_s[:, :, None] * ck[0:1, :][None] \
                        + awc_s[:, :, None] * ck[1:2, :][None]

            e_feat = jnp.tanh(pq[:, None, :] + pa + pmem)            # (B, T, A)
            energies = jnp.sum(e_feat * vvec, axis=-1) + negb        # (B, T)
            e_max = jnp.max(energies, axis=-1, keepdims=True)
            e_exp = jnp.exp(energies - e_max)
            attn = e_exp / jnp.sum(e_exp, axis=-1, keepdims=True)    # (B, T)

            # context: batched MXU contraction attn(B,1,T) @ memory(B,T,D)
            ctx_v = jnp.einsum('bqt,btd->bqd', attn[:, None, :], mem,
                               preferred_element_type=jnp.float32)[:, 0, :]
            awc_v = awc_v + attn
            aw_v = attn

            # ---------- decoder LSTM cell (fused input matmul) ----------------
            xd = jnp.concatenate([ah_v, ctx_v, dh_v], axis=-1)
            gd = (jnp.dot(xd, w_dec[...], preferred_element_type=jnp.float32)
                  + b_dec[...])
            i_d = jax.nn.sigmoid(gd[:, 0:Hd])
            f_d = jax.nn.sigmoid(gd[:, Hd:2 * Hd])
            g_d = jnp.tanh(gd[:, 2 * Hd:3 * Hd])
            o_d = jax.nn.sigmoid(gd[:, 3 * Hd:4 * Hd])
            dc_v = f_d * dc_v + i_d * g_d
            dh_v = o_d * jnp.tanh(dc_v)
            # p_decoder_dropout = 0.0 -> identity

            # ---------- fused mel + gate projection ---------------------------
            xpg = jnp.concatenate([dh_v, ctx_v], axis=-1)
            melgate = (jnp.dot(xpg, w_pg[...], preferred_element_type=jnp.float32)
                       + b_pg[...])                                   # (B, M+1)

            melgate_out_ref[c] = melgate
            align_out_ref[c] = attn

        # write recurrent state back once per chunk
        ah[...] = ah_v
        ac[...] = ac_v
        dh[...] = dh_v
        dc[...] = dc_v
        aw[...] = aw_v
        awc[...] = awc_v
        actx[...] = ctx_v

    return kernel


def init_params(key, hp):
    n_mel, nfps = hp["n_mel_channels"], hp["n_frames_per_step"]
    M = n_mel * nfps
    P, Ha, Hd = hp["prenet_dim"], hp["attention_rnn_dim"], hp["decoder_rnn_dim"]
    D, A = hp["decoder_input_dim"], hp["attention_dim"]
    NF, K = hp["attention_location_n_filters"], hp["attention_location_kernel_size"]

    ks = jax.random.split(key, 16)
    nrm = lambda k, s: (0.1 * jax.random.normal(k, s)).astype(jnp.float32)

    # raw PyTorch-convention weights (out, in)
    w_pre1 = nrm(ks[0], (P, M))
    w_pre2 = nrm(ks[1], (P, P))
    w_ih_a = nrm(ks[2], (4 * Ha, P + D))
    w_hh_a = nrm(ks[3], (4 * Ha, Ha))
    b_a = nrm(ks[4], (4 * Ha,)) + nrm(ks[5], (4 * Ha,))    # b_ih + b_hh
    w_q = nrm(ks[6], (A, Ha))
    w_mem = nrm(ks[7], (A, D))
    w_v = nrm(ks[8], (1, A))
    conv_w = nrm(ks[9], (NF, 2, K))                        # location conv, bias=False
    loc_dense = nrm(ks[10], (A, NF))
    w_ih_d = nrm(ks[11], (4 * Hd, Ha + D))
    w_hh_d = nrm(ks[12], (4 * Hd, Hd))
    b_d = nrm(ks[13], (4 * Hd,))
    w_proj = nrm(ks[14], (M, Hd + D))
    b_proj = jnp.zeros((M,), jnp.float32)
    w_gate = nrm(ks[15], (1, Hd + D))
    b_gate = jnp.zeros((1,), jnp.float32)

    # Fold location conv (no bias — both layers linear, exact) with loc dense:
    # comb[k, c, a] = sum_f loc_dense[a, f] * conv_w[f, c, k]
    comb = jnp.einsum('af,fck->kca', loc_dense, conv_w)

    return dict(
        w_pre1=w_pre1.T, w_pre2=w_pre2.T,
        # fused attention-LSTM input weight: [prenet, ctx, h] @ (P+D+Ha, 4Ha)
        w_attn=jnp.concatenate([w_ih_a.T, w_hh_a.T], axis=0),
        b_attn=b_a.reshape(1, -1),
        w_q=w_q.T, w_mem=w_mem.T, w_v=w_v, comb=comb,
        # fused decoder-LSTM input weight: [ah, ctx, dh] @ (Ha+D+Hd, 4Hd)
        w_dec=jnp.concatenate([w_ih_d.T, w_hh_d.T], axis=0),
        b_dec=b_d.reshape(1, -1),
        # fused mel+gate projection: [dh, ctx] @ (Hd+D, M+1)
        w_pg=jnp.concatenate([w_proj.T, w_gate.T], axis=1),
        b_pg=jnp.concatenate([b_proj, b_gate]).reshape(1, -1),
    )


def decoder_forward(params, memory, decoder_inputs, memory_lengths, hp,
                    dropout_key, chunk=8):
    B, T, D = memory.shape
    n_mel, nfps = hp["n_mel_channels"], hp["n_frames_per_step"]
    M = n_mel * nfps
    T_out = decoder_inputs.shape[2]
    T_dec = T_out // nfps
    P, Ha, Hd = hp["prenet_dim"], hp["attention_rnn_dim"], hp["decoder_rnn_dim"]
    A, K = hp["attention_dim"], hp["attention_location_kernel_size"]

    chunk = max(1, min(chunk, T_dec))
    n_chunks = -(-T_dec // chunk)
    T_pad = n_chunks * chunk

    # parse_decoder_inputs + go frame (teacher forcing; last frame never consumed)
    parsed = jnp.transpose(decoder_inputs, (0, 2, 1)).reshape(B, T_dec, M)
    parsed = jnp.transpose(parsed, (1, 0, 2))                       # (T_dec, B, M)
    go = jnp.zeros((1, B, M), jnp.float32)
    dec_in = jnp.concatenate([go, parsed[:-1]], axis=0)             # (T_dec, B, M)
    dec_in = jnp.pad(dec_in, ((0, T_pad - T_dec), (0, 0), (0, 0)))

    # Prenet dropout masks (p=0.5, training=True), pre-scaled by 1/(1-p)=2.
    k1, k2 = jax.random.split(dropout_key)
    drop1 = jax.random.bernoulli(k1, 0.5, (T_pad, B, P)).astype(jnp.float32) * 2.0
    drop2 = jax.random.bernoulli(k2, 0.5, (T_pad, B, P)).astype(jnp.float32) * 2.0

    # Additive padding bias (large finite negative instead of -inf): (B, T)
    negb = jnp.where(jnp.arange(T)[None, :] >= memory_lengths[:, None],
                     -1e30, 0.0).astype(jnp.float32)

    # processed_memory = memory_layer(memory), precomputed outside the kernel
    pmem = jnp.einsum('btd,da->bta', memory, params["w_mem"]).astype(jnp.float32)

    kernel = make_decoder_kernel(
        dict(B=B, T=T, D=D, P=P, Ha=Ha, Hd=Hd, A=A, K=K, M=M), chunk)

    inputs = [dec_in, drop1, drop2, memory.astype(jnp.float32), pmem, negb,
              params["w_pre1"], params["w_pre2"],
              params["w_attn"], params["b_attn"],
              params["w_q"], params["w_v"], params["comb"],
              params["w_dec"], params["b_dec"],
              params["w_pg"], params["b_pg"]]

    def step_spec(last_dim):
        return pl.BlockSpec((chunk, B, last_dim), lambda i: (i, 0, 0))

    def full_spec(a):
        nd = a.ndim
        return pl.BlockSpec(a.shape, lambda i, _nd=nd: (0,) * _nd)

    in_specs = [step_spec(M), step_spec(P), step_spec(P)] + \
               [full_spec(a) for a in inputs[3:]]

    out_shape = (jax.ShapeDtypeStruct((T_pad, B, M + 1), jnp.float32),  # mel+gate
                 jax.ShapeDtypeStruct((T_pad, B, T), jnp.float32))      # alignments
    out_specs = [step_spec(M + 1), step_spec(T)]

    scratch_shapes = [
        pltpu.VMEM((B, Ha), jnp.float32),      # attention_hidden
        pltpu.VMEM((B, Ha), jnp.float32),      # attention_cell
        pltpu.VMEM((B, Hd), jnp.float32),      # decoder_hidden
        pltpu.VMEM((B, Hd), jnp.float32),      # decoder_cell
        pltpu.VMEM((B, T), jnp.float32),       # attention_weights (lane-dense)
        pltpu.VMEM((B, T), jnp.float32),       # attention_weights_cum
        pltpu.VMEM((B, D), jnp.float32),       # attention_context
    ]

    melgate_seq, align_seq = pl.pallas_call(
        kernel,
        out_shape=out_shape,
        grid_spec=pltpu.PrefetchScalarGridSpec(
            num_scalar_prefetch=0,
            grid=(n_chunks,),
            in_specs=in_specs,
            out_specs=out_specs,
            scratch_shapes=scratch_shapes),
        compiler_params=pltpu.CompilerParams(
            dimension_semantics=("arbitrary",)),
    )(*inputs)

    # parse_decoder_outputs (drop padded chunk tail, split mel/gate)
    mel_seq = melgate_seq[:T_dec, :, :M]                            # (T_dec, B, M)
    gate_seq = melgate_seq[:T_dec, :, M]                            # (T_dec, B)
    align_seq = align_seq[:T_dec]                                   # (T_dec, B, T)

    mel_outputs = jnp.transpose(mel_seq, (1, 0, 2)).reshape(B, T_dec * nfps, n_mel)
    mel_outputs = jnp.transpose(mel_outputs, (0, 2, 1))             # (B, n_mel, T_out)
    gate_outputs = jnp.transpose(gate_seq, (1, 0))                  # (B, T_dec)
    alignments = jnp.transpose(align_seq, (1, 0, 2))                # (B, T_dec, T)
    return mel_outputs, gate_outputs, alignments


if __name__ == "__main__":
    hp = dict(
        n_mel_channels=8, n_frames_per_step=1,
        encoder_embedding_dim=32, decoder_input_dim=32,
        attention_rnn_dim=32, decoder_rnn_dim=32, prenet_dim=32,
        attention_dim=16, attention_location_n_filters=4,
        attention_location_kernel_size=3,
        # p_attention_dropout = p_decoder_dropout = 0.0, attention_window_size = None
    )
    B, T_enc, T_out = 2, 8, 4

    key = jax.random.PRNGKey(0)
    k_mem, k_dec, k_par, k_drop = jax.random.split(key, 4)
    memory = jax.random.normal(k_mem, (B, T_enc, hp["decoder_input_dim"]),
                               dtype=jnp.float32)
    decoder_inputs = jax.random.normal(
        k_dec, (B, hp["n_mel_channels"], T_out), dtype=jnp.float32)  # NCW mel-spec
    memory_lengths = jnp.array([T_enc, T_enc - 3], dtype=jnp.int32)

    params = init_params(k_par, hp)

    mel, gate, align = decoder_forward(params, memory, decoder_inputs,
                                       memory_lengths, hp, k_drop)
    jax.block_until_ready((mel, gate, align))

    assert mel.shape == (B, hp["n_mel_channels"], T_out)
    assert gate.shape == (B, T_out // hp["n_frames_per_step"])
    assert align.shape == (B, T_out // hp["n_frames_per_step"], T_enc)
    assert bool(jnp.all(jnp.isfinite(mel))) and bool(jnp.all(jnp.isfinite(align)))
    # attention rows are a softmax -> sum to 1 over the encoder axis
    assert bool(jnp.all(jnp.abs(jnp.sum(align, axis=-1) - 1.0) < 1e-4))
    print("KERNEL_OK")
</pallas_src>

<mosaic_0001>
module attributes {stable_mosaic.version = 11 : i64} {
  func.func @kernel(%arg0: i32, %arg1: memref<4x2x8xf32, #tpu.memory_space<vmem>>, %arg2: memref<4x2x32xf32, #tpu.memory_space<vmem>>, %arg3: memref<4x2x32xf32, #tpu.memory_space<vmem>>, %arg4: memref<2x8x32xf32, #tpu.memory_space<vmem>>, %arg5: memref<2x8x16xf32, #tpu.memory_space<vmem>>, %arg6: memref<2x8xf32, #tpu.memory_space<vmem>>, %arg7: memref<8x32xf32, #tpu.memory_space<vmem>>, %arg8: memref<32x32xf32, #tpu.memory_space<vmem>>, %arg9: memref<96x128xf32, #tpu.memory_space<vmem>>, %arg10: memref<1x128xf32, #tpu.memory_space<vmem>>, %arg11: memref<32x16xf32, #tpu.memory_space<vmem>>, %arg12: memref<1x16xf32, #tpu.memory_space<vmem>>, %arg13: memref<3x2x16xf32, #tpu.memory_space<vmem>>, %arg14: memref<96x128xf32, #tpu.memory_space<vmem>>, %arg15: memref<1x128xf32, #tpu.memory_space<vmem>>, %arg16: memref<64x9xf32, #tpu.memory_space<vmem>>, %arg17: memref<1x9xf32, #tpu.memory_space<vmem>>, %arg18: memref<4x2x9xf32, #tpu.memory_space<vmem>>, %arg19: memref<4x2x8xf32, #tpu.memory_space<vmem>>, %arg20: memref<2x32xf32, #tpu.memory_space<vmem>>, %arg21: memref<2x32xf32, #tpu.memory_space<vmem>>, %arg22: memref<2x32xf32, #tpu.memory_space<vmem>>, %arg23: memref<2x32xf32, #tpu.memory_space<vmem>>, %arg24: memref<2x8xf32, #tpu.memory_space<vmem>>, %arg25: memref<2x8xf32, #tpu.memory_space<vmem>>, %arg26: memref<2x32xf32, #tpu.memory_space<vmem>>) attributes {dimension_semantics = [#tpu.dimension_semantics<arbitrary>], iteration_bounds = array<i64: 1>, scalar_prefetch = 0 : i64, scratch_operands = 7 : i64, tpu.core_type = #tpu.core_type<tc>, window_params = [{transform_indices = @transform_0, window_bounds = array<i64: 4, 2, 8>}, {transform_indices = @transform_1, window_bounds = array<i64: 4, 2, 32>}, {transform_indices = @transform_2, window_bounds = array<i64: 4, 2, 32>}, {pipeline_mode = #tpu.pipeline_mode<synchronous>, transform_indices = @transform_3, window_bounds = array<i64: 2, 8, 32>}, {pipeline_mode = #tpu.pipeline_mode<synchronous>, transform_indices = @transform_4, window_bounds = array<i64: 2, 8, 16>}, {pipeline_mode = #tpu.pipeline_mode<synchronous>, transform_indices = @transform_5, window_bounds = array<i64: 2, 8>}, {pipeline_mode = #tpu.pipeline_mode<synchronous>, transform_indices = @transform_6, window_bounds = array<i64: 8, 32>}, {pipeline_mode = #tpu.pipeline_mode<synchronous>, transform_indices = @transform_7, window_bounds = array<i64: 32, 32>}, {pipeline_mode = #tpu.pipeline_mode<synchronous>, transform_indices = @transform_8, window_bounds = array<i64: 96, 128>}, {pipeline_mode = #tpu.pipeline_mode<synchronous>, transform_indices = @transform_9, window_bounds = array<i64: 1, 128>}, {pipeline_mode = #tpu.pipeline_mode<synchronous>, transform_indices = @transform_10, window_bounds = array<i64: 32, 16>}, {pipeline_mode = #tpu.pipeline_mode<synchronous>, transform_indices = @transform_11, window_bounds = array<i64: 1, 16>}, {pipeline_mode = #tpu.pipeline_mode<synchronous>, transform_indices = @transform_12, window_bounds = array<i64: 3, 2, 16>}, {pipeline_mode = #tpu.pipeline_mode<synchronous>, transform_indices = @transform_13, window_bounds = array<i64: 96, 128>}, {pipeline_mode = #tpu.pipeline_mode<synchronous>, transform_indices = @transform_14, window_bounds = array<i64: 1, 128>}, {pipeline_mode = #tpu.pipeline_mode<synchronous>, transform_indices = @transform_15, window_bounds = array<i64: 64, 9>}, {pipeline_mode = #tpu.pipeline_mode<synchronous>, transform_indices = @transform_16, window_bounds = array<i64: 1, 9>}, {transform_indices = @transform_17, window_bounds = array<i64: 4, 2, 9>}, {transform_indices = @transform_18, window_bounds = array<i64: 4, 2, 8>}]} {
    %c0_i32 = arith.constant 0 : i32
    %0 = arith.cmpi eq, %arg0, %c0_i32 : i32
    %1 = arith.extui %0 : i1 to i32
    %c0_i32_0 = arith.constant 0 : i32
    %2 = arith.cmpi ne, %1, %c0_i32_0 : i32
    scf.if %2 {
      %cst_294 = arith.constant 0.000000e+00 : f32
      %722 = vector.broadcast %cst_294 : f32 to vector<2x32xf32>
      %c0_295 = arith.constant 0 : index
      %c0_296 = arith.constant 0 : index
      %723 = vector.load %arg20[%c0_295, %c0_296] : memref<2x32xf32, #tpu.memory_space<vmem>>, vector<2x32xf32>
      tpu.vector_store %arg20[%c0_295, %c0_296], %722 {strides = array<i32>} : memref<2x32xf32, #tpu.memory_space<vmem>>, vector<2x32xf32>,
      %cst_297 = arith.constant 0.000000e+00 : f32
      %724 = vector.broadcast %cst_297 : f32 to vector<2x32xf32>
      %c0_298 = arith.constant 0 : index
      %c0_299 = arith.constant 0 : index
      %725 = vector.load %arg21[%c0_298, %c0_299] : memref<2x32xf32, #tpu.memory_space<vmem>>, vector<2x32xf32>
      tpu.vector_store %arg21[%c0_298, %c0_299], %724 {strides = array<i32>} : memref<2x32xf32, #tpu.memory_space<vmem>>, vector<2x32xf32>,
      %cst_300 = arith.constant 0.000000e+00 : f32
      %726 = vector.broadcast %cst_300 : f32 to vector<2x32xf32>
      %c0_301 = arith.constant 0 : index
      %c0_302 = arith.constant 0 : index
      %727 = vector.load %arg22[%c0_301, %c0_302] : memref<2x32xf32, #tpu.memory_space<vmem>>, vector<2x32xf32>
      tpu.vector_store %arg22[%c0_301, %c0_302], %726 {strides = array<i32>} : memref<2x32xf32, #tpu.memory_space<vmem>>, vector<2x32xf32>,
      %cst_303 = arith.constant 0.000000e+00 : f32
      %728 = vector.broadcast %cst_303 : f32 to vector<2x32xf32>
      %c0_304 = arith.constant 0 : index
      %c0_305 = arith.constant 0 : index
      %729 = vector.load %arg23[%c0_304, %c0_305] : memref<2x32xf32, #tpu.memory_space<vmem>>, vector<2x32xf32>
      tpu.vector_store %arg23[%c0_304, %c0_305], %728 {strides = array<i32>} : memref<2x32xf32, #tpu.memory_space<vmem>>, vector<2x32xf32>,
      %cst_306 = arith.constant 0.000000e+00 : f32
      %730 = vector.broadcast %cst_306 : f32 to vector<2x8xf32>
      %c0_307 = arith.constant 0 : index
      %c0_308 = arith.constant 0 : index
      %731 = vector.load %arg24[%c0_307, %c0_308] : memref<2x8xf32, #tpu.memory_space<vmem>>, vector<2x8xf32>
      tpu.vector_store %arg24[%c0_307, %c0_308], %730 {strides = array<i32>} : memref<2x8xf32, #tpu.memory_space<vmem>>, vector<2x8xf32>,
      %cst_309 = arith.constant 0.000000e+00 : f32
      %732 = vector.broadcast %cst_309 : f32 to vector<2x8xf32>
      %c0_310 = arith.constant 0 : index
      %c0_311 = arith.constant 0 : index
      %733 = vector.load %arg25[%c0_310, %c0_311] : memref<2x8xf32, #tpu.memory_space<vmem>>, vector<2x8xf32>
      tpu.vector_store %arg25[%c0_310, %c0_311], %732 {strides = array<i32>} : memref<2x8xf32, #tpu.memory_space<vmem>>, vector<2x8xf32>,
      %cst_312 = arith.constant 0.000000e+00 : f32
      %734 = vector.broadcast %cst_312 : f32 to vector<2x32xf32>
      %c0_313 = arith.constant 0 : index
      %c0_314 = arith.constant 0 : index
      %735 = vector.load %arg26[%c0_313, %c0_314] : memref<2x32xf32, #tpu.memory_space<vmem>>, vector<2x32xf32>
      tpu.vector_store %arg26[%c0_313, %c0_314], %734 {strides = array<i32>} : memref<2x32xf32, #tpu.memory_space<vmem>>, vector<2x32xf32>,
    } else {
    }
    %c0 = arith.constant 0 : index
    %c0_1 = arith.constant 0 : index
    %c0_2 = arith.constant 0 : index
    %3 = vector.load %arg4[%c0, %c0_1, %c0_2] : memref<2x8x32xf32, #tpu.memory_space<vmem>>, vector<2x8x32xf32>
    %c0_3 = arith.constant 0 : index
    %c0_4 = arith.constant 0 : index
    %c0_5 = arith.constant 0 : index
    %4 = vector.load %arg5[%c0_3, %c0_4, %c0_5] : memref<2x8x16xf32, #tpu.memory_space<vmem>>, vector<2x8x16xf32>
    %c0_6 = arith.constant 0 : index
    %c0_7 = arith.constant 0 : index
    %5 = vector.load %arg6[%c0_6, %c0_7] : memref<2x8xf32, #tpu.memory_space<vmem>>, vector<2x8xf32>
    %c0_8 = arith.constant 0 : index
    %c0_9 = arith.constant 0 : index
    %6 = vector.load %arg12[%c0_8, %c0_9] : memref<1x16xf32, #tpu.memory_space<vmem>>, vector<1x16xf32>
    %7 = vector.shape_cast %6 : vector<1x16xf32> to vector<1x1x16xf32>
    %c0_10 = arith.constant 0 : index
    %c0_11 = arith.constant 0 : index
    %8 = vector.load %arg20[%c0_10, %c0_11] : memref<2x32xf32, #tpu.memory_space<vmem>>, vector<2x32xf32>
    %c0_12 = arith.constant 0 : index
    %c0_13 = arith.constant 0 : index
    %9 = vector.load %arg21[%c0_12, %c0_13] : memref<2x32xf32, #tpu.memory_space<vmem>>, vector<2x32xf32>
    %c0_14 = arith.constant 0 : index
    %c0_15 = arith.constant 0 : index
    %10 = vector.load %arg22[%c0_14, %c0_15] : memref<2x32xf32, #tpu.memory_space<vmem>>, vector<2x32xf32>
    %c0_16 = arith.constant 0 : index
    %c0_17 = arith.constant 0 : index
    %11 = vector.load %arg23[%c0_16, %c0_17] : memref<2x32xf32, #tpu.memory_space<vmem>>, vector<2x32xf32>
    %c0_18 = arith.constant 0 : index
    %c0_19 = arith.constant 0 : index
    %12 = vector.load %arg24[%c0_18, %c0_19] : memref<2x8xf32, #tpu.memory_space<vmem>>, vector<2x8xf32>
    %c0_20 = arith.constant 0 : index
    %c0_21 = arith.constant 0 : index
    %13 = vector.load %arg25[%c0_20, %c0_21] : memref<2x8xf32, #tpu.memory_space<vmem>>, vector<2x8xf32>
    %c0_22 = arith.constant 0 : index
    %c0_23 = arith.constant 0 : index
    %14 = vector.load %arg26[%c0_22, %c0_23] : memref<2x32xf32, #tpu.memory_space<vmem>>, vector<2x32xf32>
    %c0_24 = arith.constant 0 : index
    %c0_25 = arith.constant 0 : index
    %c0_26 = arith.constant 0 : index
    %15 = vector.load %arg1[%c0_24, %c0_25, %c0_26] : memref<4x2x8xf32, #tpu.memory_space<vmem>>, vector<1x2x8xf32>
    %16 = vector.shape_cast %15 : vector<1x2x8xf32> to vector<2x8xf32>
    %c0_27 = arith.constant 0 : index
    %c0_28 = arith.constant 0 : index
    %17 = vector.load %arg7[%c0_27, %c0_28] : memref<8x32xf32, #tpu.memory_space<vmem>>, vector<8x32xf32>
    %cst = arith.constant dense<0.000000e+00> : vector<2x32xf32>
    %18 = tpu.matmul %16, %17, %cst {dimension_numbers = #tpu.dot_dimension_numbers<[1], [0], [0], [1], [0, 0, 1, 1], [], []>} : vector<2x8xf32>, vector<8x32xf32>, vector<2x32xf32> -> vector<2x32xf32>
    %cst_29 = arith.constant 0.000000e+00 : f32
    %19 = vector.broadcast %cst_29 : f32 to vector<2x32xf32>
    %20 = arith.maximumf %18, %19 : vector<2x32xf32>
    %c0_30 = arith.constant 0 : index
    %c0_31 = arith.constant 0 : index
    %c0_32 = arith.constant 0 : index
    %21 = vector.load %arg2[%c0_30, %c0_31, %c0_32] : memref<4x2x32xf32, #tpu.memory_space<vmem>>, vector<1x2x32xf32>
    %22 = vector.shape_cast %21 : vector<1x2x32xf32> to vector<2x32xf32>
    %23 = arith.mulf %20, %22 : vector<2x32xf32>
    %c0_33 = arith.constant 0 : index
    %c0_34 = arith.constant 0 : index
    %24 = vector.load %arg8[%c0_33, %c0_34] : memref<32x32xf32, #tpu.memory_space<vmem>>, vector<32x32xf32>
    %cst_35 = arith.constant dense<0.000000e+00> : vector<2x32xf32>
    %25 = tpu.matmul %23, %24, %cst_35 {dimension_numbers = #tpu.dot_dimension_numbers<[1], [0], [0], [1], [0, 0, 1, 1], [], []>} : vector<2x32xf32>, vector<32x32xf32>, vector<2x32xf32> -> vector<2x32xf32>
    %cst_36 = arith.constant 0.000000e+00 : f32
    %26 = vector.broadcast %cst_36 : f32 to vector<2x32xf32>
    %27 = arith.maximumf %25, %26 : vector<2x32xf32>
    %c0_37 = arith.constant 0 : index
    %c0_38 = arith.constant 0 : index
    %c0_39 = arith.constant 0 : index
    %28 = vector.load %arg3[%c0_37, %c0_38, %c0_39] : memref<4x2x32xf32, #tpu.memory_space<vmem>>, vector<1x2x32xf32>
    %29 = vector.shape_cast %28 : vector<1x2x32xf32> to vector<2x32xf32>
    %30 = arith.mulf %27, %29 : vector<2x32xf32>
    %31 = tpu.concatenate %30, %14, %8 in 1 : vector<2x32xf32>, vector<2x32xf32>, vector<2x32xf32> -> vector<2x96xf32>
    %c0_40 = arith.constant 0 : index
    %c0_41 = arith.constant 0 : index
    %32 = vector.load %arg9[%c0_40, %c0_41] : memref<96x128xf32, #tpu.memory_space<vmem>>, vector<96x128xf32>
    %cst_42 = arith.constant dense<0.000000e+00> : vector<2x128xf32>
    %33 = tpu.matmul %31, %32, %cst_42 {dimension_numbers = #tpu.dot_dimension_numbers<[1], [0], [0], [1], [0, 0, 1, 1], [], []>} : vector<2x96xf32>, vector<96x128xf32>, vector<2x128xf32> -> vector<2x128xf32>
    %c0_43 = arith.constant 0 : index
    %c0_44 = arith.constant 0 : index
    %34 = vector.load %arg10[%c0_43, %c0_44] : memref<1x128xf32, #tpu.memory_space<vmem>>, vector<1x128xf32>
    %35 = vector.broadcast %34 : vector<1x128xf32> to vector<2x128xf32>
    %36 = arith.addf %33, %35 : vector<2x128xf32>
    %37 = vector.extract_strided_slice %36 {offsets = [0, 0], sizes = [2, 32], strides = [1, 1]} : vector<2x128xf32> to vector<2x32xf32>
    %38 = arith.negf %37 : vector<2x32xf32>
    %39 = math.exp %38 : vector<2x32xf32>
    %cst_45 = arith.constant 1.000000e+00 : f32
    %40 = vector.broadcast %cst_45 : f32 to vector<2x32xf32>
    %41 = arith.addf %40, %39 : vector<2x32xf32>
    %42 = arith.divf %40, %41 : vector<2x32xf32>
    %43 = vector.extract_strided_slice %36 {offsets = [0, 32], sizes = [2, 32], strides = [1, 1]} : vector<2x128xf32> to vector<2x32xf32>
    %44 = arith.negf %43 : vector<2x32xf32>
    %45 = math.exp %44 : vector<2x32xf32>
    %cst_46 = arith.constant 1.000000e+00 : f32
    %46 = vector.broadcast %cst_46 : f32 to vector<2x32xf32>
    %47 = arith.addf %46, %45 : vector<2x32xf32>
    %48 = arith.divf %46, %47 : vector<2x32xf32>
    %49 = vector.extract_strided_slice %36 {offsets = [0, 64], sizes = [2, 32], strides = [1, 1]} : vector<2x128xf32> to vector<2x32xf32>
    %50 = math.tanh %49 : vector<2x32xf32>
    %51 = vector.extract_strided_slice %36 {offsets = [0, 96], sizes = [2, 32], strides = [1, 1]} : vector<2x128xf32> to vector<2x32xf32>
    %52 = arith.negf %51 : vector<2x32xf32>
    %53 = math.exp %52 : vector<2x32xf32>
    %cst_47 = arith.constant 1.000000e+00 : f32
    %54 = vector.broadcast %cst_47 : f32 to vector<2x32xf32>
    %55 = arith.addf %54, %53 : vector<2x32xf32>
    %56 = arith.divf %54, %55 : vector<2x32xf32>
    %57 = arith.mulf %48, %9 : vector<2x32xf32>
    %58 = arith.mulf %42, %50 : vector<2x32xf32>
    %59 = arith.addf %57, %58 : vector<2x32xf32>
    %60 = math.tanh %59 : vector<2x32xf32>
    %61 = arith.mulf %56, %60 : vector<2x32xf32>
    %c0_48 = arith.constant 0 : index
    %c0_49 = arith.constant 0 : index
    %62 = vector.load %arg11[%c0_48, %c0_49] : memref<32x16xf32, #tpu.memory_space<vmem>>, vector<32x16xf32>
    %cst_50 = arith.constant dense<0.000000e+00> : vector<2x16xf32>
    %63 = tpu.matmul %61, %62, %cst_50 {dimension_numbers = #tpu.dot_dimension_numbers<[1], [0], [0], [1], [0, 0, 1, 1], [], []>} : vector<2x32xf32>, vector<32x16xf32>, vector<2x16xf32> -> vector<2x16xf32>
    %cst_51 = arith.constant 0.000000e+00 : f32
    %64 = vector.broadcast %cst_51 : f32 to vector<2x8x16xf32>
    %cst_52 = arith.constant 0.000000e+00 : f32
    %65 = vector.broadcast %cst_52 : f32 to vector<2x1xf32>
    %66 = vector.extract_strided_slice %12 {offsets = [0, 0], sizes = [2, 7], strides = [1, 1]} : vector<2x8xf32> to vector<2x7xf32>
    %67 = tpu.concatenate %65, %66 in 1 : vector<2x1xf32>, vector<2x7xf32> -> vector<2x8xf32>
    %cst_53 = arith.constant 0.000000e+00 : f32
    %68 = vector.broadcast %cst_53 : f32 to vector<2x1xf32>
    %69 = vector.extract_strided_slice %13 {offsets = [0, 0], sizes = [2, 7], strides = [1, 1]} : vector<2x8xf32> to vector<2x7xf32>
    %70 = tpu.concatenate %68, %69 in 1 : vector<2x1xf32>, vector<2x7xf32> -> vector<2x8xf32>
    %c0_54 = arith.constant 0 : index
    %c0_55 = arith.constant 0 : index
    %c0_56 = arith.constant 0 : index
    %71 = vector.load %arg13[%c0_54, %c0_55, %c0_56] : memref<3x2x16xf32, #tpu.memory_space<vmem>>, vector<1x2x16xf32>
    %72 = vector.shape_cast %71 : vector<1x2x16xf32> to vector<2x16xf32>
    %73 = vector.shape_cast %67 : vector<2x8xf32> to vector<2x8x1xf32>
    %74 = vector.extract_strided_slice %72 {offsets = [0, 0], sizes = [1, 16], strides = [1, 1]} : vector<2x16xf32> to vector<1x16xf32>
    %75 = vector.shape_cast %74 : vector<1x16xf32> to vector<1x1x16xf32>
    %76 = vector.broadcast %73 : vector<2x8x1xf32> to vector<2x8x16xf32>
    %77 = vector.broadcast %75 : vector<1x1x16xf32> to vector<2x8x16xf32>
    %78 = arith.mulf %76, %77 : vector<2x8x16xf32>
    %79 = arith.addf %64, %78 : vector<2x8x16xf32>
    %80 = vector.shape_cast %70 : vector<2x8xf32> to vector<2x8x1xf32>
    %81 = vector.extract_strided_slice %72 {offsets = [1, 0], sizes = [1, 16], strides = [1, 1]} : vector<2x16xf32> to vector<1x16xf32>
    %82 = vector.shape_cast %81 : vector<1x16xf32> to vector<1x1x16xf32>
    %83 = vector.broadcast %80 : vector<2x8x1xf32> to vector<2x8x16xf32>
    %84 = vector.broadcast %82 : vector<1x1x16xf32> to vector<2x8x16xf32>
    %85 = arith.mulf %83, %84 : vector<2x8x16xf32>
    %86 = arith.addf %79, %85 : vector<2x8x16xf32>
    %c1 = arith.constant 1 : index
    %c0_57 = arith.constant 0 : index
    %c0_58 = arith.constant 0 : index
    %87 = vector.load %arg13[%c1, %c0_57, %c0_58] : memref<3x2x16xf32, #tpu.memory_space<vmem>>, vector<1x2x16xf32>
    %88 = vector.shape_cast %87 : vector<1x2x16xf32> to vector<2x16xf32>
    %89 = vector.shape_cast %12 : vector<2x8xf32> to vector<2x8x1xf32>
    %90 = vector.extract_strided_slice %88 {offsets = [0, 0], sizes = [1, 16], strides = [1, 1]} : vector<2x16xf32> to vector<1x16xf32>
    %91 = vector.shape_cast %90 : vector<1x16xf32> to vector<1x1x16xf32>
    %92 = vector.broadcast %89 : vector<2x8x1xf32> to vector<2x8x16xf32>
    %93 = vector.broadcast %91 : vector<1x1x16xf32> to vector<2x8x16xf32>
    %94 = arith.mulf %92, %93 : vector<2x8x16xf32>
    %95 = arith.addf %86, %94 : vector<2x8x16xf32>
    %96 = vector.shape_cast %13 : vector<2x8xf32> to vector<2x8x1xf32>
    %97 = vector.extract_strided_slice %88 {offsets = [1, 0], sizes = [1, 16], strides = [1, 1]} : vector<2x16xf32> to vector<1x16xf32>
    %98 = vector.shape_cast %97 : vector<1x16xf32> to vector<1x1x16xf32>
    %99 = vector.broadcast %96 : vector<2x8x1xf32> to vector<2x8x16xf32>
    %100 = vector.broadcast %98 : vector<1x1x16xf32> to vector<2x8x16xf32>
    %101 = arith.mulf %99, %100 : vector<2x8x16xf32>
    %102 = arith.addf %95, %101 : vector<2x8x16xf32>
    %cst_59 = arith.constant 0.000000e+00 : f32
    %103 = vector.broadcast %cst_59 : f32 to vector<2x1xf32>
    %104 = vector.extract_strided_slice %12 {offsets = [0, 1], sizes = [2, 7], strides = [1, 1]} : vector<2x8xf32> to vector<2x7xf32>
    %105 = tpu.concatenate %104, %103 in 1 : vector<2x7xf32>, vector<2x1xf32> -> vector<2x8xf32>
    %cst_60 = arith.constant 0.000000e+00 : f32
    %106 = vector.broadcast %cst_60 : f32 to vector<2x1xf32>
    %107 = vector.extract_strided_slice %13 {offsets = [0, 1], sizes = [2, 7], strides = [1, 1]} : vector<2x8xf32> to vector<2x7xf32>
    %108 = tpu.concatenate %107, %106 in 1 : vector<2x7xf32>, vector<2x1xf32> -> vector<2x8xf32>
    %c2 = arith.constant 2 : index
    %c0_61 = arith.constant 0 : index
    %c0_62 = arith.constant 0 : index
    %109 = vector.load %arg13[%c2, %c0_61, %c0_62] : memref<3x2x16xf32, #tpu.memory_space<vmem>>, vector<1x2x16xf32>
    %110 = vector.shape_cast %109 : vector<1x2x16xf32> to vector<2x16xf32>
    %111 = vector.shape_cast %105 : vector<2x8xf32> to vector<2x8x1xf32>
    %112 = vector.extract_strided_slice %110 {offsets = [0, 0], sizes = [1, 16], strides = [1, 1]} : vector<2x16xf32> to vector<1x16xf32>
    %113 = vector.shape_cast %112 : vector<1x16xf32> to vector<1x1x16xf32>
    %114 = vector.broadcast %111 : vector<2x8x1xf32> to vector<2x8x16xf32>
    %115 = vector.broadcast %113 : vector<1x1x16xf32> to vector<2x8x16xf32>
    %116 = arith.mulf %114, %115 : vector<2x8x16xf32>
    %117 = arith.addf %102, %116 : vector<2x8x16xf32>
    %118 = vector.shape_cast %108 : vector<2x8xf32> to vector<2x8x1xf32>
    %119 = vector.extract_strided_slice %110 {offsets = [1, 0], sizes = [1, 16], strides = [1, 1]} : vector<2x16xf32> to vector<1x16xf32>
    %120 = vector.shape_cast %119 : vector<1x16xf32> to vector<1x1x16xf32>
    %121 = vector.broadcast %118 : vector<2x8x1xf32> to vector<2x8x16xf32>
    %122 = vector.broadcast %120 : vector<1x1x16xf32> to vector<2x8x16xf32>
    %123 = arith.mulf %121, %122 : vector<2x8x16xf32>
    %124 = arith.addf %117, %123 : vector<2x8x16xf32>
    %125 = vector.shape_cast %63 : vector<2x16xf32> to vector<2x1x16xf32>
    %126 = vector.broadcast %125 : vector<2x1x16xf32> to vector<2x8x16xf32>
    %127 = arith.addf %126, %124 : vector<2x8x16xf32>
    %128 = arith.addf %127, %4 : vector<2x8x16xf32>
    %129 = math.tanh %128 : vector<2x8x16xf32>
    %130 = vector.broadcast %7 : vector<1x1x16xf32> to vector<2x8x16xf32>
    %131 = arith.mulf %129, %130 : vector<2x8x16xf32>
    %cst_63 = arith.constant dense<0.000000e+00> : vector<2x8xf32>
    %132 = vector.multi_reduction <add>, %131, %cst_63 [2] : vector<2x8x16xf32> to vector<2x8xf32>
    %133 = arith.addf %132, %5 : vector<2x8xf32>
    %cst_64 = arith.constant dense<0xFF800000> : vector<2xf32>
    %134 = vector.multi_reduction <maximumf>, %133, %cst_64 [1] : vector<2x8xf32> to vector<2xf32>
    %135 = vector.shape_cast %134 : vector<2xf32> to vector<2x1xf32>
    %136 = vector.broadcast %135 : vector<2x1xf32> to vector<2x8xf32>
    %137 = arith.subf %133, %136 : vector<2x8xf32>
    %138 = math.exp %137 : vector<2x8xf32>
    %cst_65 = arith.constant dense<0.000000e+00> : vector<2xf32>
    %139 = vector.multi_reduction <add>, %138, %cst_65 [1] : vector<2x8xf32> to vector<2xf32>
    %140 = vector.shape_cast %139 : vector<2xf32> to vector<2x1xf32>
    %141 = vector.broadcast %140 : vector<2x1xf32> to vector<2x8xf32>
    %142 = arith.divf %138, %141 : vector<2x8xf32>
    %143 = vector.shape_cast %142 : vector<2x8xf32> to vector<2x1x8xf32>
    "tpu.trace_start"() <{level = 10 : i32, message = "bqt,btd->bqd"}> : () -> ()
    %cst_66 = arith.constant dense<0.000000e+00> : vector<2x1x32xf32>
    %144 = tpu.matmul %143, %3, %cst_66 {dimension_numbers = #tpu.dot_dimension_numbers<[2], [1], [1], [2], [0, 0, 0, 1, 1, 2], [0], [0]>} : vector<2x1x8xf32>, vector<2x8x32xf32>, vector<2x1x32xf32> -> vector<2x1x32xf32>
    "tpu.trace_stop"() : () -> ()
    %145 = vector.shape_cast %144 : vector<2x1x32xf32> to vector<2x32xf32>
    %146 = arith.addf %13, %142 : vector<2x8xf32>
    %147 = tpu.concatenate %61, %145, %10 in 1 : vector<2x32xf32>, vector<2x32xf32>, vector<2x32xf32> -> vector<2x96xf32>
    %c0_67 = arith.constant 0 : index
    %c0_68 = arith.constant 0 : index
    %148 = vector.load %arg14[%c0_67, %c0_68] : memref<96x128xf32, #tpu.memory_space<vmem>>, vector<96x128xf32>
    %cst_69 = arith.constant dense<0.000000e+00> : vector<2x128xf32>
    %149 = tpu.matmul %147, %148, %cst_69 {dimension_numbers = #tpu.dot_dimension_numbers<[1], [0], [0], [1], [0, 0, 1, 1], [], []>} : vector<2x96xf32>, vector<96x128xf32>, vector<2x128xf32> -> vector<2x128xf32>
    %c0_70 = arith.constant 0 : index
    %c0_71 = arith.constant 0 : index
    %150 = vector.load %arg15[%c0_70, %c0_71] : memref<1x128xf32, #tpu.memory_space<vmem>>, vector<1x128xf32>
    %151 = vector.broadcast %150 : vector<1x128xf32> to vector<2x128xf32>
    %152 = arith.addf %149, %151 : vector<2x128xf32>
    %153 = vector.extract_strided_slice %152 {offsets = [0, 0], sizes = [2, 32], strides = [1, 1]} : vector<2x128xf32> to vector<2x32xf32>
    %154 = arith.negf %153 : vector<2x32xf32>
    %155 = math.exp %154 : vector<2x32xf32>
    %cst_72 = arith.constant 1.000000e+00 : f32
    %156 = vector.broadcast %cst_72 : f32 to vector<2x32xf32>
    %157 = arith.addf %156, %155 : vector<2x32xf32>
    %158 = arith.divf %156, %157 : vector<2x32xf32>
    %159 = vector.extract_strided_slice %152 {offsets = [0, 32], sizes = [2, 32], strides = [1, 1]} : vector<2x128xf32> to vector<2x32xf32>
    %160 = arith.negf %159 : vector<2x32xf32>
    %161 = math.exp %160 : vector<2x32xf32>
    %cst_73 = arith.constant 1.000000e+00 : f32
    %162 = vector.broadcast %cst_73 : f32 to vector<2x32xf32>
    %163 = arith.addf %162, %161 : vector<2x32xf32>
    %164 = arith.divf %162, %163 : vector<2x32xf32>
    %165 = vector.extract_strided_slice %152 {offsets = [0, 64], sizes = [2, 32], strides = [1, 1]} : vector<2x128xf32> to vector<2x32xf32>
    %166 = math.tanh %165 : vector<2x32xf32>
    %167 = vector.extract_strided_slice %152 {offsets = [0, 96], sizes = [2, 32], strides = [1, 1]} : vector<2x128xf32> to vector<2x32xf32>
    %168 = arith.negf %167 : vector<2x32xf32>
    %169 = math.exp %168 : vector<2x32xf32>
    %cst_74 = arith.constant 1.000000e+00 : f32
    %170 = vector.broadcast %cst_74 : f32 to vector<2x32xf32>
    %171 = arith.addf %170, %169 : vector<2x32xf32>
    %172 = arith.divf %170, %171 : vector<2x32xf32>
    %173 = arith.mulf %164, %11 : vector<2x32xf32>
    %174 = arith.mulf %158, %166 : vector<2x32xf32>
    %175 = arith.addf %173, %174 : vector<2x32xf32>
    %176 = math.tanh %175 : vector<2x32xf32>
    %177 = arith.mulf %172, %176 : vector<2x32xf32>
    %178 = tpu.concatenate %177, %145 in 1 : vector<2x32xf32>, vector<2x32xf32> -> vector<2x64xf32>
    %c0_75 = arith.constant 0 : index
    %c0_76 = arith.constant 0 : index
    %179 = vector.load %arg16[%c0_75, %c0_76] : memref<64x9xf32, #tpu.memory_space<vmem>>, vector<64x9xf32>
    %cst_77 = arith.constant dense<0.000000e+00> : vector<2x9xf32>
    %180 = tpu.matmul %178, %179, %cst_77 {dimension_numbers = #tpu.dot_dimension_numbers<[1], [0], [0], [1], [0, 0, 1, 1], [], []>} : vector<2x64xf32>, vector<64x9xf32>, vector<2x9xf32> -> vector<2x9xf32>
    %c0_78 = arith.constant 0 : index
    %c0_79 = arith.constant 0 : index
    %181 = vector.load %arg17[%c0_78, %c0_79] : memref<1x9xf32, #tpu.memory_space<vmem>>, vector<1x9xf32>
    %182 = vector.broadcast %181 : vector<1x9xf32> to vector<2x9xf32>
    %183 = arith.addf %180, %182 : vector<2x9xf32>
    %c0_80 = arith.constant 0 : index
    %c0_81 = arith.constant 0 : index
    %c0_82 = arith.constant 0 : index
    %184 = vector.load %arg18[%c0_80, %c0_81, %c0_82] : memref<4x2x9xf32, #tpu.memory_space<vmem>>, vector<1x2x9xf32>
    %185 = vector.shape_cast %184 : vector<1x2x9xf32> to vector<2x9xf32>
    %186 = vector.shape_cast %183 : vector<2x9xf32> to vector<1x2x9xf32>
    tpu.vector_store %arg18[%c0_80, %c0_81, %c0_82], %186 {strides = array<i32>} : memref<4x2x9xf32, #tpu.memory_space<vmem>>, vector<1x2x9xf32>,
    %c0_83 = arith.constant 0 : index
    %c0_84 = arith.constant 0 : index
    %c0_85 = arith.constant 0 : index
    %187 = vector.load %arg19[%c0_83, %c0_84, %c0_85] : memref<4x2x8xf32, #tpu.memory_space<vmem>>, vector<1x2x8xf32>
    %188 = vector.shape_cast %187 : vector<1x2x8xf32> to vector<2x8xf32>
    %189 = vector.shape_cast %142 : vector<2x8xf32> to vector<1x2x8xf32>
    tpu.vector_store %arg19[%c0_83, %c0_84, %c0_85], %189 {strides = array<i32>} : memref<4x2x8xf32, #tpu.memory_space<vmem>>, vector<1x2x8xf32>,
    %c1_86 = arith.constant 1 : index
    %c0_87 = arith.constant 0 : index
    %c0_88 = arith.constant 0 : index
    %190 = vector.load %arg1[%c1_86, %c0_87, %c0_88] : memref<4x2x8xf32, #tpu.memory_space<vmem>>, vector<1x2x8xf32>
    %191 = vector.shape_cast %190 : vector<1x2x8xf32> to vector<2x8xf32>
    %c0_89 = arith.constant 0 : index
    %c0_90 = arith.constant 0 : index
    %192 = vector.load %arg7[%c0_89, %c0_90] : memref<8x32xf32, #tpu.memory_space<vmem>>, vector<8x32xf32>
    %cst_91 = arith.constant dense<0.000000e+00> : vector<2x32xf32>
    %193 = tpu.matmul %191, %192, %cst_91 {dimension_numbers = #tpu.dot_dimension_numbers<[1], [0], [0], [1], [0, 0, 1, 1], [], []>} : vector<2x8xf32>, vector<8x32xf32>, vector<2x32xf32> -> vector<2x32xf32>
    %cst_92 = arith.constant 0.000000e+00 : f32
    %194 = vector.broadcast %cst_92 : f32 to vector<2x32xf32>
    %195 = arith.maximumf %193, %194 : vector<2x32xf32>
    %c1_93 = arith.constant 1 : index
    %c0_94 = arith.constant 0 : index
    %c0_95 = arith.constant 0 : index
    %196 = vector.load %arg2[%c1_93, %c0_94, %c0_95] : memref<4x2x32xf32, #tpu.memory_space<vmem>>, vector<1x2x32xf32>
    %197 = vector.shape_cast %196 : vector<1x2x32xf32> to vector<2x32xf32>
    %198 = arith.mulf %195, %197 : vector<2x32xf32>
    %c0_96 = arith.constant 0 : index
    %c0_97 = arith.constant 0 : index
    %199 = vector.load %arg8[%c0_96, %c0_97] : memref<32x32xf32, #tpu.memory_space<vmem>>, vector<32x32xf32>
    %cst_98 = arith.constant dense<0.000000e+00> : vector<2x32xf32>
    %200 = tpu.matmul %198, %199, %cst_98 {dimension_numbers = #tpu.dot_dimension_numbers<[1], [0], [0], [1], [0, 0, 1, 1], [], []>} : vector<2x32xf32>, vector<32x32xf32>, vector<2x32xf32> -> vector<2x32xf32>
    %cst_99 = arith.constant 0.000000e+00 : f32
    %201 = vector.broadcast %cst_99 : f32 to vector<2x32xf32>
    %202 = arith.maximumf %200, %201 : vector<2x32xf32>
    %c1_100 = arith.constant 1 : index
    %c0_101 = arith.constant 0 : index
    %c0_102 = arith.constant 0 : index
    %203 = vector.load %arg3[%c1_100, %c0_101, %c0_102] : memref<4x2x32xf32, #tpu.memory_space<vmem>>, vector<1x2x32xf32>
    %204 = vector.shape_cast %203 : vector<1x2x32xf32> to vector<2x32xf32>
    %205 = arith.mulf %202, %204 : vector<2x32xf32>
    %206 = tpu.concatenate %205, %145, %61 in 1 : vector<2x32xf32>, vector<2x32xf32>, vector<2x32xf32> -> vector<2x96xf32>
    %c0_103 = arith.constant 0 : index
    %c0_104 = arith.constant 0 : index
    %207 = vector.load %arg9[%c0_103, %c0_104] : memref<96x128xf32, #tpu.memory_space<vmem>>, vector<96x128xf32>
    %cst_105 = arith.constant dense<0.000000e+00> : vector<2x128xf32>
    %208 = tpu.matmul %206, %207, %cst_105 {dimension_numbers = #tpu.dot_dimension_numbers<[1], [0], [0], [1], [0, 0, 1, 1], [], []>} : vector<2x96xf32>, vector<96x128xf32>, vector<2x128xf32> -> vector<2x128xf32>
    %c0_106 = arith.constant 0 : index
    %c0_107 = arith.constant 0 : index
    %209 = vector.load %arg10[%c0_106, %c0_107] : memref<1x128xf32, #tpu.memory_space<vmem>>, vector<1x128xf32>
    %210 = vector.broadcast %209 : vector<1x128xf32> to vector<2x128xf32>
    %211 = arith.addf %208, %210 : vector<2x128xf32>
    %212 = vector.extract_strided_slice %211 {offsets = [0, 0], sizes = [2, 32], strides = [1, 1]} : vector<2x128xf32> to vector<2x32xf32>
    %213 = arith.negf %212 : vector<2x32xf32>
    %214 = math.exp %213 : vector<2x32xf32>
    %cst_108 = arith.constant 1.000000e+00 : f32
    %215 = vector.broadcast %cst_108 : f32 to vector<2x32xf32>
    %216 = arith.addf %215, %214 : vector<2x32xf32>
    %217 = arith.divf %215, %216 : vector<2x32xf32>
    %218 = vector.extract_strided_slice %211 {offsets = [0, 32], sizes = [2, 32], strides = [1, 1]} : vector<2x128xf32> to vector<2x32xf32>
    %219 = arith.negf %218 : vector<2x32xf32>
    %220 = math.exp %219 : vector<2x32xf32>
    %cst_109 = arith.constant 1.000000e+00 : f32
    %221 = vector.broadcast %cst_109 : f32 to vector<2x32xf32>
    %222 = arith.addf %221, %220 : vector<2x32xf32>
    %223 = arith.divf %221, %222 : vector<2x32xf32>
    %224 = vector.extract_strided_slice %211 {offsets = [0, 64], sizes = [2, 32], strides = [1, 1]} : vector<2x128xf32> to vector<2x32xf32>
    %225 = math.tanh %224 : vector<2x32xf32>
    %226 = vector.extract_strided_slice %211 {offsets = [0, 96], sizes = [2, 32], strides = [1, 1]} : vector<2x128xf32> to vector<2x32xf32>
    %227 = arith.negf %226 : vector<2x32xf32>
    %228 = math.exp %227 : vector<2x32xf32>
    %cst_110 = arith.constant 1.000000e+00 : f32
    %229 = vector.broadcast %cst_110 : f32 to vector<2x32xf32>
    %230 = arith.addf %229, %228 : vector<2x32xf32>
    %231 = arith.divf %229, %230 : vector<2x32xf32>
    %232 = arith.mulf %223, %59 : vector<2x32xf32>
    %233 = arith.mulf %217, %225 : vector<2x32xf32>
    %234 = arith.addf %232, %233 : vector<2x32xf32>
    %235 = math.tanh %234 : vector<2x32xf32>
    %236 = arith.mulf %231, %235 : vector<2x32xf32>
    %c0_111 = arith.constant 0 : index
    %c0_112 = arith.constant 0 : index
    %237 = vector.load %arg11[%c0_111, %c0_112] : memref<32x16xf32, #tpu.memory_space<vmem>>, vector<32x16xf32>
    %cst_113 = arith.constant dense<0.000000e+00> : vector<2x16xf32>
    %238 = tpu.matmul %236, %237, %cst_113 {dimension_numbers = #tpu.dot_dimension_numbers<[1], [0], [0], [1], [0, 0, 1, 1], [], []>} : vector<2x32xf32>, vector<32x16xf32>, vector<2x16xf32> -> vector<2x16xf32>
    %cst_114 = arith.constant 0.000000e+00 : f32
    %239 = vector.broadcast %cst_114 : f32 to vector<2x8x16xf32>
    %cst_115 = arith.constant 0.000000e+00 : f32
    %240 = vector.broadcast %cst_115 : f32 to vector<2x1xf32>
    %241 = vector.extract_strided_slice %142 {offsets = [0, 0], sizes = [2, 7], strides = [1, 1]} : vector<2x8xf32> to vector<2x7xf32>
    %242 = tpu.concatenate %240, %241 in 1 : vector<2x1xf32>, vector<2x7xf32> -> vector<2x8xf32>
    %cst_116 = arith.constant 0.000000e+00 : f32
    %243 = vector.broadcast %cst_116 : f32 to vector<2x1xf32>
    %244 = vector.extract_strided_slice %146 {offsets = [0, 0], sizes = [2, 7], strides = [1, 1]} : vector<2x8xf32> to vector<2x7xf32>
    %245 = tpu.concatenate %243, %244 in 1 : vector<2x1xf32>, vector<2x7xf32> -> vector<2x8xf32>
    %c0_117 = arith.constant 0 : index
    %c0_118 = arith.constant 0 : index
    %c0_119 = arith.constant 0 : index
    %246 = vector.load %arg13[%c0_117, %c0_118, %c0_119] : memref<3x2x16xf32, #tpu.memory_space<vmem>>, vector<1x2x16xf32>
    %247 = vector.shape_cast %246 : vector<1x2x16xf32> to vector<2x16xf32>
    %248 = vector.shape_cast %242 : vector<2x8xf32> to vector<2x8x1xf32>
    %249 = vector.extract_strided_slice %247 {offsets = [0, 0], sizes = [1, 16], strides = [1, 1]} : vector<2x16xf32> to vector<1x16xf32>
    %250 = vector.shape_cast %249 : vector<1x16xf32> to vector<1x1x16xf32>
    %251 = vector.broadcast %248 : vector<2x8x1xf32> to vector<2x8x16xf32>
    %252 = vector.broadcast %250 : vector<1x1x16xf32> to vector<2x8x16xf32>
    %253 = arith.mulf %251, %252 : vector<2x8x16xf32>
    %254 = arith.addf %239, %253 : vector<2x8x16xf32>
    %255 = vector.shape_cast %245 : vector<2x8xf32> to vector<2x8x1xf32>
    %256 = vector.extract_strided_slice %247 {offsets = [1, 0], sizes = [1, 16], strides = [1, 1]} : vector<2x16xf32> to vector<1x16xf32>
    %257 = vector.shape_cast %256 : vector<1x16xf32> to vector<1x1x16xf32>
    %258 = vector.broadcast %255 : vector<2x8x1xf32> to vector<2x8x16xf32>
    %259 = vector.broadcast %257 : vector<1x1x16xf32> to vector<2x8x16xf32>
    %260 = arith.mulf %258, %259 : vector<2x8x16xf32>
    %261 = arith.addf %254, %260 : vector<2x8x16xf32>
    %c1_120 = arith.constant 1 : index
    %c0_121 = arith.constant 0 : index
    %c0_122 = arith.constant 0 : index
    %262 = vector.load %arg13[%c1_120, %c0_121, %c0_122] : memref<3x2x16xf32, #tpu.memory_space<vmem>>, vector<1x2x16xf32>
    %263 = vector.shape_cast %262 : vector<1x2x16xf32> to vector<2x16xf32>
    %264 = vector.shape_cast %142 : vector<2x8xf32> to vector<2x8x1xf32>
    %265 = vector.extract_strided_slice %263 {offsets = [0, 0], sizes = [1, 16], strides = [1, 1]} : vector<2x16xf32> to vector<1x16xf32>
    %266 = vector.shape_cast %265 : vector<1x16xf32> to vector<1x1x16xf32>
    %267 = vector.broadcast %264 : vector<2x8x1xf32> to vector<2x8x16xf32>
    %268 = vector.broadcast %266 : vector<1x1x16xf32> to vector<2x8x16xf32>
    %269 = arith.mulf %267, %268 : vector<2x8x16xf32>
    %270 = arith.addf %261, %269 : vector<2x8x16xf32>
    %271 = vector.shape_cast %146 : vector<2x8xf32> to vector<2x8x1xf32>
    %272 = vector.extract_strided_slice %263 {offsets = [1, 0], sizes = [1, 16], strides = [1, 1]} : vector<2x16xf32> to vector<1x16xf32>
    %273 = vector.shape_cast %272 : vector<1x16xf32> to vector<1x1x16xf32>
    %274 = vector.broadcast %271 : vector<2x8x1xf32> to vector<2x8x16xf32>
    %275 = vector.broadcast %273 : vector<1x1x16xf32> to vector<2x8x16xf32>
    %276 = arith.mulf %274, %275 : vector<2x8x16xf32>
    %277 = arith.addf %270, %276 : vector<2x8x16xf32>
    %cst_123 = arith.constant 0.000000e+00 : f32
    %278 = vector.broadcast %cst_123 : f32 to vector<2x1xf32>
    %279 = vector.extract_strided_slice %142 {offsets = [0, 1], sizes = [2, 7], strides = [1, 1]} : vector<2x8xf32> to vector<2x7xf32>
    %280 = tpu.concatenate %279, %278 in 1 : vector<2x7xf32>, vector<2x1xf32> -> vector<2x8xf32>
    %cst_124 = arith.constant 0.000000e+00 : f32
    %281 = vector.broadcast %cst_124 : f32 to vector<2x1xf32>
    %282 = vector.extract_strided_slice %146 {offsets = [0, 1], sizes = [2, 7], strides = [1, 1]} : vector<2x8xf32> to vector<2x7xf32>
    %283 = tpu.concatenate %282, %281 in 1 : vector<2x7xf32>, vector<2x1xf32> -> vector<2x8xf32>
    %c2_125 = arith.constant 2 : index
    %c0_126 = arith.constant 0 : index
    %c0_127 = arith.constant 0 : index
    %284 = vector.load %arg13[%c2_125, %c0_126, %c0_127] : memref<3x2x16xf32, #tpu.memory_space<vmem>>, vector<1x2x16xf32>
    %285 = vector.shape_cast %284 : vector<1x2x16xf32> to vector<2x16xf32>
    %286 = vector.shape_cast %280 : vector<2x8xf32> to vector<2x8x1xf32>
    %287 = vector.extract_strided_slice %285 {offsets = [0, 0], sizes = [1, 16], strides = [1, 1]} : vector<2x16xf32> to vector<1x16xf32>
    %288 = vector.shape_cast %287 : vector<1x16xf32> to vector<1x1x16xf32>
    %289 = vector.broadcast %286 : vector<2x8x1xf32> to vector<2x8x16xf32>
    %290 = vector.broadcast %288 : vector<1x1x16xf32> to vector<2x8x16xf32>
    %291 = arith.mulf %289, %290 : vector<2x8x16xf32>
    %292 = arith.addf %277, %291 : vector<2x8x16xf32>
    %293 = vector.shape_cast %283 : vector<2x8xf32> to vector<2x8x1xf32>
    %294 = vector.extract_strided_slice %285 {offsets = [1, 0], sizes = [1, 16], strides = [1, 1]} : vector<2x16xf32> to vector<1x16xf32>
    %295 = vector.shape_cast %294 : vector<1x16xf32> to vector<1x1x16xf32>
    %296 = vector.broadcast %293 : vector<2x8x1xf32> to vector<2x8x16xf32>
    %297 = vector.broadcast %295 : vector<1x1x16xf32> to vector<2x8x16xf32>
    %298 = arith.mulf %296, %297 : vector<2x8x16xf32>
    %299 = arith.addf %292, %298 : vector<2x8x16xf32>
    %300 = vector.shape_cast %238 : vector<2x16xf32> to vector<2x1x16xf32>
    %301 = vector.broadcast %300 : vector<2x1x16xf32> to vector<2x8x16xf32>
    %302 = arith.addf %301, %299 : vector<2x8x16xf32>
    %303 = arith.addf %302, %4 : vector<2x8x16xf32>
    %304 = math.tanh %303 : vector<2x8x16xf32>
    %305 = vector.broadcast %7 : vector<1x1x16xf32> to vector<2x8x16xf32>
    %306 = arith.mulf %304, %305 : vector<2x8x16xf32>
    %cst_128 = arith.constant dense<0.000000e+00> : vector<2x8xf32>
    %307 = vector.multi_reduction <add>, %306, %cst_128 [2] : vector<2x8x16xf32> to vector<2x8xf32>
    %308 = arith.addf %307, %5 : vector<2x8xf32>
    %cst_129 = arith.constant dense<0xFF800000> : vector<2xf32>
    %309 = vector.multi_reduction <maximumf>, %308, %cst_129 [1] : vector<2x8xf32> to vector<2xf32>
    %310 = vector.shape_cast %309 : vector<2xf32> to vector<2x1xf32>
    %311 = vector.broadcast %310 : vector<2x1xf32> to vector<2x8xf32>
    %312 = arith.subf %308, %311 : vector<2x8xf32>
    %313 = math.exp %312 : vector<2x8xf32>
    %cst_130 = arith.constant dense<0.000000e+00> : vector<2xf32>
    %314 = vector.multi_reduction <add>, %313, %cst_130 [1] : vector<2x8xf32> to vector<2xf32>
    %315 = vector.shape_cast %314 : vector<2xf32> to vector<2x1xf32>
    %316 = vector.broadcast %315 : vector<2x1xf32> to vector<2x8xf32>
    %317 = arith.divf %313, %316 : vector<2x8xf32>
    %318 = vector.shape_cast %317 : vector<2x8xf32> to vector<2x1x8xf32>
    "tpu.trace_start"() <{level = 10 : i32, message = "bqt,btd->bqd"}> : () -> ()
    %cst_131 = arith.constant dense<0.000000e+00> : vector<2x1x32xf32>
    %319 = tpu.matmul %318, %3, %cst_131 {dimension_numbers = #tpu.dot_dimension_numbers<[2], [1], [1], [2], [0, 0, 0, 1, 1, 2], [0], [0]>} : vector<2x1x8xf32>, vector<2x8x32xf32>, vector<2x1x32xf32> -> vector<2x1x32xf32>
    "tpu.trace_stop"() : () -> ()
    %320 = vector.shape_cast %319 : vector<2x1x32xf32> to vector<2x32xf32>
    %321 = arith.addf %146, %317 : vector<2x8xf32>
    %322 = tpu.concatenate %236, %320, %177 in 1 : vector<2x32xf32>, vector<2x32xf32>, vector<2x32xf32> -> vector<2x96xf32>
    %c0_132 = arith.constant 0 : index
    %c0_133 = arith.constant 0 : index
    %323 = vector.load %arg14[%c0_132, %c0_133] : memref<96x128xf32, #tpu.memory_space<vmem>>, vector<96x128xf32>
    %cst_134 = arith.constant dense<0.000000e+00> : vector<2x128xf32>
    %324 = tpu.matmul %322, %323, %cst_134 {dimension_numbers = #tpu.dot_dimension_numbers<[1], [0], [0], [1], [0, 0, 1, 1], [], []>} : vector<2x96xf32>, vector<96x128xf32>, vector<2x128xf32> -> vector<2x128xf32>
    %c0_135 = arith.constant 0 : index
    %c0_136 = arith.constant 0 : index
    %325 = vector.load %arg15[%c0_135, %c0_136] : memref<1x128xf32, #tpu.memory_space<vmem>>, vector<1x128xf32>
    %326 = vector.broadcast %325 : vector<1x128xf32> to vector<2x128xf32>
    %327 = arith.addf %324, %326 : vector<2x128xf32>
    %328 = vector.extract_strided_slice %327 {offsets = [0, 0], sizes = [2, 32], strides = [1, 1]} : vector<2x128xf32> to vector<2x32xf32>
    %329 = arith.negf %328 : vector<2x32xf32>
    %330 = math.exp %329 : vector<2x32xf32>
    %cst_137 = arith.constant 1.000000e+00 : f32
    %331 = vector.broadcast %cst_137 : f32 to vector<2x32xf32>
    %332 = arith.addf %331, %330 : vector<2x32xf32>
    %333 = arith.divf %331, %332 : vector<2x32xf32>
    %334 = vector.extract_strided_slice %327 {offsets = [0, 32], sizes = [2, 32], strides = [1, 1]} : vector<2x128xf32> to vector<2x32xf32>
    %335 = arith.negf %334 : vector<2x32xf32>
    %336 = math.exp %335 : vector<2x32xf32>
    %cst_138 = arith.constant 1.000000e+00 : f32
    %337 = vector.broadcast %cst_138 : f32 to vector<2x32xf32>
    %338 = arith.addf %337, %336 : vector<2x32xf32>
    %339 = arith.divf %337, %338 : vector<2x32xf32>
    %340 = vector.extract_strided_slice %327 {offsets = [0, 64], sizes = [2, 32], strides = [1, 1]} : vector<2x128xf32> to vector<2x32xf32>
    %341 = math.tanh %340 : vector<2x32xf32>
    %342 = vector.extract_strided_slice %327 {offsets = [0, 96], sizes = [2, 32], strides = [1, 1]} : vector<2x128xf32> to vector<2x32xf32>
    %343 = arith.negf %342 : vector<2x32xf32>
    %344 = math.exp %343 : vector<2x32xf32>
    %cst_139 = arith.constant 1.000000e+00 : f32
    %345 = vector.broadcast %cst_139 : f32 to vector<2x32xf32>
    %346 = arith.addf %345, %344 : vector<2x32xf32>
    %347 = arith.divf %345, %346 : vector<2x32xf32>
    %348 = arith.mulf %339, %175 : vector<2x32xf32>
    %349 = arith.mulf %333, %341 : vector<2x32xf32>
    %350 = arith.addf %348, %349 : vector<2x32xf32>
    %351 = math.tanh %350 : vector<2x32xf32>
    %352 = arith.mulf %347, %351 : vector<2x32xf32>
    %353 = tpu.concatenate %352, %320 in 1 : vector<2x32xf32>, vector<2x32xf32> -> vector<2x64xf32>
    %c0_140 = arith.constant 0 : index
    %c0_141 = arith.constant 0 : index
    %354 = vector.load %arg16[%c0_140, %c0_141] : memref<64x9xf32, #tpu.memory_space<vmem>>, vector<64x9xf32>
    %cst_142 = arith.constant dense<0.000000e+00> : vector<2x9xf32>
    %355 = tpu.matmul %353, %354, %cst_142 {dimension_numbers = #tpu.dot_dimension_numbers<[1], [0], [0], [1], [0, 0, 1, 1], [], []>} : vector<2x64xf32>, vector<64x9xf32>, vector<2x9xf32> -> vector<2x9xf32>
    %c0_143 = arith.constant 0 : index
    %c0_144 = arith.constant 0 : index
    %356 = vector.load %arg17[%c0_143, %c0_144] : memref<1x9xf32, #tpu.memory_space<vmem>>, vector<1x9xf32>
    %357 = vector.broadcast %356 : vector<1x9xf32> to vector<2x9xf32>
    %358 = arith.addf %355, %357 : vector<2x9xf32>
    %c1_145 = arith.constant 1 : index
    %c0_146 = arith.constant 0 : index
    %c0_147 = arith.constant 0 : index
    %359 = vector.load %arg18[%c1_145, %c0_146, %c0_147] : memref<4x2x9xf32, #tpu.memory_space<vmem>>, vector<1x2x9xf32>
    %360 = vector.shape_cast %359 : vector<1x2x9xf32> to vector<2x9xf32>
    %361 = vector.shape_cast %358 : vector<2x9xf32> to vector<1x2x9xf32>
    tpu.vector_store %arg18[%c1_145, %c0_146, %c0_147], %361 {strides = array<i32>} : memref<4x2x9xf32, #tpu.memory_space<vmem>>, vector<1x2x9xf32>,
    %c1_148 = arith.constant 1 : index
    %c0_149 = arith.constant 0 : index
    %c0_150 = arith.constant 0 : index
    %362 = vector.load %arg19[%c1_148, %c0_149, %c0_150] : memref<4x2x8xf32, #tpu.memory_space<vmem>>, vector<1x2x8xf32>
    %363 = vector.shape_cast %362 : vector<1x2x8xf32> to vector<2x8xf32>
    %364 = vector.shape_cast %317 : vector<2x8xf32> to vector<1x2x8xf32>
    tpu.vector_store %arg19[%c1_148, %c0_149, %c0_150], %364 {strides = array<i32>} : memref<4x2x8xf32, #tpu.memory_space<vmem>>, vector<1x2x8xf32>,
    %c2_151 = arith.constant 2 : index
    %c0_152 = arith.constant 0 : index
    %c0_153 = arith.constant 0 : index
    %365 = vector.load %arg1[%c2_151, %c0_152, %c0_153] : memref<4x2x8xf32, #tpu.memory_space<vmem>>, vector<1x2x8xf32>
    %366 = vector.shape_cast %365 : vector<1x2x8xf32> to vector<2x8xf32>
    %c0_154 = arith.constant 0 : index
    %c0_155 = arith.constant 0 : index
    %367 = vector.load %arg7[%c0_154, %c0_155] : memref<8x32xf32, #tpu.memory_space<vmem>>, vector<8x32xf32>
    %cst_156 = arith.constant dense<0.000000e+00> : vector<2x32xf32>
    %368 = tpu.matmul %366, %367, %cst_156 {dimension_numbers = #tpu.dot_dimension_numbers<[1], [0], [0], [1], [0, 0, 1, 1], [], []>} : vector<2x8xf32>, vector<8x32xf32>, vector<2x32xf32> -> vector<2x32xf32>
    %cst_157 = arith.constant 0.000000e+00 : f32
    %369 = vector.broadcast %cst_157 : f32 to vector<2x32xf32>
    %370 = arith.maximumf %368, %369 : vector<2x32xf32>
    %c2_158 = arith.constant 2 : index
    %c0_159 = arith.constant 0 : index
    %c0_160 = arith.constant 0 : index
    %371 = vector.load %arg2[%c2_158, %c0_159, %c0_160] : memref<4x2x32xf32, #tpu.memory_space<vmem>>, vector<1x2x32xf32>
    %372 = vector.shape_cast %371 : vector<1x2x32xf32> to vector<2x32xf32>
    %373 = arith.mulf %370, %372 : vector<2x32xf32>
    %c0_161 = arith.constant 0 : index
    %c0_162 = arith.constant 0 : index
    %374 = vector.load %arg8[%c0_161, %c0_162] : memref<32x32xf32, #tpu.memory_space<vmem>>, vector<32x32xf32>
    %cst_163 = arith.constant dense<0.000000e+00> : vector<2x32xf32>
    %375 = tpu.matmul %373, %374, %cst_163 {dimension_numbers = #tpu.dot_dimension_numbers<[1], [0], [0], [1], [0, 0, 1, 1], [], []>} : vector<2x32xf32>, vector<32x32xf32>, vector<2x32xf32> -> vector<2x32xf32>
    %cst_164 = arith.constant 0.000000e+00 : f32
    %376 = vector.broadcast %cst_164 : f32 to vector<2x32xf32>
    %377 = arith.maximumf %375, %376 : vector<2x32xf32>
    %c2_165 = arith.constant 2 : index
    %c0_166 = arith.constant 0 : index
    %c0_167 = arith.constant 0 : index
    %378 = vector.load %arg3[%c2_165, %c0_166, %c0_167] : memref<4x2x32xf32, #tpu.memory_space<vmem>>, vector<1x2x32xf32>
    %379 = vector.shape_cast %378 : vector<1x2x32xf32> to vector<2x32xf32>
    %380 = arith.mulf %377, %379 : vector<2x32xf32>
    %381 = tpu.concatenate %380, %320, %236 in 1 : vector<2x32xf32>, vector<2x32xf32>, vector<2x32xf32> -> vector<2x96xf32>
    %c0_168 = arith.constant 0 : index
    %c0_169 = arith.constant 0 : index
    %382 = vector.load %arg9[%c0_168, %c0_169] : memref<96x128xf32, #tpu.memory_space<vmem>>, vector<96x128xf32>
    %cst_170 = arith.constant dense<0.000000e+00> : vector<2x128xf32>
    %383 = tpu.matmul %381, %382, %cst_170 {dimension_numbers = #tpu.dot_dimension_numbers<[1], [0], [0], [1], [0, 0, 1, 1], [], []>} : vector<2x96xf32>, vector<96x128xf32>, vector<2x128xf32> -> vector<2x128xf32>
    %c0_171 = arith.constant 0 : index
    %c0_172 = arith.constant 0 : index
    %384 = vector.load %arg10[%c0_171, %c0_172] : memref<1x128xf32, #tpu.memory_space<vmem>>, vector<1x128xf32>
    %385 = vector.broadcast %384 : vector<1x128xf32> to vector<2x128xf32>
    %386 = arith.addf %383, %385 : vector<2x128xf32>
    %387 = vector.extract_strided_slice %386 {offsets = [0, 0], sizes = [2, 32], strides = [1, 1]} : vector<2x128xf32> to vector<2x32xf32>
    %388 = arith.negf %387 : vector<2x32xf32>
    %389 = math.exp %388 : vector<2x32xf32>
    %cst_173 = arith.constant 1.000000e+00 : f32
    %390 = vector.broadcast %cst_173 : f32 to vector<2x32xf32>
    %391 = arith.addf %390, %389 : vector<2x32xf32>
    %392 = arith.divf %390, %391 : vector<2x32xf32>
    %393 = vector.extract_strided_slice %386 {offsets = [0, 32], sizes = [2, 32], strides = [1, 1]} : vector<2x128xf32> to vector<2x32xf32>
    %394 = arith.negf %393 : vector<2x32xf32>
    %395 = math.exp %394 : vector<2x32xf32>
    %cst_174 = arith.constant 1.000000e+00 : f32
    %396 = vector.broadcast %cst_174 : f32 to vector<2x32xf32>
    %397 = arith.addf %396, %395 : vector<2x32xf32>
    %398 = arith.divf %396, %397 : vector<2x32xf32>
    %399 = vector.extract_strided_slice %386 {offsets = [0, 64], sizes = [2, 32], strides = [1, 1]} : vector<2x128xf32> to vector<2x32xf32>
    %400 = math.tanh %399 : vector<2x32xf32>
    %401 = vector.extract_strided_slice %386 {offsets = [0, 96], sizes = [2, 32], strides = [1, 1]} : vector<2x128xf32> to vector<2x32xf32>
    %402 = arith.negf %401 : vector<2x32xf32>
    %403 = math.exp %402 : vector<2x32xf32>
    %cst_175 = arith.constant 1.000000e+00 : f32
    %404 = vector.broadcast %cst_175 : f32 to vector<2x32xf32>
    %405 = arith.addf %404, %403 : vector<2x32xf32>
    %406 = arith.divf %404, %405 : vector<2x32xf32>
    %407 = arith.mulf %398, %234 : vector<2x32xf32>
    %408 = arith.mulf %392, %400 : vector<2x32xf32>
    %409 = arith.addf %407, %408 : vector<2x32xf32>
    %410 = math.tanh %409 : vector<2x32xf32>
    %411 = arith.mulf %406, %410 : vector<2x32xf32>
    %c0_176 = arith.constant 0 : index
    %c0_177 = arith.constant 0 : index
    %412 = vector.load %arg11[%c0_176, %c0_177] : memref<32x16xf32, #tpu.memory_space<vmem>>, vector<32x16xf32>
    %cst_178 = arith.constant dense<0.000000e+00> : vector<2x16xf32>
    %413 = tpu.matmul %411, %412, %cst_178 {dimension_numbers = #tpu.dot_dimension_numbers<[1], [0], [0], [1], [0, 0, 1, 1], [], []>} : vector<2x32xf32>, vector<32x16xf32>, vector<2x16xf32> -> vector<2x16xf32>
    %cst_179 = arith.constant 0.000000e+00 : f32
    %414 = vector.broadcast %cst_179 : f32 to vector<2x8x16xf32>
    %cst_180 = arith.constant 0.000000e+00 : f32
    %415 = vector.broadcast %cst_180 : f32 to vector<2x1xf32>
    %416 = vector.extract_strided_slice %317 {offsets = [0, 0], sizes = [2, 7], strides = [1, 1]} : vector<2x8xf32> to vector<2x7xf32>
    %417 = tpu.concatenate %415, %416 in 1 : vector<2x1xf32>, vector<2x7xf32> -> vector<2x8xf32>
    %cst_181 = arith.constant 0.000000e+00 : f32
    %418 = vector.broadcast %cst_181 : f32 to vector<2x1xf32>
    %419 = vector.extract_strided_slice %321 {offsets = [0, 0], sizes = [2, 7], strides = [1, 1]} : vector<2x8xf32> to vector<2x7xf32>
    %420 = tpu.concatenate %418, %419 in 1 : vector<2x1xf32>, vector<2x7xf32> -> vector<2x8xf32>
    %c0_182 = arith.constant 0 : index
    %c0_183 = arith.constant 0 : index
    %c0_184 = arith.constant 0 : index
    %421 = vector.load %arg13[%c0_182, %c0_183, %c0_184] : memref<3x2x16xf32, #tpu.memory_space<vmem>>, vector<1x2x16xf32>
    %422 = vector.shape_cast %421 : vector<1x2x16xf32> to vector<2x16xf32>
    %423 = vector.shape_cast %417 : vector<2x8xf32> to vector<2x8x1xf32>
    %424 = vector.extract_strided_slice %422 {offsets = [0, 0], sizes = [1, 16], strides = [1, 1]} : vector<2x16xf32> to vector<1x16xf32>
    %425 = vector.shape_cast %424 : vector<1x16xf32> to vector<1x1x16xf32>
    %426 = vector.broadcast %423 : vector<2x8x1xf32> to vector<2x8x16xf32>
    %427 = vector.broadcast %425 : vector<1x1x16xf32> to vector<2x8x16xf32>
    %428 = arith.mulf %426, %427 : vector<2x8x16xf32>
    %429 = arith.addf %414, %428 : vector<2x8x16xf32>
    %430 = vector.shape_cast %420 : vector<2x8xf32> to vector<2x8x1xf32>
    %431 = vector.extract_strided_slice %422 {offsets = [1, 0], sizes = [1, 16], strides = [1, 1]} : vector<2x16xf32> to vector<1x16xf32>
    %432 = vector.shape_cast %431 : vector<1x16xf32> to vector<1x1x16xf32>
    %433 = vector.broadcast %430 : vector<2x8x1xf32> to vector<2x8x16xf32>
    %434 = vector.broadcast %432 : vector<1x1x16xf32> to vector<2x8x16xf32>
    %435 = arith.mulf %433, %434 : vector<2x8x16xf32>
    %436 = arith.addf %429, %435 : vector<2x8x16xf32>
    %c1_185 = arith.constant 1 : index
    %c0_186 = arith.constant 0 : index
    %c0_187 = arith.constant 0 : index
    %437 = vector.load %arg13[%c1_185, %c0_186, %c0_187] : memref<3x2x16xf32, #tpu.memory_space<vmem>>, vector<1x2x16xf32>
    %438 = vector.shape_cast %437 : vector<1x2x16xf32> to vector<2x16xf32>
    %439 = vector.shape_cast %317 : vector<2x8xf32> to vector<2x8x1xf32>
    %440 = vector.extract_strided_slice %438 {offsets = [0, 0], sizes = [1, 16], strides = [1, 1]} : vector<2x16xf32> to vector<1x16xf32>
    %441 = vector.shape_cast %440 : vector<1x16xf32> to vector<1x1x16xf32>
    %442 = vector.broadcast %439 : vector<2x8x1xf32> to vector<2x8x16xf32>
    %443 = vector.broadcast %441 : vector<1x1x16xf32> to vector<2x8x16xf32>
    %444 = arith.mulf %442, %443 : vector<2x8x16xf32>
    %445 = arith.addf %436, %444 : vector<2x8x16xf32>
    %446 = vector.shape_cast %321 : vector<2x8xf32> to vector<2x8x1xf32>
    %447 = vector.extract_strided_slice %438 {offsets = [1, 0], sizes = [1, 16], strides = [1, 1]} : vector<2x16xf32> to vector<1x16xf32>
    %448 = vector.shape_cast %447 : vector<1x16xf32> to vector<1x1x16xf32>
    %449 = vector.broadcast %446 : vector<2x8x1xf32> to vector<2x8x16xf32>
    %450 = vector.broadcast %448 : vector<1x1x16xf32> to vector<2x8x16xf32>
    %451 = arith.mulf %449, %450 : vector<2x8x16xf32>
    %452 = arith.addf %445, %451 : vector<2x8x16xf32>
    %cst_188 = arith.constant 0.000000e+00 : f32
    %453 = vector.broadcast %cst_188 : f32 to vector<2x1xf32>
    %454 = vector.extract_strided_slice %317 {offsets = [0, 1], sizes = [2, 7], strides = [1, 1]} : vector<2x8xf32> to vector<2x7xf32>
    %455 = tpu.concatenate %454, %453 in 1 : vector<2x7xf32>, vector<2x1xf32> -> vector<2x8xf32>
    %cst_189 = arith.constant 0.000000e+00 : f32
    %456 = vector.broadcast %cst_189 : f32 to vector<2x1xf32>
    %457 = vector.extract_strided_slice %321 {offsets = [0, 1], sizes = [2, 7], strides = [1, 1]} : vector<2x8xf32> to vector<2x7xf32>
    %458 = tpu.concatenate %457, %456 in 1 : vector<2x7xf32>, vector<2x1xf32> -> vector<2x8xf32>
    %c2_190 = arith.constant 2 : index
    %c0_191 = arith.constant 0 : index
    %c0_192 = arith.constant 0 : index
    %459 = vector.load %arg13[%c2_190, %c0_191, %c0_192] : memref<3x2x16xf32, #tpu.memory_space<vmem>>, vector<1x2x16xf32>
    %460 = vector.shape_cast %459 : vector<1x2x16xf32> to vector<2x16xf32>
    %461 = vector.shape_cast %455 : vector<2x8xf32> to vector<2x8x1xf32>
    %462 = vector.extract_strided_slice %460 {offsets = [0, 0], sizes = [1, 16], strides = [1, 1]} : vector<2x16xf32> to vector<1x16xf32>
    %463 = vector.shape_cast %462 : vector<1x16xf32> to vector<1x1x16xf32>
    %464 = vector.broadcast %461 : vector<2x8x1xf32> to vector<2x8x16xf32>
    %465 = vector.broadcast %463 : vector<1x1x16xf32> to vector<2x8x16xf32>
    %466 = arith.mulf %464, %465 : vector<2x8x16xf32>
    %467 = arith.addf %452, %466 : vector<2x8x16xf32>
    %468 = vector.shape_cast %458 : vector<2x8xf32> to vector<2x8x1xf32>
    %469 = vector.extract_strided_slice %460 {offsets = [1, 0], sizes = [1, 16], strides = [1, 1]} : vector<2x16xf32> to vector<1x16xf32>
    %470 = vector.shape_cast %469 : vector<1x16xf32> to vector<1x1x16xf32>
    %471 = vector.broadcast %468 : vector<2x8x1xf32> to vector<2x8x16xf32>
    %472 = vector.broadcast %470 : vector<1x1x16xf32> to vector<2x8x16xf32>
    %473 = arith.mulf %471, %472 : vector<2x8x16xf32>
    %474 = arith.addf %467, %473 : vector<2x8x16xf32>
    %475 = vector.shape_cast %413 : vector<2x16xf32> to vector<2x1x16xf32>
    %476 = vector.broadcast %475 : vector<2x1x16xf32> to vector<2x8x16xf32>
    %477 = arith.addf %476, %474 : vector<2x8x16xf32>
    %478 = arith.addf %477, %4 : vector<2x8x16xf32>
    %479 = math.tanh %478 : vector<2x8x16xf32>
    %480 = vector.broadcast %7 : vector<1x1x16xf32> to vector<2x8x16xf32>
    %481 = arith.mulf %479, %480 : vector<2x8x16xf32>
    %cst_193 = arith.constant dense<0.000000e+00> : vector<2x8xf32>
    %482 = vector.multi_reduction <add>, %481, %cst_193 [2] : vector<2x8x16xf32> to vector<2x8xf32>
    %483 = arith.addf %482, %5 : vector<2x8xf32>
    %cst_194 = arith.constant dense<0xFF800000> : vector<2xf32>
    %484 = vector.multi_reduction <maximumf>, %483, %cst_194 [1] : vector<2x8xf32> to vector<2xf32>
    %485 = vector.shape_cast %484 : vector<2xf32> to vector<2x1xf32>
    %486 = vector.broadcast %485 : vector<2x1xf32> to vector<2x8xf32>
    %487 = arith.subf %483, %486 : vector<2x8xf32>
    %488 = math.exp %487 : vector<2x8xf32>
    %cst_195 = arith.constant dense<0.000000e+00> : vector<2xf32>
    %489 = vector.multi_reduction <add>, %488, %cst_195 [1] : vector<2x8xf32> to vector<2xf32>
    %490 = vector.shape_cast %489 : vector<2xf32> to vector<2x1xf32>
    %491 = vector.broadcast %490 : vector<2x1xf32> to vector<2x8xf32>
    %492 = arith.divf %488, %491 : vector<2x8xf32>
    %493 = vector.shape_cast %492 : vector<2x8xf32> to vector<2x1x8xf32>
    "tpu.trace_start"() <{level = 10 : i32, message = "bqt,btd->bqd"}> : () -> ()
    %cst_196 = arith.constant dense<0.000000e+00> : vector<2x1x32xf32>
    %494 = tpu.matmul %493, %3, %cst_196 {dimension_numbers = #tpu.dot_dimension_numbers<[2], [1], [1], [2], [0, 0, 0, 1, 1, 2], [0], [0]>} : vector<2x1x8xf32>, vector<2x8x32xf32>, vector<2x1x32xf32> -> vector<2x1x32xf32>
    "tpu.trace_stop"() : () -> ()
    %495 = vector.shape_cast %494 : vector<2x1x32xf32> to vector<2x32xf32>
    %496 = arith.addf %321, %492 : vector<2x8xf32>
    %497 = tpu.concatenate %411, %495, %352 in 1 : vector<2x32xf32>, vector<2x32xf32>, vector<2x32xf32> -> vector<2x96xf32>
    %c0_197 = arith.constant 0 : index
    %c0_198 = arith.constant 0 : index
    %498 = vector.load %arg14[%c0_197, %c0_198] : memref<96x128xf32, #tpu.memory_space<vmem>>, vector<96x128xf32>
    %cst_199 = arith.constant dense<0.000000e+00> : vector<2x128xf32>
    %499 = tpu.matmul %497, %498, %cst_199 {dimension_numbers = #tpu.dot_dimension_numbers<[1], [0], [0], [1], [0, 0, 1, 1], [], []>} : vector<2x96xf32>, vector<96x128xf32>, vector<2x128xf32> -> vector<2x128xf32>
    %c0_200 = arith.constant 0 : index
    %c0_201 = arith.constant 0 : index
    %500 = vector.load %arg15[%c0_200, %c0_201] : memref<1x128xf32, #tpu.memory_space<vmem>>, vector<1x128xf32>
    %501 = vector.broadcast %500 : vector<1x128xf32> to vector<2x128xf32>
    %502 = arith.addf %499, %501 : vector<2x128xf32>
    %503 = vector.extract_strided_slice %502 {offsets = [0, 0], sizes = [2, 32], strides = [1, 1]} : vector<2x128xf32> to vector<2x32xf32>
    %504 = arith.negf %503 : vector<2x32xf32>
    %505 = math.exp %504 : vector<2x32xf32>
    %cst_202 = arith.constant 1.000000e+00 : f32
    %506 = vector.broadcast %cst_202 : f32 to vector<2x32xf32>
    %507 = arith.addf %506, %505 : vector<2x32xf32>
    %508 = arith.divf %506, %507 : vector<2x32xf32>
    %509 = vector.extract_strided_slice %502 {offsets = [0, 32], sizes = [2, 32], strides = [1, 1]} : vector<2x128xf32> to vector<2x32xf32>
    %510 = arith.negf %509 : vector<2x32xf32>
    %511 = math.exp %510 : vector<2x32xf32>
    %cst_203 = arith.constant 1.000000e+00 : f32
    %512 = vector.broadcast %cst_203 : f32 to vector<2x32xf32>
    %513 = arith.addf %512, %511 : vector<2x32xf32>
    %514 = arith.divf %512, %513 : vector<2x32xf32>
    %515 = vector.extract_strided_slice %502 {offsets = [0, 64], sizes = [2, 32], strides = [1, 1]} : vector<2x128xf32> to vector<2x32xf32>
    %516 = math.tanh %515 : vector<2x32xf32>
    %517 = vector.extract_strided_slice %502 {offsets = [0, 96], sizes = [2, 32], strides = [1, 1]} : vector<2x128xf32> to vector<2x32xf32>
    %518 = arith.negf %517 : vector<2x32xf32>
    %519 = math.exp %518 : vector<2x32xf32>
    %cst_204 = arith.constant 1.000000e+00 : f32
    %520 = vector.broadcast %cst_204 : f32 to vector<2x32xf32>
    %521 = arith.addf %520, %519 : vector<2x32xf32>
    %522 = arith.divf %520, %521 : vector<2x32xf32>
    %523 = arith.mulf %514, %350 : vector<2x32xf32>
    %524 = arith.mulf %508, %516 : vector<2x32xf32>
    %525 = arith.addf %523, %524 : vector<2x32xf32>
    %526 = math.tanh %525 : vector<2x32xf32>
    %527 = arith.mulf %522, %526 : vector<2x32xf32>
    %528 = tpu.concatenate %527, %495 in 1 : vector<2x32xf32>, vector<2x32xf32> -> vector<2x64xf32>
    %c0_205 = arith.constant 0 : index
    %c0_206 = arith.constant 0 : index
    %529 = vector.load %arg16[%c0_205, %c0_206] : memref<64x9xf32, #tpu.memory_space<vmem>>, vector<64x9xf32>
    %cst_207 = arith.constant dense<0.000000e+00> : vector<2x9xf32>
    %530 = tpu.matmul %528, %529, %cst_207 {dimension_numbers = #tpu.dot_dimension_numbers<[1], [0], [0], [1], [0, 0, 1, 1], [], []>} : vector<2x64xf32>, vector<64x9xf32>, vector<2x9xf32> -> vector<2x9xf32>
    %c0_208 = arith.constant 0 : index
    %c0_209 = arith.constant 0 : index
    %531 = vector.load %arg17[%c0_208, %c0_209] : memref<1x9xf32, #tpu.memory_space<vmem>>, vector<1x9xf32>
    %532 = vector.broadcast %531 : vector<1x9xf32> to vector<2x9xf32>
    %533 = arith.addf %530, %532 : vector<2x9xf32>
    %c2_210 = arith.constant 2 : index
    %c0_211 = arith.constant 0 : index
    %c0_212 = arith.constant 0 : index
    %534 = vector.load %arg18[%c2_210, %c0_211, %c0_212] : memref<4x2x9xf32, #tpu.memory_space<vmem>>, vector<1x2x9xf32>
    %535 = vector.shape_cast %534 : vector<1x2x9xf32> to vector<2x9xf32>
    %536 = vector.shape_cast %533 : vector<2x9xf32> to vector<1x2x9xf32>
    tpu.vector_store %arg18[%c2_210, %c0_211, %c0_212], %536 {strides = array<i32>} : memref<4x2x9xf32, #tpu.memory_space<vmem>>, vector<1x2x9xf32>,
    %c2_213 = arith.constant 2 : index
    %c0_214 = arith.constant 0 : index
    %c0_215 = arith.constant 0 : index
    %537 = vector.load %arg19[%c2_213, %c0_214, %c0_215] : memref<4x2x8xf32, #tpu.memory_space<vmem>>, vector<1x2x8xf32>
    %538 = vector.shape_cast %537 : vector<1x2x8xf32> to vector<2x8xf32>
    %539 = vector.shape_cast %492 : vector<2x8xf32> to vector<1x2x8xf32>
    tpu.vector_store %arg19[%c2_213, %c0_214, %c0_215], %539 {strides = array<i32>} : memref<4x2x8xf32, #tpu.memory_space<vmem>>, vector<1x2x8xf32>,
    %c3 = arith.constant 3 : index
    %c0_216 = arith.constant 0 : index
    %c0_217 = arith.constant 0 : index
    %540 = vector.load %arg1[%c3, %c0_216, %c0_217] : memref<4x2x8xf32, #tpu.memory_space<vmem>>, vector<1x2x8xf32>
    %541 = vector.shape_cast %540 : vector<1x2x8xf32> to vector<2x8xf32>
    %c0_218 = arith.constant 0 : index
    %c0_219 = arith.constant 0 : index
    %542 = vector.load %arg7[%c0_218, %c0_219] : memref<8x32xf32, #tpu.memory_space<vmem>>, vector<8x32xf32>
    %cst_220 = arith.constant dense<0.000000e+00> : vector<2x32xf32>
    %543 = tpu.matmul %541, %542, %cst_220 {dimension_numbers = #tpu.dot_dimension_numbers<[1], [0], [0], [1], [0, 0, 1, 1], [], []>} : vector<2x8xf32>, vector<8x32xf32>, vector<2x32xf32> -> vector<2x32xf32>
    %cst_221 = arith.constant 0.000000e+00 : f32
    %544 = vector.broadcast %cst_221 : f32 to vector<2x32xf32>
    %545 = arith.maximumf %543, %544 : vector<2x32xf32>
    %c3_222 = arith.constant 3 : index
    %c0_223 = arith.constant 0 : index
    %c0_224 = arith.constant 0 : index
    %546 = vector.load %arg2[%c3_222, %c0_223, %c0_224] : memref<4x2x32xf32, #tpu.memory_space<vmem>>, vector<1x2x32xf32>
    %547 = vector.shape_cast %546 : vector<1x2x32xf32> to vector<2x32xf32>
    %548 = arith.mulf %545, %547 : vector<2x32xf32>
    %c0_225 = arith.constant 0 : index
    %c0_226 = arith.constant 0 : index
    %549 = vector.load %arg8[%c0_225, %c0_226] : memref<32x32xf32, #tpu.memory_space<vmem>>, vector<32x32xf32>
    %cst_227 = arith.constant dense<0.000000e+00> : vector<2x32xf32>
    %550 = tpu.matmul %548, %549, %cst_227 {dimension_numbers = #tpu.dot_dimension_numbers<[1], [0], [0], [1], [0, 0, 1, 1], [], []>} : vector<2x32xf32>, vector<32x32xf32>, vector<2x32xf32> -> vector<2x32xf32>
    %cst_228 = arith.constant 0.000000e+00 : f32
    %551 = vector.broadcast %cst_228 : f32 to vector<2x32xf32>
    %552 = arith.maximumf %550, %551 : vector<2x32xf32>
    %c3_229 = arith.constant 3 : index
    %c0_230 = arith.constant 0 : index
    %c0_231 = arith.constant 0 : index
    %553 = vector.load %arg3[%c3_229, %c0_230, %c0_231] : memref<4x2x32xf32, #tpu.memory_space<vmem>>, vector<1x2x32xf32>
    %554 = vector.shape_cast %553 : vector<1x2x32xf32> to vector<2x32xf32>
    %555 = arith.mulf %552, %554 : vector<2x32xf32>
    %556 = tpu.concatenate %555, %495, %411 in 1 : vector<2x32xf32>, vector<2x32xf32>, vector<2x32xf32> -> vector<2x96xf32>
    %c0_232 = arith.constant 0 : index
    %c0_233 = arith.constant 0 : index
    %557 = vector.load %arg9[%c0_232, %c0_233] : memref<96x128xf32, #tpu.memory_space<vmem>>, vector<96x128xf32>
    %cst_234 = arith.constant dense<0.000000e+00> : vector<2x128xf32>
    %558 = tpu.matmul %556, %557, %cst_234 {dimension_numbers = #tpu.dot_dimension_numbers<[1], [0], [0], [1], [0, 0, 1, 1], [], []>} : vector<2x96xf32>, vector<96x128xf32>, vector<2x128xf32> -> vector<2x128xf32>
    %c0_235 = arith.constant 0 : index
    %c0_236 = arith.constant 0 : index
    %559 = vector.load %arg10[%c0_235, %c0_236] : memref<1x128xf32, #tpu.memory_space<vmem>>, vector<1x128xf32>
    %560 = vector.broadcast %559 : vector<1x128xf32> to vector<2x128xf32>
    %561 = arith.addf %558, %560 : vector<2x128xf32>
    %562 = vector.extract_strided_slice %561 {offsets = [0, 0], sizes = [2, 32], strides = [1, 1]} : vector<2x128xf32> to vector<2x32xf32>
    %563 = arith.negf %562 : vector<2x32xf32>
    %564 = math.exp %563 : vector<2x32xf32>
    %cst_237 = arith.constant 1.000000e+00 : f32
    %565 = vector.broadcast %cst_237 : f32 to vector<2x32xf32>
    %566 = arith.addf %565, %564 : vector<2x32xf32>
    %567 = arith.divf %565, %566 : vector<2x32xf32>
    %568 = vector.extract_strided_slice %561 {offsets = [0, 32], sizes = [2, 32], strides = [1, 1]} : vector<2x128xf32> to vector<2x32xf32>
    %569 = arith.negf %568 : vector<2x32xf32>
    %570 = math.exp %569 : vector<2x32xf32>
    %cst_238 = arith.constant 1.000000e+00 : f32
    %571 = vector.broadcast %cst_238 : f32 to vector<2x32xf32>
    %572 = arith.addf %571, %570 : vector<2x32xf32>
    %573 = arith.divf %571, %572 : vector<2x32xf32>
    %574 = vector.extract_strided_slice %561 {offsets = [0, 64], sizes = [2, 32], strides = [1, 1]} : vector<2x128xf32> to vector<2x32xf32>
    %575 = math.tanh %574 : vector<2x32xf32>
    %576 = vector.extract_strided_slice %561 {offsets = [0, 96], sizes = [2, 32], strides = [1, 1]} : vector<2x128xf32> to vector<2x32xf32>
    %577 = arith.negf %576 : vector<2x32xf32>
    %578 = math.exp %577 : vector<2x32xf32>
    %cst_239 = arith.constant 1.000000e+00 : f32
    %579 = vector.broadcast %cst_239 : f32 to vector<2x32xf32>
    %580 = arith.addf %579, %578 : vector<2x32xf32>
    %581 = arith.divf %579, %580 : vector<2x32xf32>
    %582 = arith.mulf %573, %409 : vector<2x32xf32>
    %583 = arith.mulf %567, %575 : vector<2x32xf32>
    %584 = arith.addf %582, %583 : vector<2x32xf32>
    %585 = math.tanh %584 : vector<2x32xf32>
    %586 = arith.mulf %581, %585 : vector<2x32xf32>
    %c0_240 = arith.constant 0 : index
    %c0_241 = arith.constant 0 : index
    %587 = vector.load %arg11[%c0_240, %c0_241] : memref<32x16xf32, #tpu.memory_space<vmem>>, vector<32x16xf32>
    %cst_242 = arith.constant dense<0.000000e+00> : vector<2x16xf32>
    %588 = tpu.matmul %586, %587, %cst_242 {dimension_numbers = #tpu.dot_dimension_numbers<[1], [0], [0], [1], [0, 0, 1, 1], [], []>} : vector<2x32xf32>, vector<32x16xf32>, vector<2x16xf32> -> vector<2x16xf32>
    %cst_243 = arith.constant 0.000000e+00 : f32
    %589 = vector.broadcast %cst_243 : f32 to vector<2x8x16xf32>
    %cst_244 = arith.constant 0.000000e+00 : f32
    %590 = vector.broadcast %cst_244 : f32 to vector<2x1xf32>
    %591 = vector.extract_strided_slice %492 {offsets = [0, 0], sizes = [2, 7], strides = [1, 1]} : vector<2x8xf32> to vector<2x7xf32>
    %592 = tpu.concatenate %590, %591 in 1 : vector<2x1xf32>, vector<2x7xf32> -> vector<2x8xf32>
    %cst_245 = arith.constant 0.000000e+00 : f32
    %593 = vector.broadcast %cst_245 : f32 to vector<2x1xf32>
    %594 = vector.extract_strided_slice %496 {offsets = [0, 0], sizes = [2, 7], strides = [1, 1]} : vector<2x8xf32> to vector<2x7xf32>
    %595 = tpu.concatenate %593, %594 in 1 : vector<2x1xf32>, vector<2x7xf32> -> vector<2x8xf32>
    %c0_246 = arith.constant 0 : index
    %c0_247 = arith.constant 0 : index
    %c0_248 = arith.constant 0 : index
    %596 = vector.load %arg13[%c0_246, %c0_247, %c0_248] : memref<3x2x16xf32, #tpu.memory_space<vmem>>, vector<1x2x16xf32>
    %597 = vector.shape_cast %596 : vector<1x2x16xf32> to vector<2x16xf32>
    %598 = vector.shape_cast %592 : vector<2x8xf32> to vector<2x8x1xf32>
    %599 = vector.extract_strided_slice %597 {offsets = [0, 0], sizes = [1, 16], strides = [1, 1]} : vector<2x16xf32> to vector<1x16xf32>
    %600 = vector.shape_cast %599 : vector<1x16xf32> to vector<1x1x16xf32>
    %601 = vector.broadcast %598 : vector<2x8x1xf32> to vector<2x8x16xf32>
    %602 = vector.broadcast %600 : vector<1x1x16xf32> to vector<2x8x16xf32>
    %603 = arith.mulf %601, %602 : vector<2x8x16xf32>
    %604 = arith.addf %589, %603 : vector<2x8x16xf32>
    %605 = vector.shape_cast %595 : vector<2x8xf32> to vector<2x8x1xf32>
    %606 = vector.extract_strided_slice %597 {offsets = [1, 0], sizes = [1, 16], strides = [1, 1]} : vector<2x16xf32> to vector<1x16xf32>
    %607 = vector.shape_cast %606 : vector<1x16xf32> to vector<1x1x16xf32>
    %608 = vector.broadcast %605 : vector<2x8x1xf32> to vector<2x8x16xf32>
    %609 = vector.broadcast %607 : vector<1x1x16xf32> to vector<2x8x16xf32>
    %610 = arith.mulf %608, %609 : vector<2x8x16xf32>
    %611 = arith.addf %604, %610 : vector<2x8x16xf32>
    %c1_249 = arith.constant 1 : index
    %c0_250 = arith.constant 0 : index
    %c0_251 = arith.constant 0 : index
    %612 = vector.load %arg13[%c1_249, %c0_250, %c0_251] : memref<3x2x16xf32, #tpu.memory_space<vmem>>, vector<1x2x16xf32>
    %613 = vector.shape_cast %612 : vector<1x2x16xf32> to vector<2x16xf32>
    %614 = vector.shape_cast %492 : vector<2x8xf32> to vector<2x8x1xf32>
    %615 = vector.extract_strided_slice %613 {offsets = [0, 0], sizes = [1, 16], strides = [1, 1]} : vector<2x16xf32> to vector<1x16xf32>
    %616 = vector.shape_cast %615 : vector<1x16xf32> to vector<1x1x16xf32>
    %617 = vector.broadcast %614 : vector<2x8x1xf32> to vector<2x8x16xf32>
    %618 = vector.broadcast %616 : vector<1x1x16xf32> to vector<2x8x16xf32>
    %619 = arith.mulf %617, %618 : vector<2x8x16xf32>
    %620 = arith.addf %611, %619 : vector<2x8x16xf32>
    %621 = vector.shape_cast %496 : vector<2x8xf32> to vector<2x8x1xf32>
    %622 = vector.extract_strided_slice %613 {offsets = [1, 0], sizes = [1, 16], strides = [1, 1]} : vector<2x16xf32> to vector<1x16xf32>
    %623 = vector.shape_cast %622 : vector<1x16xf32> to vector<1x1x16xf32>
    %624 = vector.broadcast %621 : vector<2x8x1xf32> to vector<2x8x16xf32>
    %625 = vector.broadcast %623 : vector<1x1x16xf32> to vector<2x8x16xf32>
    %626 = arith.mulf %624, %625 : vector<2x8x16xf32>
    %627 = arith.addf %620, %626 : vector<2x8x16xf32>
    %cst_252 = arith.constant 0.000000e+00 : f32
    %628 = vector.broadcast %cst_252 : f32 to vector<2x1xf32>
    %629 = vector.extract_strided_slice %492 {offsets = [0, 1], sizes = [2, 7], strides = [1, 1]} : vector<2x8xf32> to vector<2x7xf32>
    %630 = tpu.concatenate %629, %628 in 1 : vector<2x7xf32>, vector<2x1xf32> -> vector<2x8xf32>
    %cst_253 = arith.constant 0.000000e+00 : f32
    %631 = vector.broadcast %cst_253 : f32 to vector<2x1xf32>
    %632 = vector.extract_strided_slice %496 {offsets = [0, 1], sizes = [2, 7], strides = [1, 1]} : vector<2x8xf32> to vector<2x7xf32>
    %633 = tpu.concatenate %632, %631 in 1 : vector<2x7xf32>, vector<2x1xf32> -> vector<2x8xf32>
    %c2_254 = arith.constant 2 : index
    %c0_255 = arith.constant 0 : index
    %c0_256 = arith.constant 0 : index
    %634 = vector.load %arg13[%c2_254, %c0_255, %c0_256] : memref<3x2x16xf32, #tpu.memory_space<vmem>>, vector<1x2x16xf32>
    %635 = vector.shape_cast %634 : vector<1x2x16xf32> to vector<2x16xf32>
    %636 = vector.shape_cast %630 : vector<2x8xf32> to vector<2x8x1xf32>
    %637 = vector.extract_strided_slice %635 {offsets = [0, 0], sizes = [1, 16], strides = [1, 1]} : vector<2x16xf32> to vector<1x16xf32>
    %638 = vector.shape_cast %637 : vector<1x16xf32> to vector<1x1x16xf32>
    %639 = vector.broadcast %636 : vector<2x8x1xf32> to vector<2x8x16xf32>
    %640 = vector.broadcast %638 : vector<1x1x16xf32> to vector<2x8x16xf32>
    %641 = arith.mulf %639, %640 : vector<2x8x16xf32>
    %642 = arith.addf %627, %641 : vector<2x8x16xf32>
    %643 = vector.shape_cast %633 : vector<2x8xf32> to vector<2x8x1xf32>
    %644 = vector.extract_strided_slice %635 {offsets = [1, 0], sizes = [1, 16], strides = [1, 1]} : vector<2x16xf32> to vector<1x16xf32>
    %645 = vector.shape_cast %644 : vector<1x16xf32> to vector<1x1x16xf32>
    %646 = vector.broadcast %643 : vector<2x8x1xf32> to vector<2x8x16xf32>
    %647 = vector.broadcast %645 : vector<1x1x16xf32> to vector<2x8x16xf32>
    %648 = arith.mulf %646, %647 : vector<2x8x16xf32>
    %649 = arith.addf %642, %648 : vector<2x8x16xf32>
    %650 = vector.shape_cast %588 : vector<2x16xf32> to vector<2x1x16xf32>
    %651 = vector.broadcast %650 : vector<2x1x16xf32> to vector<2x8x16xf32>
    %652 = arith.addf %651, %649 : vector<2x8x16xf32>
    %653 = arith.addf %652, %4 : vector<2x8x16xf32>
    %654 = math.tanh %653 : vector<2x8x16xf32>
    %655 = vector.broadcast %7 : vector<1x1x16xf32> to vector<2x8x16xf32>
    %656 = arith.mulf %654, %655 : vector<2x8x16xf32>
    %cst_257 = arith.constant dense<0.000000e+00> : vector<2x8xf32>
    %657 = vector.multi_reduction <add>, %656, %cst_257 [2] : vector<2x8x16xf32> to vector<2x8xf32>
    %658 = arith.addf %657, %5 : vector<2x8xf32>
    %cst_258 = arith.constant dense<0xFF800000> : vector<2xf32>
    %659 = vector.multi_reduction <maximumf>, %658, %cst_258 [1] : vector<2x8xf32> to vector<2xf32>
    %660 = vector.shape_cast %659 : vector<2xf32> to vector<2x1xf32>
    %661 = vector.broadcast %660 : vector<2x1xf32> to vector<2x8xf32>
    %662 = arith.subf %658, %661 : vector<2x8xf32>
    %663 = math.exp %662 : vector<2x8xf32>
    %cst_259 = arith.constant dense<0.000000e+00> : vector<2xf32>
    %664 = vector.multi_reduction <add>, %663, %cst_259 [1] : vector<2x8xf32> to vector<2xf32>
    %665 = vector.shape_cast %664 : vector<2xf32> to vector<2x1xf32>
    %666 = vector.broadcast %665 : vector<2x1xf32> to vector<2x8xf32>
    %667 = arith.divf %663, %666 : vector<2x8xf32>
    %668 = vector.shape_cast %667 : vector<2x8xf32> to vector<2x1x8xf32>
    "tpu.trace_start"() <{level = 10 : i32, message = "bqt,btd->bqd"}> : () -> ()
    %cst_260 = arith.constant dense<0.000000e+00> : vector<2x1x32xf32>
    %669 = tpu.matmul %668, %3, %cst_260 {dimension_numbers = #tpu.dot_dimension_numbers<[2], [1], [1], [2], [0, 0, 0, 1, 1, 2], [0], [0]>} : vector<2x1x8xf32>, vector<2x8x32xf32>, vector<2x1x32xf32> -> vector<2x1x32xf32>
    "tpu.trace_stop"() : () -> ()
    %670 = vector.shape_cast %669 : vector<2x1x32xf32> to vector<2x32xf32>
    %671 = arith.addf %496, %667 : vector<2x8xf32>
    %672 = tpu.concatenate %586, %670, %527 in 1 : vector<2x32xf32>, vector<2x32xf32>, vector<2x32xf32> -> vector<2x96xf32>
    %c0_261 = arith.constant 0 : index
    %c0_262 = arith.constant 0 : index
    %673 = vector.load %arg14[%c0_261, %c0_262] : memref<96x128xf32, #tpu.memory_space<vmem>>, vector<96x128xf32>
    %cst_263 = arith.constant dense<0.000000e+00> : vector<2x128xf32>
    %674 = tpu.matmul %672, %673, %cst_263 {dimension_numbers = #tpu.dot_dimension_numbers<[1], [0], [0], [1], [0, 0, 1, 1], [], []>} : vector<2x96xf32>, vector<96x128xf32>, vector<2x128xf32> -> vector<2x128xf32>
    %c0_264 = arith.constant 0 : index
    %c0_265 = arith.constant 0 : index
    %675 = vector.load %arg15[%c0_264, %c0_265] : memref<1x128xf32, #tpu.memory_space<vmem>>, vector<1x128xf32>
    %676 = vector.broadcast %675 : vector<1x128xf32> to vector<2x128xf32>
    %677 = arith.addf %674, %676 : vector<2x128xf32>
    %678 = vector.extract_strided_slice %677 {offsets = [0, 0], sizes = [2, 32], strides = [1, 1]} : vector<2x128xf32> to vector<2x32xf32>
    %679 = arith.negf %678 : vector<2x32xf32>
    %680 = math.exp %679 : vector<2x32xf32>
    %cst_266 = arith.constant 1.000000e+00 : f32
    %681 = vector.broadcast %cst_266 : f32 to vector<2x32xf32>
    %682 = arith.addf %681, %680 : vector<2x32xf32>
    %683 = arith.divf %681, %682 : vector<2x32xf32>
    %684 = vector.extract_strided_slice %677 {offsets = [0, 32], sizes = [2, 32], strides = [1, 1]} : vector<2x128xf32> to vector<2x32xf32>
    %685 = arith.negf %684 : vector<2x32xf32>
    %686 = math.exp %685 : vector<2x32xf32>
    %cst_267 = arith.constant 1.000000e+00 : f32
    %687 = vector.broadcast %cst_267 : f32 to vector<2x32xf32>
    %688 = arith.addf %687, %686 : vector<2x32xf32>
    %689 = arith.divf %687, %688 : vector<2x32xf32>
    %690 = vector.extract_strided_slice %677 {offsets = [0, 64], sizes = [2, 32], strides = [1, 1]} : vector<2x128xf32> to vector<2x32xf32>
    %691 = math.tanh %690 : vector<2x32xf32>
    %692 = vector.extract_strided_slice %677 {offsets = [0, 96], sizes = [2, 32], strides = [1, 1]} : vector<2x128xf32> to vector<2x32xf32>
    %693 = arith.negf %692 : vector<2x32xf32>
    %694 = math.exp %693 : vector<2x32xf32>
    %cst_268 = arith.constant 1.000000e+00 : f32
    %695 = vector.broadcast %cst_268 : f32 to vector<2x32xf32>
    %696 = arith.addf %695, %694 : vector<2x32xf32>
    %697 = arith.divf %695, %696 : vector<2x32xf32>
    %698 = arith.mulf %689, %525 : vector<2x32xf32>
    %699 = arith.mulf %683, %691 : vector<2x32xf32>
    %700 = arith.addf %698, %699 : vector<2x32xf32>
    %701 = math.tanh %700 : vector<2x32xf32>
    %702 = arith.mulf %697, %701 : vector<2x32xf32>
    %703 = tpu.concatenate %702, %670 in 1 : vector<2x32xf32>, vector<2x32xf32> -> vector<2x64xf32>
    %c0_269 = arith.constant 0 : index
    %c0_270 = arith.constant 0 : index
    %704 = vector.load %arg16[%c0_269, %c0_270] : memref<64x9xf32, #tpu.memory_space<vmem>>, vector<64x9xf32>
    %cst_271 = arith.constant dense<0.000000e+00> : vector<2x9xf32>
    %705 = tpu.matmul %703, %704, %cst_271 {dimension_numbers = #tpu.dot_dimension_numbers<[1], [0], [0], [1], [0, 0, 1, 1], [], []>} : vector<2x64xf32>, vector<64x9xf32>, vector<2x9xf32> -> vector<2x9xf32>
    %c0_272 = arith.constant 0 : index
    %c0_273 = arith.constant 0 : index
    %706 = vector.load %arg17[%c0_272, %c0_273] : memref<1x9xf32, #tpu.memory_space<vmem>>, vector<1x9xf32>
    %707 = vector.broadcast %706 : vector<1x9xf32> to vector<2x9xf32>
    %708 = arith.addf %705, %707 : vector<2x9xf32>
    %c3_274 = arith.constant 3 : index
    %c0_275 = arith.constant 0 : index
    %c0_276 = arith.constant 0 : index
    %709 = vector.load %arg18[%c3_274, %c0_275, %c0_276] : memref<4x2x9xf32, #tpu.memory_space<vmem>>, vector<1x2x9xf32>
    %710 = vector.shape_cast %709 : vector<1x2x9xf32> to vector<2x9xf32>
    %711 = vector.shape_cast %708 : vector<2x9xf32> to vector<1x2x9xf32>
    tpu.vector_store %arg18[%c3_274, %c0_275, %c0_276], %711 {strides = array<i32>} : memref<4x2x9xf32, #tpu.memory_space<vmem>>, vector<1x2x9xf32>,
    %c3_277 = arith.constant 3 : index
    %c0_278 = arith.constant 0 : index
    %c0_279 = arith.constant 0 : index
    %712 = vector.load %arg19[%c3_277, %c0_278, %c0_279] : memref<4x2x8xf32, #tpu.memory_space<vmem>>, vector<1x2x8xf32>
    %713 = vector.shape_cast %712 : vector<1x2x8xf32> to vector<2x8xf32>
    %714 = vector.shape_cast %667 : vector<2x8xf32> to vector<1x2x8xf32>
    tpu.vector_store %arg19[%c3_277, %c0_278, %c0_279], %714 {strides = array<i32>} : memref<4x2x8xf32, #tpu.memory_space<vmem>>, vector<1x2x8xf32>,
    %c0_280 = arith.constant 0 : index
    %c0_281 = arith.constant 0 : index
    %715 = vector.load %arg20[%c0_280, %c0_281] : memref<2x32xf32, #tpu.memory_space<vmem>>, vector<2x32xf32>
    tpu.vector_store %arg20[%c0_280, %c0_281], %586 {strides = array<i32>} : memref<2x32xf32, #tpu.memory_space<vmem>>, vector<2x32xf32>,
    %c0_282 = arith.constant 0 : index
    %c0_283 = arith.constant 0 : index
    %716 = vector.load %arg21[%c0_282, %c0_283] : memref<2x32xf32, #tpu.memory_space<vmem>>, vector<2x32xf32>
    tpu.vector_store %arg21[%c0_282, %c0_283], %584 {strides = array<i32>} : memref<2x32xf32, #tpu.memory_space<vmem>>, vector<2x32xf32>,
    %c0_284 = arith.constant 0 : index
    %c0_285 = arith.constant 0 : index
    %717 = vector.load %arg22[%c0_284, %c0_285] : memref<2x32xf32, #tpu.memory_space<vmem>>, vector<2x32xf32>
    tpu.vector_store %arg22[%c0_284, %c0_285], %702 {strides = array<i32>} : memref<2x32xf32, #tpu.memory_space<vmem>>, vector<2x32xf32>,
    %c0_286 = arith.constant 0 : index
    %c0_287 = arith.constant 0 : index
    %718 = vector.load %arg23[%c0_286, %c0_287] : memref<2x32xf32, #tpu.memory_space<vmem>>, vector<2x32xf32>
    tpu.vector_store %arg23[%c0_286, %c0_287], %700 {strides = array<i32>} : memref<2x32xf32, #tpu.memory_space<vmem>>, vector<2x32xf32>,
    %c0_288 = arith.constant 0 : index
    %c0_289 = arith.constant 0 : index
    %719 = vector.load %arg24[%c0_288, %c0_289] : memref<2x8xf32, #tpu.memory_space<vmem>>, vector<2x8xf32>
    tpu.vector_store %arg24[%c0_288, %c0_289], %667 {strides = array<i32>} : memref<2x8xf32, #tpu.memory_space<vmem>>, vector<2x8xf32>,
    %c0_290 = arith.constant 0 : index
    %c0_291 = arith.constant 0 : index
    %720 = vector.load %arg25[%c0_290, %c0_291] : memref<2x8xf32, #tpu.memory_space<vmem>>, vector<2x8xf32>
    tpu.vector_store %arg25[%c0_290, %c0_291], %671 {strides = array<i32>} : memref<2x8xf32, #tpu.memory_space<vmem>>, vector<2x8xf32>,
    %c0_292 = arith.constant 0 : index
    %c0_293 = arith.constant 0 : index
    %721 = vector.load %arg26[%c0_292, %c0_293] : memref<2x32xf32, #tpu.memory_space<vmem>>, vector<2x32xf32>
    tpu.vector_store %arg26[%c0_292, %c0_293], %670 {strides = array<i32>} : memref<2x32xf32, #tpu.memory_space<vmem>>, vector<2x32xf32>,
    return
  }
  func.func @transform_0(%arg0: i32) -> (i32, i32, i32) {
    %c0_i32 = arith.constant 0 : i32
    %c0_i32_0 = arith.constant 0 : i32
    %c0_i32_1 = arith.constant 0 : i32
    return %arg0, %c0_i32, %c0_i32_0 : i32, i32, i32
  }
  func.func @transform_1(%arg0: i32) -> (i32, i32, i32) {
    %c0_i32 = arith.constant 0 : i32
    %c0_i32_0 = arith.constant 0 : i32
    %c0_i32_1 = arith.constant 0 : i32
    return %arg0, %c0_i32, %c0_i32_0 : i32, i32, i32
  }
  func.func @transform_2(%arg0: i32) -> (i32, i32, i32) {
    %c0_i32 = arith.constant 0 : i32
    %c0_i32_0 = arith.constant 0 : i32
    %c0_i32_1 = arith.constant 0 : i32
    return %arg0, %c0_i32, %c0_i32_0 : i32, i32, i32
  }
  func.func @transform_3(%arg0: i32) -> (i32, i32, i32) {
    %c0_i32 = arith.constant 0 : i32
    %c0_i32_0 = arith.constant 0 : i32
    %c0_i32_1 = arith.constant 0 : i32
    %c0_i32_2 = arith.constant 0 : i32
    return %c0_i32, %c0_i32_0, %c0_i32_1 : i32, i32, i32
  }
  func.func @transform_4(%arg0: i32) -> (i32, i32, i32) {
    %c0_i32 = arith.constant 0 : i32
    %c0_i32_0 = arith.constant 0 : i32
    %c0_i32_1 = arith.constant 0 : i32
    %c0_i32_2 = arith.constant 0 : i32
    return %c0_i32, %c0_i32_0, %c0_i32_1 : i32, i32, i32
  }
  func.func @transform_5(%arg0: i32) -> (i32, i32) {
    %c0_i32 = arith.constant 0 : i32
    %c0_i32_0 = arith.constant 0 : i32
    %c0_i32_1 = arith.constant 0 : i32
    return %c0_i32, %c0_i32_0 : i32, i32
  }
  func.func @transform_6(%arg0: i32) -> (i32, i32) {
    %c0_i32 = arith.constant 0 : i32
    %c0_i32_0 = arith.constant 0 : i32
    %c0_i32_1 = arith.constant 0 : i32
    return %c0_i32, %c0_i32_0 : i32, i32
  }
  func.func @transform_7(%arg0: i32) -> (i32, i32) {
    %c0_i32 = arith.constant 0 : i32
    %c0_i32_0 = arith.constant 0 : i32
    %c0_i32_1 = arith.constant 0 : i32
    return %c0_i32, %c0_i32_0 : i32, i32
  }
  func.func @transform_8(%arg0: i32) -> (i32, i32) {
    %c0_i32 = arith.constant 0 : i32
    %c0_i32_0 = arith.constant 0 : i32
    %c0_i32_1 = arith.constant 0 : i32
    return %c0_i32, %c0_i32_0 : i32, i32
  }
  func.func @transform_9(%arg0: i32) -> (i32, i32) {
    %c0_i32 = arith.constant 0 : i32
    %c0_i32_0 = arith.constant 0 : i32
    %c0_i32_1 = arith.constant 0 : i32
    return %c0_i32, %c0_i32_0 : i32, i32
  }
  func.func @transform_10(%arg0: i32) -> (i32, i32) {
    %c0_i32 = arith.constant 0 : i32
    %c0_i32_0 = arith.constant 0 : i32
    %c0_i32_1 = arith.constant 0 : i32
    return %c0_i32, %c0_i32_0 : i32, i32
  }
  func.func @transform_11(%arg0: i32) -> (i32, i32) {
    %c0_i32 = arith.constant 0 : i32
    %c0_i32_0 = arith.constant 0 : i32
    %c0_i32_1 = arith.constant 0 : i32
    return %c0_i32, %c0_i32_0 : i32, i32
  }
  func.func @transform_12(%arg0: i32) -> (i32, i32, i32) {
    %c0_i32 = arith.constant 0 : i32
    %c0_i32_0 = arith.constant 0 : i32
    %c0_i32_1 = arith.constant 0 : i32
    %c0_i32_2 = arith.constant 0 : i32
    return %c0_i32, %c0_i32_0, %c0_i32_1 : i32, i32, i32
  }
  func.func @transform_13(%arg0: i32) -> (i32, i32) {
    %c0_i32 = arith.constant 0 : i32
    %c0_i32_0 = arith.constant 0 : i32
    %c0_i32_1 = arith.constant 0 : i32
    return %c0_i32, %c0_i32_0 : i32, i32
  }
  func.func @transform_14(%arg0: i32) -> (i32, i32) {
    %c0_i32 = arith.constant 0 : i32
    %c0_i32_0 = arith.constant 0 : i32
    %c0_i32_1 = arith.constant 0 : i32
    return %c0_i32, %c0_i32_0 : i32, i32
  }
  func.func @transform_15(%arg0: i32) -> (i32, i32) {
    %c0_i32 = arith.constant 0 : i32
    %c0_i32_0 = arith.constant 0 : i32
    %c0_i32_1 = arith.constant 0 : i32
    return %c0_i32, %c0_i32_0 : i32, i32
  }
  func.func @transform_16(%arg0: i32) -> (i32, i32) {
    %c0_i32 = arith.constant 0 : i32
    %c0_i32_0 = arith.constant 0 : i32
    %c0_i32_1 = arith.constant 0 : i32
    return %c0_i32, %c0_i32_0 : i32, i32
  }
  func.func @transform_17(%arg0: i32) -> (i32, i32, i32) {
    %c0_i32 = arith.constant 0 : i32
    %c0_i32_0 = arith.constant 0 : i32
    %c0_i32_1 = arith.constant 0 : i32
    return %arg0, %c0_i32, %c0_i32_0 : i32, i32, i32
  }
  func.func @transform_18(%arg0: i32) -> (i32, i32, i32) {
    %c0_i32 = arith.constant 0 : i32
    %c0_i32_0 = arith.constant 0 : i32
    %c0_i32_1 = arith.constant 0 : i32
    return %arg0, %c0_i32, %c0_i32_0 : i32, i32, i32
  }
}

</mosaic_0001>

<bundles_post_ra>
// kernel: tpu_custom_call.1
= control target key start
LH: loop header
LB: loop body
LE: loop exit
PB: predicated region body
PF: predicated region fallthrough
CT: control target
= control target key end

     0   :  { %s4213_s0 = inlined_call_operand.hbm [shape: f32[4,2,8], index: 0, kind: input, shape index: {}]   ;;  %s4214_s1 = inlined_call_operand.hbm [shape: f32[4,2,32], index: 1, kind: input, shape index: {}]   ;;  %s4215_s2 = inlined_call_operand.hbm [shape: f32[4,2,32], index: 2, kind: input, shape index: {}]   ;;  %s4216_s3 = inlined_call_operand.vmem [shape: f32[2,8,32], index: 3, kind: input, shape index: {}]   ;;  %s4217_s4 = inlined_call_operand.hbm [shape: f32[2,8,16], index: 4, kind: input, shape index: {}]   ;;  %s4218_s5 = inlined_call_operand.hbm [shape: f32[2,8], index: 5, kind: input, shape index: {}]   ;;  %s4219_s6 = inlined_call_operand.hbm [shape: f32[8,32], index: 6, kind: input, shape index: {}]   ;;  %s4220_s7 = inlined_call_operand.hbm [shape: f32[32,32], index: 7, kind: input, shape index: {}]   ;;  %s4221_s8 = inlined_call_operand.vmem [shape: f32[96,128], index: 8, kind: input, shape index: {}]   ;;  %s4222_s9 = inlined_call_operand.vmem [shape: f32[1,128], index: 9, kind: input, shape index: {}]   ;;  %s4223_s10 = inlined_call_operand.vmem [shape: f32[32,16], index: 10, kind: input, shape index: {}]   ;;  %s4224_s11 = inlined_call_operand.vmem [shape: f32[1,16], index: 11, kind: input, shape index: {}]   ;;  %s4225_s12 = inlined_call_operand.vmem [shape: f32[3,2,16], index: 12, kind: input, shape index: {}]   ;;  %s4226_s13 = inlined_call_operand.hbm [shape: f32[96,128], index: 13, kind: input, shape index: {}]   ;;  %s4227_s14 = inlined_call_operand.vmem [shape: f32[1,128], index: 14, kind: input, shape index: {}]   ;;  %s4228_s15 = inlined_call_operand.vmem [shape: f32[64,9], index: 15, kind: input, shape index: {}]   ;;  %s4229_s16 = inlined_call_operand.vmem [shape: f32[1,9], index: 16, kind: input, shape index: {}]   ;;  %s4230_s17 = inlined_call_operand.hbm [shape: f32[4,2,9], index: 17, kind: output, shape index: {0}]   ;;  %s4231_s18 = inlined_call_operand.hbm [shape: f32[4,2,8], index: 18, kind: output, shape index: {1}]  }
   0x1   :  { %4240 = sst [smem:[#allocation33_spill]] %s4213_s0 }
   0x2   :  { %4241 = sst [smem:[#allocation34_spill]] %s4214_s1 }
   0x3   :  { %4242 = sst [smem:[#allocation35_spill]] %s4215_s2 }
   0x4   :  { %4243 = sst [smem:[#allocation36_spill]] %s4230_s17 }
   0x5   :  { %4244 = sst [smem:[#allocation37_spill]] %s4231_s18 }
   0x6   :  { %24 = vsyncpa [#allocation10], 0 }
   0x7   :  { %25 = vsyncpa [#allocation13], 0 }
   0x8   :  { %26 = vsyncpa [#allocation16], 0 }
   0x9   :  { %27 = vsyncpa [#allocation19], 0 }
   0xa   :  { %28 = vsyncpa [#allocation22], 0 }
   0xb   :  { %29 = vsyncpa [#allocation11], 0 }
   0xc   :  { %30 = vsyncpa [#allocation25], 0  ;;  %s4245_s29 = sld [smem:[#allocation34_spill]]  ;;  %s3129_s0 = smov [#allocation12]  }
   0xd   :  { %s50_s19 = sshll.u32 %s3129_s0, 4  ;;  %s76_s21 = sshll.u32 %s4217_s4, 4  ;;  %s51_s19 = int_to_ptr.vmem [resolvable:$true] %s50_s19  ;;  %s77_s21 = int_to_ptr.hbm [resolvable:$true] %s76_s21 }
   0xe   :  { %s4232_s22 = smov 32   ;;  %s4234_s2 = smov 2  }
   0xf   :  { %s3132_s23 = smov [#allocation15]   ;;  %s3133_s25 = smov 128  }
  0x10   :  { %s78_s24 = sshll.u32 %s3132_s23, 4  ;;  %s3134_s26 = smov 8   ;;  %s79_s24 = int_to_ptr.vmem [resolvable:$true] %s78_s24 }
  0x11   :  { %84 = dma.hbm_to_vmem [thread:$0]  %s77_s21, 256, %s79_s24, [#allocation16], %s3133_s25, %s3133_s25, %s3134_s26  }
  0x12   :  { %s48_s30 = sshll.u32 %s4245_s29, 4  ;;  %s101_s4 = sshll.u32 %s4219_s6, 4  ;;  %s49_s30 = int_to_ptr.hbm [resolvable:$true] %s48_s30  ;;  %s102_s4 = int_to_ptr.hbm [resolvable:$true] %s101_s4 }
  0x13   :  { %56 = dma.hbm_to_vmem [thread:$0]  %s49_s30, 128, %s51_s19, [#allocation13], %s4232_s22, %s4232_s22, %s4234_s2  }
  0x14   :  { %s3135_s29 = smov [#allocation18]   ;;  %s4246_s19 = sld [smem:[#allocation33_spill]] }
  0x15   :  { %s103_s0 = sshll.u32 %s3135_s29, 4  ;;  %s3136_s23 = smov [#allocation9]   ;;  %s104_s0 = int_to_ptr.vmem [resolvable:$true] %s103_s0 }
  0x16   :  { %106 = dma.hbm_to_vmem [thread:$0]  %s102_s4, 128, %s104_s0, [#allocation19]  }
  0x17   :  { %s37_s22 = sshll.u32 %s3136_s23, 4  ;;  %s4247_s18 = sld [smem:[#allocation35_spill]]  ;;  %s38_s22 = int_to_ptr.vmem [resolvable:$true] %s37_s22 }
  0x18   :  { %s4248_s24 = smov 2   ;;  %s4249_s6 = smov 32  }
  0x19   :  { %s90_s29 = sshll.u32 %s4218_s5, 4  ;;  %s3137_s1 = smov [#allocation14]   ;;  %s91_s29 = int_to_ptr.hbm [resolvable:$true] %s90_s29 }
  0x1a   :  { %s35_s20 = sshll.u32 %s4246_s19, 4  ;;  %s63_s30 = sshll.u32 %s3137_s1, 4  ;;  %s36_s20 = int_to_ptr.hbm [resolvable:$true] %s35_s20  ;;  %s64_s30 = int_to_ptr.vmem [resolvable:$true] %s63_s30 }
  0x1b   :  { %43 = dma.hbm_to_vmem [thread:$0]  %s36_s20, 128, %s38_s22, [#allocation10], %s4249_s6, %s4249_s6, %s4248_s24  }
  0x1c   :  { %s3138_s17 = smov [#allocation17]   ;;  %s111_s0 = sshll.u32 %s4220_s7, 4  ;;  %s112_s0 = int_to_ptr.hbm [resolvable:$true] %s111_s0 }
  0x1d   :  { %s61_s21 = sshll.u32 %s4247_s18, 4  ;;  %s92_s18 = sshll.u32 %s3138_s17, 4  ;;  %s62_s21 = int_to_ptr.hbm [resolvable:$true] %s61_s21  ;;  %s93_s18 = int_to_ptr.vmem [resolvable:$true] %s92_s18 }
  0x1e   :  { %69 = dma.hbm_to_vmem [thread:$0]  %s62_s21, 128, %s64_s30, [#allocation13], %s4249_s6, %s4249_s6, %s4248_s24  }
  0x1f   :  { %95 = dma.hbm_to_vmem [thread:$0]  %s91_s29, 32, %s93_s18, [#allocation16]  }
  0x20   :  { %s134_s5 = sshll.u32 %s4226_s13, 4  ;;  %s3139_s20 = smov [#allocation20]   ;;  %s135_s5 = int_to_ptr.hbm [resolvable:$true] %s134_s5 }
  0x21   :  { %s113_s23 = sshll.u32 %s3139_s20, 4  ;;  %s3140_s21 = smov [#allocation21]   ;;  %s114_s23 = int_to_ptr.vmem [resolvable:$true] %s113_s23 }
  0x22   :  { %119 = dma.hbm_to_vmem [thread:$0]  %s112_s0, 512, %s114_s23, [#allocation19], %s3133_s25, %s3133_s25, %s3134_s26  }
  0x23   :  { %s136_s27 = sshll.u32 %s3140_s21, 4  ;;  %s137_s27 = int_to_ptr.vmem [resolvable:$true] %s136_s27 }
  0x24   :  { %142 = dma.hbm_to_vmem [thread:$0]  %s135_s5, 1536, %s137_s27, [#allocation22], %s3133_s25, %s3133_s25, %s3134_s26  }
  0x25   :  { %3115 = dma.done.wait [#allocation10], 128  }
  0x26   :  { %3116 = vsyncadd [#allocation10], 4294967168 }
  0x27   :  { %3117 = dma.done.wait [#allocation13], 256  }
  0x28   :  { %3118 = vsyncadd [#allocation13], 4294967040 }
  0x29   :  { %3119 = dma.done.wait [#allocation16], 288  }
  0x2a   :  { %3120 = vsyncadd [#allocation16], 4294967008 }
  0x2b   :  { %3121 = dma.done.wait [#allocation19], 640  }
  0x2c   :  { %3122 = vsyncadd [#allocation19], 4294966656 }
  0x2d   :  { %3123 = dma.done.wait [#allocation22], 1536  }
  0x2e   :  { %3124 = vsyncadd [#allocation22], 4294965760  ;;  %vm209_vm0 = vcmask 64512   ;;  %v3286_v0 = vld [vmem:[#allocation18] sm:$0xff]  ;;  %v207_v1 = vld [vmem:[#allocation9] sm:$0x3]  ;;  %v401_v60 = vlaneseq }
  0x2f   :  { %v3288_v2 = vld [vmem:[#allocation20 + $0x18] sm:$0xff]  ;;  %228 = vmatpush.msra.mxu0 %v3286_v0  ;;  %v3293_v3 = vld [vmem:[#allocation20 + $0x10] sm:$0xff]  ;;  %v3296_v4 = vld [vmem:[#allocation20 + $0x8] sm:$0xff]  ;;  %vm4236_vm1 = vcmask 254976   ;;  %v3141_v6 = vmov 0.0   ;;  %s3142_s19 = smov 64  }
  0x30   :  { %256 = vmatpush.msra.mxu1 %v3288_v2  ;;  %2654 = vmatmul.msk.f32.vlgmr.msra.gmra.mxu0 %vm209_vm0, %v207_v1  ;;  %v3299_v5 = vld [vmem:[#allocation20] sm:$0xff]  ;;  %193 = vst.msk [vmem:[#allocation8] sm:$0x3] %vm4236_vm1, %v3141_v6  ;;  %v289_v7 = vld [vmem:[%s4221_s8 + $0x58] sm:$0xff]  ;;  %v288_v8 = vld [vmem:[%s4221_s8 + $0x50] sm:$0xff]  ;;  %vm240_vm2 = vcmask 261120  }
  0x31   :  { %186 = vst.msk [vmem:[#allocation2] sm:$0x3] %vm4236_vm1, %v3141_v6  ;;  %302 = vmatpush.msra.mxu2 %v289_v7  ;;  %v287_v9 = vld [vmem:[%s4221_s8 + $0x48] sm:$0xff]  ;;  %v286_v10 = vld [vmem:[%s4221_s8 + $0x40] sm:$0xff]  ;;  %v285_v11 = vld [vmem:[%s4221_s8 + $0x38] sm:$0xff]  ;;  %vm276_vm3 = vcmask 523264  }
  0x32   :  { %257 = vmatpush.msra.mxu1 %v3293_v3  ;;  %187 = vst.msk [vmem:[#allocation3] sm:$0x3] %vm4236_vm1, %v3141_v6  ;;  %v284_v13 = vld [vmem:[%s4221_s8 + $0x30] sm:$0xff]  ;;  %v283_v14 = vld [vmem:[%s4221_s8 + $0x28] sm:$0xff]  ;;  %v282_v20 = vld [vmem:[%s4221_s8 + $0x20] sm:$0xff]  ;;  %vm294_vm4 = vcmask 785408  }
  0x33   :  { %188 = vst.msk [vmem:[#allocation4] sm:$0x3] %vm4236_vm1, %v3141_v6  ;;  %303 = vmatpush.msra.mxu2 %v288_v8  ;;  %v234_v17 = vld [vmem:[#allocation12] sm:$0x3]  ;;  %v281_v21 = vld [vmem:[%s4221_s8 + $0x18] sm:$0xff]  ;;  %v279_v23 = vld [vmem:[%s4221_s8 + $0x8] sm:$0xff] }
  0x34   :  { %258 = vmatpush.msra.mxu1 %v3296_v4  ;;  %189 = vst.msk [vmem:[#allocation5] sm:$0x3] %vm4236_vm1, %v3141_v6  ;;  %v280_v22 = vld [vmem:[%s4221_s8 + $0x10] sm:$0xff]  ;;  %v278_v24 = vld [vmem:[%s4221_s8] sm:$0xff]  ;;  %v265_v27 = vld [vmem:[#allocation14] sm:$0x3] }
  0x35   :  { %304 = vmatpush.msra.mxu2 %v287_v9  ;;  %v2746_v33 = vld [vmem:[%s4222_s9] ss:$0 sm:$0xff]  ;;  %vm190_vm9 = vcmask 58368   ;;  %s3143_s30 = smov 1   ;;  %s3144_s17 = smov 127   ;;  %v3376_v61 = vshrl.u32 %v401_v60, 7 }
  0x36   :  { %259 = vmatpush.msra.mxu1 %v3299_v5  ;;  %191 = vst.msk [vmem:[#allocation6] sm:$0x3] %vm190_vm9, %v3141_v6  ;;  %vm392_vm10 = vcmask 7168   ;;  %vm4238_vm11 = vcmask 56320   ;;  %vm4237_vm12 = vcmask 130048   ;;  %vm582_vm13 = vcmask 1041409  }
  0x37   :  { %v206_v12 = vld [vmem:[#allocation8] sm:$0x3]  ;;  %305 = vmatpush.msra.mxu2 %v286_v10  ;;  %192 = vst.msk [vmem:[#allocation7] sm:$0x3] %vm190_vm9, %v3141_v6  ;;  %2724 = vset.pattern.permute.xlu1 %v3376_v61  ;;  %s3146_s0 = smov 96   ;;  %s4267_s1 = sld [smem:[#allocation37_spill]] }
  0x38   :  { %268 = vrot.lane.b32.xlu0 %v206_v12, %s4249_s6  ;;  %v200_v15 = vld [vmem:[#allocation2] sm:$0x3]  ;;  %2722 = vset.pattern.permute.xlu2 %v3376_v61  ;;  %s3148_s4 = smov [#allocation23]   ;;  %s4268_s5 = sld [smem:[#allocation36_spill]] }
  0x39   :  { %306 = vmatpush.msra.mxu2 %v285_v11  ;;  %v201_v37 = vld [vmem:[#allocation3] sm:$0x3]  ;;  %2723 = vset.pattern.permute.xlu0 %v3376_v61  ;;  %s2617_s22 = sshll.u32 %s3148_s4, 4  ;;  %s2618_s22 = int_to_ptr.vmem [resolvable:$true] %s2617_s22 }
  0x3a   :  { %v3406_v12 = vld [vmem:[%s4223_s10] sm:$0xff] }
  0x3b   :  { %307 = vmatpush.msra.mxu2 %v284_v13 }
  0x3d   :  { %308 = vmatpush.msra.mxu2 %v283_v14  ;;  %v204_v53 = vld [vmem:[#allocation6] sm:$0x3] }
  0x3e   :  { %v3365_v54 = vld [vmem:[#allocation7] sm:$0x3]  ;;  %s2619_s20 = sshll.u32 %s4268_s5, 4  ;;  %s2620_s20 = int_to_ptr.hbm [resolvable:$true] %s2619_s20 }
  0x3f   :  { %309 = vmatpush.msra.mxu2 %v282_v20 }
  0x40   :  { %272 = vrot.lane.b32.xlu0 %v200_v15, %s3142_s19 }
  0x41   :  { %310 = vmatpush.msra.mxu2 %v281_v21 }
  0x43   :  { %311 = vmatpush.msra.mxu2 %v280_v22 }
  0x45   :  { %312 = vmatpush.msra.mxu2 %v279_v23 }
  0x47   :  { %313 = vmatpush.msra.mxu2 %v278_v24 }
  0x49   :  { %933 = vmatpush.msrb.mxu2 %v289_v7 }
  0x4b   :  { %934 = vmatpush.msrb.mxu2 %v288_v8  ;;  %v3389_v8 = vld [vmem:[%s4223_s10 + $0x18] sm:$0xff] }
  0x4c   :  { %380 = vmatpush.msra.mxu3 %v3389_v8 }
  0x4d   :  { %935 = vmatpush.msrb.mxu2 %v287_v9  ;;  %v3394_v9 = vld [vmem:[%s4223_s10 + $0x10] sm:$0xff] }
  0x4e   :  { %381 = vmatpush.msra.mxu3 %v3394_v9 }
  0x4f   :  { %936 = vmatpush.msrb.mxu2 %v286_v10  ;;  %v3400_v10 = vld [vmem:[%s4223_s10 + $0x8] sm:$0xff] }
  0x50   :  { %382 = vmatpush.msra.mxu3 %v3400_v10 }
  0x51   :  { %937 = vmatpush.msrb.mxu2 %v285_v11 }
  0x52   :  { %383 = vmatpush.msra.mxu3 %v3406_v12 }
  0x53   :  { %938 = vmatpush.msrb.mxu2 %v284_v13 }
  0x55   :  { %939 = vmatpush.msrb.mxu2 %v283_v14 }
  0x57   :  { %940 = vmatpush.msrb.mxu2 %v282_v20  ;;  %v466_v20 = vperm.slane %v3365_v54, 1 }
  0x59   :  { %941 = vmatpush.msrb.mxu2 %v281_v21 }
  0x5b   :  { %942 = vmatpush.msrb.mxu2 %v280_v22 }
  0x5d   :  { %943 = vmatpush.msrb.mxu2 %v279_v23 }
  0x5f   :  { %944 = vmatpush.msrb.mxu2 %v278_v24 }
  0xaa   :  { %v269_v25 = vpop.permute.xlu0 %268 }
  0xad   :  { %v230_v16 = vpop.f32.mrf.mxu0 }
  0xae   :  { %v233_v18 = vmax.f32 %v230_v16, 0.0 }
  0xb0   :  { %v235_v19 = vmul.f32 %v234_v17, %v233_v18  ;;  %v440_v17 = vperm.slane %v204_v53, 0  ;;  %v447_v18 = vperm.slane %v204_v53, 1 }
  0xb2   :  { %2655 = vmatmul.msk.f32.vlgmr.msra.gmra.mxu1 %vm240_vm2, %v235_v19  ;;  %v273_v30 = vpop.permute.xlu0 %272  ;;  %v459_v19 = vperm.slane %v3365_v54, 0 }
 0x12f   :  { %v261_v26 = vpop.f32.mrf.mxu1 }
 0x130   :  { %v264_v28 = vmax.f32 %v261_v26, 0.0 }
 0x132   :  { %v266_v29 = vmul.f32 %v265_v27, %v264_v28 }
 0x134   :  { %v275_v31 = vsel %vm240_vm2, %v266_v29, %v269_v25 }
 0x135   :  { %v277_v32 = vsel %vm276_vm3, %v275_v31, %v273_v30  ;;  %v198_v30 = vld [vmem:[#allocation17] sm:$0x3] }
 0x136   :  { %2656 = vmatmul.msk.f32.vlgmr.msra.gmra.mxu2 %vm294_vm4, %v277_v32  ;;  %v552_v31 = vperm.slane %v198_v30, 0  ;;  %v559_v32 = vperm.slane %v198_v30, 1 }
 0x1b9   :  { %v315_v34 = vpop.f32.mrf.mxu2 }
 0x1ba   :  { %v316_v35 = vadd.f32 %v2746_v33, %v315_v34 }
 0x1bc   :  { %2759 = vtanh.f32 %v316_v35  ;;  %v2657_v38 = vmul.f32 -1.442695, %v316_v35 }
 0x1be   :  { %2761 = vpow2.f32 %v2657_v38 }
 0x1c2   :  { %v2760_v36 = vpop.eup %2759 }
 0x1c3   :  { %344 = vrot.lane.b32.xlu1 %v2760_v36, %s3142_s19 }
 0x1c4   :  { %v2762_v39 = vpop.eup %2761 }
 0x1c5   :  { %v321_v40 = vadd.f32 1.0, %v2762_v39 }
 0x1c7   :  { %2763 = vrcp.f32 %v321_v40  ;;  %v333_v46 = vand.u32 2147483648, %v321_v40  ;;  %vm327_vm6 = vweird.f32 %v321_v40  ;;  %v331_v47 = vand.u32 2147483647, %v321_v40 }
 0x1c9   :  { %v334_v49 = vor.u32 1.1754944e-38, %v333_v46  ;;  %vm332_vm8 = vcmp.eq.f32.partialorder %v331_v47, 8.507059e+37 }
 0x1cb   :  { %339 = vrot.lane.b32.xlu1 %v201_v37, %s4249_s6  ;;  %v399_v37 = vld [vmem:[%s4225_s12] sm:$0x3] }
 0x1cd   :  { %v2764_v41 = vpop.eup %2763 }
 0x1ce   :  { %v323_v42 = vmul.f32 %v2764_v41, %v321_v40  ;;  %vm328_vm5 = vweird.f32 %v2764_v41  ;;  %v414_v40 = vperm.slane %v399_v37, 0 }
 0x1cf   :  { %vm329_vm7 = vmor %vm327_vm6, %vm328_vm5 }
 0x1d0   :  { %v324_v43 = vsub.f32 1.0, %v323_v42  ;;  %v2659_v42 = vld [vmem:[%s4225_s12 + $0x2] sm:$0x3] }
 0x1d1   :  { %v454_v46 = vperm.slane %v2659_v42, 0 }
 0x1d2   :  { %v325_v44 = vmul.f32 %v2764_v41, %v324_v43 }
 0x1d3   :  { %389 = vrot.lane.b32.xlu1 %v204_v53, %s3143_s30 }
 0x1d4   :  { %v326_v45 = vadd.f32 %v2764_v41, %v325_v44 }
 0x1d6   :  { %v330_v48 = vsel %vm329_vm7, %v2764_v41, %v326_v45  ;;  %v433_v41 = vperm.slane %v399_v37, 1  ;;  %v3438_v37 = vld [vmem:[%s4224_s11] ss:$0 sm:$0xff] }
 0x1d7   :  { %v335_v51 = vsel %vm332_vm8, %v334_v49, %v330_v48 }
 0x1db   :  { %483 = vrot.lane.b32.xlu1 %v3365_v54, %s3144_s17 }
 0x235   :  { %v345_v50 = vpop.permute.xlu1 %344 }
 0x236   :  { %v347_v52 = vmul.f32 %v345_v50, %v335_v51  ;;  %v2660_v50 = vld [vmem:[%s4225_s12 + $0x4] sm:$0x3] }
 0x238   :  { %349 = vrot.lane.b32.xlu2 %v347_v52, %s4249_s6 }
 0x23d   :  { %v340_v55 = vpop.permute.xlu1 %339 }
 0x23e   :  { %v342_v56 = vmul.f32 %v340_v55, %v335_v51 }
 0x245   :  { %v390_v1 = vpop.permute.xlu1 %389 }
 0x246   :  { %v393_v6 = vsel %vm392_vm10, 0.0, %v390_v1 }
 0x247   :  { %v400_v7 = vperm.slane %v393_v6, 0  ;;  %v407_v16 = vperm.slane %v393_v6, 1 }
 0x24d   :  { %v484_v21 = vpop.permute.xlu1 %483 }
 0x24e   :  { %v486_v22 = vsel %vm4238_vm11, %v484_v21, 0.0 }
 0x24f   :  { %v508_v23 = vperm.slane %v486_v22, 0  ;;  %v515_v29 = vperm.slane %v486_v22, 1 }
 0x292   :  { %v350_v57 = vpop.permute.xlu2 %349 }
 0x293   :  { %v3369_v58 = vadd.f32 %v350_v57, %v342_v56  ;;  %v473_v57 = vperm.slane %v2659_v42, 1 }
 0x295   :  { %2765 = vtanh.f32 %v3369_v58 }
 0x29b   :  { %v2766_v59 = vpop.eup %2765 }
 0x29c   :  { %355 = vrot.lane.b32.xlu2 %v2766_v59, %s3142_s19  ;;  %v503_v59 = vperm.slane %v2660_v50, 0 }
 0x2a4   :  { %395 = vrot.lane.b32.xlu2 %v3365_v54, %s3143_s30 }
 0x2ac   :  { %405 = vperm.xlu2 %2722, %v400_v7  }
 0x2f6   :  { %v356_v62 = vpop.permute.xlu2 %355 }
 0x2f7   :  { %v3381_v63 = vmul.f32 %v356_v62, %v335_v51 }
 0x2f9   :  { %364 = vrot.lane.b32.xlu0 %v3381_v63, %s4249_s6 }
 0x2fe   :  { %v396_v11 = vpop.permute.xlu2 %395 }
 0x2ff   :  { %v398_v13 = vsel %vm392_vm10, 0.0, %v396_v11 }
 0x300   :  { %v419_v14 = vperm.slane %v398_v13, 0  ;;  %v426_v15 = vperm.slane %v398_v13, 1  ;;  %v522_v13 = vperm.slane %v2660_v50, 1 }
 0x301   :  { %478 = vrot.lane.b32.xlu0 %v204_v53, %s3144_s17 }
 0x302   :  { %424 = vperm.xlu1 %2724, %v419_v14   ;;  %431 = vperm.xlu2 %2722, %v426_v15  }
 0x306   :  { %v406_v33 = vpop.permute.xlu2 %405 }
 0x307   :  { %v415_v43 = vmul.f32 %v414_v40, %v406_v33  ;;  %v3431_v33 = vld [vmem:[#allocation15 + $0x8] sm:$0xff] }
 0x309   :  { %412 = vperm.xlu0 %2723, %v407_v16  }
 0x30a   :  { %445 = vperm.xlu1 %2724, %v440_v17   ;;  %452 = vperm.xlu2 %2722, %v447_v18  }
 0x311   :  { %464 = vperm.xlu0 %2723, %v459_v19  }
 0x312   :  { %471 = vperm.xlu1 %2724, %v466_v20  }
 0x31a   :  { %513 = vperm.xlu1 %2724, %v508_v23  }
 0x35c   :  { %v432_v35 = vpop.permute.xlu2 %431 }
 0x35d   :  { %v435_v45 = vmul.f32 %v433_v41, %v432_v35 }
 0x364   :  { %v453_v39 = vpop.permute.xlu2 %452 }
 0x365   :  { %v456_v56 = vmul.f32 %v454_v46, %v453_v39 }
 0x36b   :  { %v3415_v24 = vpop.permute.xlu0 %364 }
 0x36c   :  { %2658 = vmatmul.msk.f32.vlgmr.msra.gmra.mxu3 %vm240_vm2, %v3415_v24 }
 0x373   :  { %v479_v25 = vpop.permute.xlu0 %478 }
 0x374   :  { %v482_v26 = vsel %vm4238_vm11, %v479_v25, 0.0  ;;  %v425_v34 = vpop.permute.xlu1 %424 }
 0x375   :  { %v489_v27 = vperm.slane %v482_v26, 0  ;;  %v496_v28 = vperm.slane %v482_v26, 1  ;;  %v434_v44 = vmul.f32 %v433_v41, %v425_v34 }
 0x377   :  { %501 = vperm.xlu0 %2723, %v496_v28   ;;  %494 = vperm.xlu2 %2722, %v489_v27   ;;  %v436_v51 = vadd.f32 %v434_v44, %v415_v43  ;;  %v3145_v44 = vmov 0  }
 0x378   :  { %2727 = vset.pattern.permute.xlu1 %v3145_v44 }
 0x37b   :  { %v413_v38 = vpop.permute.xlu0 %412 }
 0x37c   :  { %v446_v36 = vpop.permute.xlu1 %445  ;;  %v416_v47 = vmul.f32 %v414_v40, %v413_v38 }
 0x37d   :  { %v455_v52 = vmul.f32 %v454_v46, %v446_v36 }
 0x37e   :  { %v437_v55 = vadd.f32 %v435_v45, %v416_v47 }
 0x37f   :  { %520 = vperm.xlu2 %2722, %v515_v29   ;;  %v457_v62 = vadd.f32 %v455_v52, %v436_v51  ;;  %v3429_v29 = vld [vmem:[#allocation15] sm:$0xff]  ;;  %2726 = vset.pattern.permute.xlu0 %v3145_v44  ;;  %v3454_v52 = vand.u32 127, %v401_v60 }
 0x380   :  { %v458_v6 = vadd.f32 %v456_v56, %v437_v55 }
 0x383   :  { %v465_v49 = vpop.permute.xlu0 %464 }
 0x384   :  { %v472_v48 = vpop.permute.xlu1 %471  ;;  %v474_v1 = vmul.f32 %v473_v57, %v465_v49 }
 0x385   :  { %v475_v7 = vmul.f32 %v473_v57, %v472_v48 }
 0x386   :  { %v476_v16 = vadd.f32 %v474_v1, %v457_v62 }
 0x387   :  { %557 = vperm.xlu2 %2722, %v552_v31   ;;  %v477_v18 = vadd.f32 %v475_v7, %v458_v6 }
 0x38c   :  { %v514_v14 = vpop.permute.xlu1 %513 }
 0x38d   :  { %v523_v20 = vmul.f32 %v522_v13, %v514_v14 }
 0x38f   :  { %564 = vperm.xlu2 %2722, %v559_v32  }
 0x397   :  { %2725 = vset.pattern.permute.xlu2 %v3145_v44 }
 0x3d1   :  { %v495_v53 = vpop.permute.xlu2 %494 }
 0x3d2   :  { %v504_v11 = vmul.f32 %v503_v59, %v495_v53 }
 0x3d4   :  { %v506_v19 = vadd.f32 %v504_v11, %v476_v16 }
 0x3d6   :  { %v525_v25 = vadd.f32 %v523_v20, %v506_v19 }
 0x3d9   :  { %v521_v21 = vpop.permute.xlu2 %520 }
 0x3da   :  { %v524_v26 = vmul.f32 %v522_v13, %v521_v21 }
 0x3e1   :  { %v3447_v45 = vpop.permute.xlu2 %557 }
 0x3e9   :  { %v502_v15 = vpop.permute.xlu0 %501  ;;  %v3450_v49 = vpop.permute.xlu2 %564 }
 0x3ea   :  { %v505_v17 = vmul.f32 %v503_v59, %v502_v15 }
 0x3ec   :  { %v507_v22 = vadd.f32 %v505_v17, %v477_v18 }
 0x3ee   :  { %v526_v30 = vadd.f32 %v524_v26, %v507_v22  ;;  %v3468_v22 = vld [vmem:[%s4216_s3 + $0x8] sm:$0xff] }
 0x3ef   :  { %v385_v23 = vpop.f32.mrf.mxu3  ;;  %699 = vmatpush.msrb.mxu1 %v3468_v22 }
 0x3f0   :  { %v528_v27 = vrot.slane %v385_v23, 1  ;;  %v529_v28 = vperm.slane %v385_v23, 0 }
 0x3f1   :  { %865 = vmatpush.msra.mxu1 %v3286_v0 }
 0x3f2   :  { %v530_v31 = vperm.slane %v528_v27, 0  ;;  %v533_v32 = vadd.f32 %v529_v28, %v525_v25 }
 0x3f4   :  { %v534_v34 = vadd.f32 %v530_v31, %v526_v30  ;;  %v535_v35 = vadd.f32 %v533_v32, %v3429_v29 }
 0x3f6   :  { %v536_v36 = vadd.f32 %v534_v34, %v3431_v33  ;;  %2767 = vtanh.f32 %v535_v35 }
 0x3f8   :  { %2769 = vtanh.f32 %v536_v36 }
 0x3fc   :  { %v2768_v38 = vpop.eup %2767 }
 0x3fd   :  { %v542_v39 = vmul.f32 %v2768_v38, %v3438_v37 }
 0x3fe   :  { %v2770_v40 = vpop.eup %2769 }
 0x3ff   :  { %v545_v41 = vsel %vm4237_vm12, %v542_v39, 0.0  ;;  %v543_v42 = vmul.f32 %v2770_v40, %v3438_v37 }
 0x400   :  { %546 = vadd.xlane.f32.xlu0 %v545_v41 }
 0x401   :  { %v548_v43 = vsel %vm4237_vm12, %v543_v42, 0.0 }
 0x402   :  { %549 = vadd.xlane.f32.xlu1 %v548_v43 }
 0x473   :  { %v547_v46 = vpop.xlane.xlu0 %546 }
 0x474   :  { %v568_v47 = vadd.f32 %v3447_v45, %v547_v46 }
 0x475   :  { %v550_v48 = vpop.xlane.xlu1 %549 }
 0x476   :  { %573 = vperm.xlu2 %2725, %v568_v47   ;;  %v569_v50 = vadd.f32 %v3450_v49, %v550_v48 }
 0x47e   :  { %576 = vperm.xlu2 %2725, %v569_v50  }
 0x4d0   :  { %v574_v51 = vpop.permute.xlu2 %573 }
 0x4d1   :  { %v580_v55 = vperm.slane %v574_v51, %v3454_v52 }
 0x4d8   :  { %v577_v53 = vpop.permute.xlu2 %576 }
 0x4d9   :  { %v581_v56 = vperm.slane %v577_v53, %v3454_v52 }
 0x4db   :  { %v583_v57 = vsel %vm582_vm13, %v581_v56, %v580_v55  ;;  %v3477_v56 = vld [vmem:[%s4216_s3] sm:$0xff] }
 0x4dc   :  { %v586_v59 = vsel %vm190_vm9, %v583_v57, -inf  ;;  %v203_v57 = vld [vmem:[#allocation5] sm:$0x3]  ;;  %672 = vmatpush.msrb.mxu0 %v3477_v56  ;;  %1845 = vmatpush.msra.mxu2 %v3477_v56 }
 0x4dd   :  { %587 = vmax.xlane.f32.xlu2 %v586_v59 }
 0x550   :  { %v588_v62 = vpop.xlane.xlu2 %587 }
 0x551   :  { %v590_v1 = vperm.slane %v588_v62, 0  ;;  %v591_v6 = vperm.slane %v588_v62, 1 }
 0x553   :  { %v594_v7 = vsub.f32 %v568_v47, %v590_v1  ;;  %v595_v11 = vsub.f32 %v569_v50, %v591_v6  ;;  %v845_v1 = vld [vmem:[#allocation9 + $0x2] sm:$0x3]  ;;  %v3494_v6 = vadd.s32 4294967295, %v3454_v52 }
 0x555   :  { %v596_v13 = vmul.f32 1.442695, %v594_v7  ;;  %v598_v14 = vmul.f32 1.442695, %v595_v11 }
 0x557   :  { %2771 = vpow2.f32 %v596_v13 }
 0x558   :  { %2773 = vpow2.f32 %v598_v14 }
 0x55d   :  { %v2772_v60 = vpop.eup %2771 }
 0x55e   :  { %v2774_v15 = vpop.eup %2773  ;;  %603 = vperm.xlu0 %2726, %v2772_v60  }
 0x55f   :  { %606 = vperm.xlu1 %2727, %v2774_v15  }
 0x567   :  { %2729 = vset.pattern.permute.xlu1 %v3376_v61 }
 0x5d0   :  { %v604_v16 = vpop.permute.xlu0 %603 }
 0x5d1   :  { %v607_v17 = vpop.permute.xlu1 %606  ;;  %v608_v18 = vperm.slane %v604_v16, %v3454_v52  ;;  %v202_v16 = vld [vmem:[#allocation4] sm:$0x3] }
 0x5d2   :  { %v609_v19 = vperm.slane %v607_v17, %v3454_v52  ;;  %v3517_v17 = vld [vmem:[#allocation21 + $0x58] sm:$0xff] }
 0x5d3   :  { %744 = vmatpush.msrb.mxu3 %v3517_v17 }
 0x5d4   :  { %v610_v20 = vsel %vm582_vm13, %v609_v19, %v608_v18  ;;  %v3519_v18 = vld [vmem:[#allocation21 + $0x50] sm:$0xff] }
 0x5d5   :  { %v612_v21 = vsel %vm190_vm9, %v610_v20, 0.0  ;;  %745 = vmatpush.msrb.mxu3 %v3519_v18  ;;  %v3528_v20 = vld [vmem:[#allocation21 + $0x40] sm:$0xff] }
 0x5d6   :  { %613 = vadd.xlane.f32.xlu1 %v612_v21  ;;  %v3531_v21 = vld [vmem:[#allocation21 + $0x38] sm:$0xff] }
 0x5ef   :  { %781 = vrot.lane.b32.xlu1 %v203_v57, %s4249_s6 }
 0x649   :  { %v614_v23 = vpop.xlane.xlu1 %613 }
 0x64a   :  { %v616_v25 = vperm.slane %v614_v23, 0  ;;  %v617_v26 = vperm.slane %v614_v23, 1 }
 0x64c   :  { %2775 = vrcp.f32 %v616_v25  ;;  %v631_v35 = vand.u32 2147483648, %v616_v25  ;;  %v646_v36 = vand.u32 2147483648, %v617_v26  ;;  %v629_v39 = vand.u32 2147483647, %v616_v25 }
 0x64d   :  { %2777 = vrcp.f32 %v617_v26  ;;  %v644_v41 = vand.u32 2147483647, %v617_v26  ;;  %vm625_vm5 = vweird.f32 %v616_v25  ;;  %vm640_vm6 = vweird.f32 %v617_v26 }
 0x64e   :  { %v632_v43 = vor.u32 1.1754944e-38, %v631_v35  ;;  %v647_v46 = vor.u32 1.1754944e-38, %v646_v36  ;;  %vm630_vm1 = vcmp.eq.f32.partialorder %v629_v39, 8.507059e+37 }
 0x64f   :  { %vm645_vm12 = vcmp.eq.f32.partialorder %v644_v41, 8.507059e+37 }
 0x652   :  { %v2776_v27 = vpop.eup %2775 }
 0x653   :  { %v2778_v28 = vpop.eup %2777  ;;  %v621_v30 = vmul.f32 %v2776_v27, %v616_v25  ;;  %vm626_vm14 = vweird.f32 %v2776_v27  ;;  %v872_v25 = vld [vmem:[#allocation12 + $0x2] sm:$0x3] }
 0x654   :  { %v636_v31 = vmul.f32 %v2778_v28, %v617_v26  ;;  %vm641_vm15 = vweird.f32 %v2778_v28  ;;  %vm627_vm7 = vmor %vm625_vm5, %vm626_vm14 }
 0x655   :  { %v622_v32 = vsub.f32 1.0, %v621_v30  ;;  %vm642_vm8 = vmor %vm640_vm6, %vm641_vm15  ;;  %v3537_v30 = vld [vmem:[#allocation21 + $0x28] sm:$0xff] }
 0x656   :  { %v637_v34 = vsub.f32 1.0, %v636_v31  ;;  %v3541_v31 = vadd.s32 1, %v3454_v52 }
 0x657   :  { %v623_v38 = vmul.f32 %v2776_v27, %v622_v32  ;;  %v3544_v32 = vld [vmem:[#allocation21 + $0x20] sm:$0xff] }
 0x658   :  { %v638_v40 = vmul.f32 %v2778_v28, %v637_v34 }
 0x659   :  { %v624_v0 = vadd.f32 %v2776_v27, %v623_v38 }
 0x65a   :  { %v639_v42 = vadd.f32 %v2778_v28, %v638_v40 }
 0x65b   :  { %v628_v47 = vsel %vm627_vm7, %v2776_v27, %v624_v0  ;;  %v3534_v27 = vld [vmem:[#allocation21 + $0x30] sm:$0xff] }
 0x65c   :  { %v643_v48 = vsel %vm642_vm8, %v2778_v28, %v639_v42  ;;  %v633_v50 = vsel %vm630_vm1, %v632_v43, %v628_v47  ;;  %vm4239_vm1 = vcmask 1042434   ;;  %v3565_v47 = vld [vmem:[#allocation21 + $0x18] sm:$0xff] }
 0x65d   :  { %v648_v51 = vsel %vm645_vm12, %v647_v46, %v643_v48  ;;  %v634_v53 = vmul.f32 %v2772_v60, %v633_v50  ;;  %v3568_v48 = vld [vmem:[#allocation21 + $0x10] sm:$0xff]  ;;  %v3571_v50 = vld [vmem:[#allocation21 + $0x8] sm:$0xff] }
 0x65e   :  { %v649_v55 = vmul.f32 %v2774_v15, %v648_v51  ;;  %v3574_v51 = vld [vmem:[#allocation21] sm:$0xff] }
 0x65f   :  { %652 = vperm.xlu0 %2726, %v634_v53  }
 0x660   :  { %679 = vperm.xlu2 %2725, %v649_v55  }
 0x661   :  { %v3526_v19 = vpop.permute.xlu1 %781 }
 0x667   :  { %2728 = vset.pattern.permute.xlu0 %v3376_v61 }
 0x668   :  { %2730 = vset.pattern.permute.xlu2 %v3376_v61 }
 0x669   :  { %716 = vrot.lane.b32.xlu2 %v202_v16, %s3142_s19 }
 0x6ba   :  { %v3482_v59 = vpop.permute.xlu2 %679 }
 0x6bb   :  { %v681_v62 = vperm.slane %v3482_v59, %v3454_v52  ;;  %v1094_v38 = vperm.slane %v3482_v59, %v3541_v31 }
 0x6bd   :  { %2662 = vmatmul.msk.f32.vlgmr.msrb.gmra.mxu1 %vm209_vm0, %v681_v62 }
 0x6be   :  { %893 = vmatpush.msrb.mxu1 %v3288_v2 }
 0x6c0   :  { %894 = vmatpush.msrb.mxu1 %v3293_v3 }
 0x6c2   :  { %895 = vmatpush.msrb.mxu1 %v3296_v4  ;;  %v1017_v4 = vperm.slane %v3482_v59, %v3494_v6 }
 0x6c4   :  { %896 = vmatpush.msrb.mxu1 %v3299_v5 }
 0x6c5   :  { %2666 = vmatmul.msk.f32.vlgmr.msra.gmra.mxu1 %vm209_vm0, %v845_v1 }
 0x6c6   :  { %1262 = vmatpush.msra.mxu1 %v3477_v56 }
 0x6d1   :  { %v3496_v7 = vpop.permute.xlu0 %652 }
 0x6d2   :  { %v654_v11 = vperm.slane %v3496_v7, %v3454_v52  ;;  %v1016_v2 = vperm.slane %v3496_v7, %v3494_v6  ;;  %v1093_v34 = vperm.slane %v3496_v7, %v3541_v31 }
 0x6d4   :  { %v704_v3 = vsel %vm582_vm13, %v681_v62, %v654_v11  ;;  %2661 = vmatmul.msk.f32.vlgmr.msrb.gmra.mxu0 %vm209_vm0, %v654_v11  ;;  %v1018_v13 = vsel %vm582_vm13, %v1017_v4, %v1016_v2  ;;  %v1096_v40 = vsel %vm4239_vm1, %v1094_v38, %v1093_v34  ;;  %v903_v62 = vld [vmem:[#allocation14 + $0x2] sm:$0x3] }
 0x6d5   :  { %v3507_v5 = vadd.f32 %v704_v3, %v3365_v54  ;;  %843 = vst.msk [vmem:[#allocation24] sm:$0x3] %vm190_vm9, %v704_v3  ;;  %v3514_v14 = vsel %vm392_vm10, 0.0, %v1018_v13  ;;  %v3523_v54 = vld [vmem:[#allocation21 + $0x48] sm:$0xff]  ;;  %v3558_v0 = vsel %vm4238_vm11, %v1096_v40, 0.0 }
 0x6d6   :  { %v1034_v60 = vperm.slane %v3514_v14, 1  ;;  %746 = vmatpush.msrb.mxu3 %v3523_v54  ;;  %v1104_v46 = vperm.slane %v3558_v0, 1 }
 0x6d7   :  { %1022 = vrot.lane.b32.xlu1 %v3507_v5, %s3143_s30 }
 0x6d8   :  { %747 = vmatpush.msrb.mxu3 %v3528_v20 }
 0x6da   :  { %748 = vmatpush.msrb.mxu3 %v3531_v21 }
 0x6dc   :  { %749 = vmatpush.msrb.mxu3 %v3534_v27 }
 0x6de   :  { %750 = vmatpush.msrb.mxu3 %v3537_v30 }
 0x6df   :  { %1039 = vperm.xlu1 %2729, %v1034_v60   ;;  %v2748_v60 = vld [vmem:[%s4227_s14] ss:$0 sm:$0xff] }
 0x6e0   :  { %751 = vmatpush.msrb.mxu3 %v3544_v32 }
 0x6e2   :  { %752 = vmatpush.msrb.mxu3 %v3565_v47 }
 0x6e4   :  { %753 = vmatpush.msrb.mxu3 %v3568_v48 }
 0x6e6   :  { %754 = vmatpush.msrb.mxu3 %v3571_v50 }
 0x6e8   :  { %755 = vmatpush.msrb.mxu3 %v3574_v51 }
 0x6ea   :  { %1289 = vmatpush.msra.mxu3 %v3468_v22 }
 0x73a   :  { %v701_v15 = vpop.f32.mrf.mxu1 }
 0x73b   :  { %v710_v41 = vrot.slane %v701_v15, 7 }
 0x742   :  { %v867_v23 = vpop.f32.mrf.mxu1 }
 0x743   :  { %v870_v26 = vmax.f32 %v867_v23, 0.0 }
 0x745   :  { %v873_v28 = vmul.f32 %v872_v25, %v870_v26 }
 0x747   :  { %2667 = vmatmul.msk.f32.vlgmr.msrb.gmra.mxu1 %vm240_vm2, %v873_v28 }
 0x749   :  { %v1023_v35 = vpop.permute.xlu1 %1022 }
 0x74a   :  { %v3550_v36 = vsel %vm392_vm10, 0.0, %v1023_v35 }
 0x74b   :  { %v1053_v39 = vperm.slane %v3550_v36, 1 }
 0x74d   :  { %1058 = vperm.xlu1 %2729, %v1053_v39  }
 0x751   :  { %v674_v42 = vpop.f32.mrf.mxu0 }
 0x752   :  { %v711_v43 = vsel %vm582_vm13, %v710_v41, %v674_v42 }
 0x753   :  { %712 = vrot.lane.b32.xlu0 %v711_v43, %s4249_s6 }
 0x755   :  { %1109 = vperm.xlu1 %2729, %v1104_v46  }
 0x75b   :  { %905 = vrot.lane.b32.xlu0 %v3381_v63, %s3146_s0  ;;  %v717_v63 = vpop.permute.xlu2 %716 }
 0x7c4   :  { %v898_v53 = vpop.f32.mrf.mxu1 }
 0x7c5   :  { %v901_v55 = vmax.f32 %v898_v53, 0.0  ;;  %v3578_v57 = vpop.permute.xlu0 %712 }
 0x7c6   :  { %v719_v1 = vsel %vm240_vm2, %v3415_v24, %v3578_v57  ;;  %v2749_v24 = vld [vmem:[%s4222_s9] ss:$0 sm:$0xff] }
 0x7c7   :  { %v720_v11 = vsel %vm276_vm3, %v719_v1, %v717_v63  ;;  %v904_v2 = vmul.f32 %v903_v62, %v901_v55 }
 0x7c8   :  { %2663 = vmatmul.msk.f32.vlgmr.msrb.gmra.mxu3 %vm294_vm4, %v720_v11 }
 0x7c9   :  { %v908_v3 = vsel %vm240_vm2, %v904_v2, %v3578_v57 }
 0x7cd   :  { %v906_v4 = vpop.permute.xlu0 %905 }
 0x7ce   :  { %v909_v13 = vsel %vm276_vm3, %v908_v3, %v906_v4 }
 0x7cf   :  { %2668 = vmatmul.msk.f32.vlgmr.msrb.gmra.mxu2 %vm294_vm4, %v909_v13 }
 0x84b   :  { %v757_v15 = vpop.f32.mrf.mxu3 }
 0x84c   :  { %v758_v16 = vadd.f32 %v2748_v60, %v757_v15 }
 0x84e   :  { %2779 = vtanh.f32 %v758_v16  ;;  %v2664_v34 = vmul.f32 -1.442695, %v758_v16 }
 0x852   :  { %v946_v23 = vpop.f32.mrf.mxu2 }
 0x853   :  { %v947_v25 = vadd.f32 %v2749_v24, %v946_v23 }
 0x854   :  { %v2780_v26 = vpop.eup %2779 }
 0x855   :  { %2781 = vtanh.f32 %v947_v25  ;;  %786 = vrot.lane.b32.xlu2 %v2780_v26, %s3142_s19  ;;  %v2669_v42 = vmul.f32 -1.442695, %v947_v25 }
 0x856   :  { %2783 = vpow2.f32 %v2664_v34 }
 0x85b   :  { %v2782_v28 = vpop.eup %2781 }
 0x85c   :  { %971 = vrot.lane.b32.xlu0 %v2782_v28, %s3142_s19  ;;  %v2784_v35 = vpop.eup %2783 }
 0x85d   :  { %v763_v38 = vadd.f32 1.0, %v2784_v35 }
 0x85f   :  { %2785 = vrcp.f32 %v763_v38  ;;  %v775_v53 = vand.u32 2147483648, %v763_v38  ;;  %vm769_vm14 = vweird.f32 %v763_v38  ;;  %v773_v63 = vand.u32 2147483647, %v763_v38 }
 0x860   :  { %2787 = vpow2.f32 %v2669_v42 }
 0x861   :  { %v776_v1 = vor.u32 1.1754944e-38, %v775_v53  ;;  %vm774_vm5 = vcmp.eq.f32.partialorder %v773_v63, 8.507059e+37 }
 0x865   :  { %v2786_v39 = vpop.eup %2785 }
 0x866   :  { %v765_v40 = vmul.f32 %v2786_v39, %v763_v38  ;;  %vm770_vm12 = vweird.f32 %v2786_v39  ;;  %v2788_v55 = vpop.eup %2787 }
 0x867   :  { %vm771_vm15 = vmor %vm769_vm14, %vm770_vm12  ;;  %v952_v11 = vadd.f32 1.0, %v2788_v55  ;;  %vm841_vm14 = vcmask 66560  }
 0x868   :  { %v766_v41 = vsub.f32 1.0, %v765_v40 }
 0x869   :  { %2789 = vrcp.f32 %v952_v11  ;;  %v964_v23 = vand.u32 2147483648, %v952_v11  ;;  %vm958_vm7 = vweird.f32 %v952_v11  ;;  %v962_v25 = vand.u32 2147483647, %v952_v11 }
 0x86a   :  { %v767_v43 = vmul.f32 %v2786_v39, %v766_v41 }
 0x86b   :  { %v965_v28 = vor.u32 1.1754944e-38, %v964_v23  ;;  %vm963_vm12 = vcmp.eq.f32.partialorder %v962_v25, 8.507059e+37 }
 0x86c   :  { %v768_v46 = vadd.f32 %v2786_v39, %v767_v43 }
 0x86e   :  { %v772_v62 = vsel %vm771_vm15, %v2786_v39, %v768_v46  ;;  %vm4250_vm15 = vcmask 130048  }
 0x86f   :  { %v777_v3 = vsel %vm774_vm5, %v776_v1, %v772_v62  ;;  %v2790_v13 = vpop.eup %2789  ;;  %v1046_v62 = vperm.slane %v3550_v36, 0  ;;  %v1111_v1 = vperm.slane %v3558_v0, 2  ;;  %v811_v36 = vld [vmem:[%s4228_s15 + $0x28] sm:$0xff]  ;;  %v810_v0 = vld [vmem:[%s4228_s15 + $0x20] sm:$0xff]  ;;  %vm4251_vm5 = vmmov %vm4250_vm15 }
 0x870   :  { %v954_v60 = vmul.f32 %v2790_v13, %v952_v11  ;;  %vm959_vm6 = vweird.f32 %v2790_v13  ;;  %v784_v39 = vmul.f32 %v3526_v19, %v777_v3  ;;  %v813_v11 = vld [vmem:[%s4228_s15 + $0x38] sm:$0xff] }
 0x871   :  { %vm960_vm8 = vmor %vm958_vm7, %vm959_vm6  ;;  %829 = vmatpush.msra.mxu0 %v813_v11  ;;  %1414 = vmatpush.msrb.mxu1 %v813_v11 }
 0x872   :  { %v955_v15 = vsub.f32 1.0, %v954_v60  ;;  %v806_v60 = vld [vmem:[%s4228_s15] sm:$0xff] }
 0x874   :  { %v956_v16 = vmul.f32 %v2790_v13, %v955_v15 }
 0x876   :  { %v957_v24 = vadd.f32 %v2790_v13, %v956_v16 }
 0x878   :  { %v961_v26 = vsel %vm960_vm8, %v2790_v13, %v957_v24  ;;  %v807_v13 = vld [vmem:[%s4228_s15 + $0x8] sm:$0xff]  ;;  %v1027_v24 = vperm.slane %v3514_v14, 0 }
 0x879   :  { %v966_v35 = vsel %vm963_vm12, %v965_v28, %v961_v26 }
 0x87a   :  { %v969_v43 = vmul.f32 %v966_v35, %v3369_v58  ;;  %v1073_v58 = vperm.slane %v3507_v5, 0 }
 0x8af   :  { %v787_v2 = vpop.permute.xlu2 %786 }
 0x8b0   :  { %v789_v4 = vmul.f32 %v787_v2, %v777_v3  ;;  %v812_v2 = vld [vmem:[%s4228_s15 + $0x30] sm:$0xff] }
 0x8b1   :  { %830 = vmatpush.msra.mxu0 %v812_v2  ;;  %1415 = vmatpush.msrb.mxu1 %v812_v2 }
 0x8b2   :  { %791 = vrot.lane.b32.xlu2 %v789_v4, %s4249_s6  ;;  %v808_v4 = vld [vmem:[%s4228_s15 + $0x10] sm:$0xff] }
 0x8b3   :  { %831 = vmatpush.msra.mxu0 %v811_v36  ;;  %1416 = vmatpush.msrb.mxu1 %v811_v36 }
 0x8b5   :  { %832 = vmatpush.msra.mxu0 %v810_v0  ;;  %1417 = vmatpush.msrb.mxu1 %v810_v0 }
 0x8ce   :  { %v972_v34 = vpop.permute.xlu0 %971 }
 0x8cf   :  { %v974_v38 = vmul.f32 %v972_v34, %v966_v35 }
 0x8d1   :  { %976 = vrot.lane.b32.xlu0 %v974_v38, %s4249_s6 }
 0x90c   :  { %v792_v40 = vpop.permute.xlu2 %791 }
 0x90d   :  { %v3600_v41 = vadd.f32 %v792_v40, %v784_v39 }
 0x90f   :  { %2791 = vtanh.f32 %v3600_v41 }
 0x915   :  { %v2792_v42 = vpop.eup %2791 }
 0x916   :  { %797 = vrot.lane.b32.xlu2 %v2792_v42, %s3142_s19 }
 0x943   :  { %v977_v46 = vpop.permute.xlu0 %976 }
 0x944   :  { %v3605_v53 = vadd.f32 %v977_v46, %v969_v43  ;;  %v2672_v46 = vld [vmem:[%s4225_s12 + $0x4] sm:$0x3] }
 0x945   :  { %v1137_v2 = vperm.slane %v2672_v46, 1 }
 0x946   :  { %2793 = vtanh.f32 %v3605_v53 }
 0x94c   :  { %v2794_v63 = vpop.eup %2793 }
 0x94d   :  { %982 = vrot.lane.b32.xlu0 %v2794_v63, %s3142_s19 }
 0x970   :  { %v798_v55 = vpop.permute.xlu2 %797 }
 0x971   :  { %v3609_v19 = vmul.f32 %v798_v55, %v777_v3  ;;  %v809_v3 = vld [vmem:[%s4228_s15 + $0x18] sm:$0xff] }
 0x972   :  { %833 = vmatpush.msra.mxu0 %v809_v3  ;;  %1418 = vmatpush.msrb.mxu1 %v809_v3 }
 0x973   :  { %802 = vrot.lane.b32.xlu2 %v3609_v19, %s4249_s6 }
 0x974   :  { %834 = vmatpush.msra.mxu0 %v808_v4  ;;  %1419 = vmatpush.msrb.mxu1 %v808_v4 }
 0x976   :  { %835 = vmatpush.msra.mxu0 %v807_v13  ;;  %1420 = vmatpush.msrb.mxu1 %v807_v13 }
 0x978   :  { %836 = vmatpush.msra.mxu0 %v806_v60  ;;  %1421 = vmatpush.msrb.mxu1 %v806_v60 }
 0x97a   :  { %1007 = vmatpush.msrb.mxu0 %v3389_v8  ;;  %v1080_v8 = vperm.slane %v3507_v5, 1 }
 0x97b   :  { %1099 = vrot.lane.b32.xlu2 %v3507_v5, %s3144_s17 }
 0x97c   :  { %1008 = vmatpush.msrb.mxu0 %v3394_v9 }
 0x97e   :  { %1009 = vmatpush.msrb.mxu0 %v3400_v10 }
 0x980   :  { %1010 = vmatpush.msrb.mxu0 %v3406_v12 }
 0x983   :  { %1051 = vperm.xlu2 %2730, %v1046_v62  }
 0x98b   :  { %1078 = vperm.xlu2 %2730, %v1073_v58   ;;  %v1118_v58 = vperm.slane %v2672_v46, 0 }
 0x993   :  { %1116 = vperm.xlu2 %2730, %v1111_v1  }
 0x99b   :  { %2732 = vset.pattern.permute.xlu2 %v3145_v44 }
 0x9bf   :  { %v983_v15 = vpop.permute.xlu0 %982 }
 0x9c0   :  { %v3647_v16 = vmul.f32 %v983_v15, %v966_v35 }
 0x9c2   :  { %991 = vrot.lane.b32.xlu0 %v3647_v16, %s4249_s6 }
 0x9ca   :  { %1032 = vperm.xlu0 %2728, %v1027_v24  }
 0x9cd   :  { %v803_v23 = vpop.permute.xlu2 %802 }
 0x9ce   :  { %v805_v25 = vsel %vm240_vm2, %v803_v23, %v3578_v57 }
 0x9cf   :  { %2665 = vmatmul.msk.f32.vlgmr.msra.gmra.mxu0 %vm276_vm3, %v805_v25 }
 0x9d0   :  { %1333 = vmatpush.msra.mxu0 %v3517_v17 }
 0x9d2   :  { %1085 = vperm.xlu0 %2728, %v1080_v8   ;;  %1334 = vmatpush.msra.mxu0 %v3519_v18  ;;  %v2750_v18 = vld [vmem:[%s4229_s16] ss:$0 sm:$0xff] }
 0x9d4   :  { %1335 = vmatpush.msra.mxu0 %v3523_v54 }
 0x9d5   :  { %v1100_v9 = vpop.permute.xlu2 %1099 }
 0x9d6   :  { %v1102_v10 = vsel %vm4238_vm11, %v1100_v9, 0.0  ;;  %1336 = vmatpush.msra.mxu0 %v3528_v20 }
 0x9d7   :  { %v1123_v12 = vperm.slane %v1102_v10, 0  ;;  %v1130_v14 = vperm.slane %v1102_v10, 1 }
 0x9d8   :  { %1337 = vmatpush.msra.mxu0 %v3531_v21  ;;  %v1040_v21 = vpop.permute.xlu1 %1039 }
 0x9d9   :  { %1135 = vperm.xlu1 %2729, %v1130_v14  }
 0x9da   :  { %1128 = vperm.xlu0 %2728, %v1123_v12   ;;  %1338 = vmatpush.msra.mxu0 %v3534_v27 }
 0x9dc   :  { %1339 = vmatpush.msra.mxu0 %v3537_v30 }
 0x9dd   :  { %v1052_v30 = vpop.permute.xlu2 %1051 }
 0x9de   :  { %1340 = vmatpush.msra.mxu0 %v3544_v32  ;;  %v1026_v32 = vld [vmem:[%s4225_s12] sm:$0x3] }
 0x9e0   :  { %1341 = vmatpush.msra.mxu0 %v3565_v47  ;;  %v1059_v47 = vpop.permute.xlu1 %1058 }
 0x9e1   :  { %2731 = vset.pattern.permute.xlu1 %v3145_v44 }
 0x9e2   :  { %2733 = vset.pattern.permute.xlu0 %v3145_v44  ;;  %1342 = vmatpush.msra.mxu0 %v3568_v48  ;;  %v1041_v48 = vperm.slane %v1026_v32, 0 }
 0x9e4   :  { %1343 = vmatpush.msra.mxu0 %v3571_v50  ;;  %v1060_v50 = vperm.slane %v1026_v32, 1  ;;  %v1043_v40 = vmul.f32 %v1041_v48, %v1040_v21 }
 0x9e5   :  { %v1079_v28 = vpop.permute.xlu2 %1078 }
 0x9e6   :  { %1344 = vmatpush.msra.mxu0 %v3574_v51  ;;  %v2671_v51 = vld [vmem:[%s4225_s12 + $0x2] sm:$0x3]  ;;  %v1061_v26 = vmul.f32 %v1060_v50, %v1052_v30  ;;  %v1062_v34 = vmul.f32 %v1060_v50, %v1059_v47 }
 0x9e7   :  { %v1068_v35 = vperm.slane %v2671_v51, 0  ;;  %v1087_v42 = vperm.slane %v2671_v51, 1 }
 0x9e8   :  { %v1110_v39 = vpop.permute.xlu1 %1109  ;;  %v1064_v63 = vadd.f32 %v1062_v34, %v1043_v40 }
 0x9e9   :  { %v1069_v43 = vmul.f32 %v1068_v35, %v3496_v7  ;;  %v1070_v62 = vmul.f32 %v1068_v35, %v3482_v59  ;;  %v1088_v1 = vmul.f32 %v1087_v42, %v1079_v28  ;;  %v1119_v60 = vmul.f32 %v1118_v58, %v1110_v39 }
 0x9eb   :  { %v1072_v0 = vadd.f32 %v1070_v62, %v1064_v63 }
 0x9ed   :  { %v1117_v4 = vpop.permute.xlu2 %1116 }
 0x9ee   :  { %v1120_v24 = vmul.f32 %v1118_v58, %v1117_v4 }
 0xa34   :  { %v3671_v17 = vpop.permute.xlu0 %991 }
 0xa35   :  { %2670 = vmatmul.msk.f32.vlgmr.msrb.gmra.mxu0 %vm240_vm2, %v3671_v17 }
 0xa36   :  { %1872 = vmatpush.msrb.mxu0 %v3468_v22 }
 0xa3c   :  { %v1033_v27 = vpop.permute.xlu0 %1032 }
 0xa3d   :  { %v1042_v22 = vmul.f32 %v1041_v48, %v1033_v27 }
 0xa3f   :  { %v1063_v38 = vadd.f32 %v1061_v26, %v1042_v22 }
 0xa41   :  { %v1071_v55 = vadd.f32 %v1069_v43, %v1063_v38 }
 0xa43   :  { %v1090_v3 = vadd.f32 %v1088_v1, %v1071_v55 }
 0xa44   :  { %v1086_v57 = vpop.permute.xlu0 %1085 }
 0xa45   :  { %v1089_v11 = vmul.f32 %v1087_v42, %v1086_v57  ;;  %v1121_v25 = vadd.f32 %v1119_v60, %v1090_v3 }
 0xa47   :  { %v1091_v15 = vadd.f32 %v1089_v11, %v1072_v0 }
 0xa49   :  { %v1122_v9 = vadd.f32 %v1120_v24, %v1091_v15 }
 0xa4b   :  { %v1136_v13 = vpop.permute.xlu1 %1135 }
 0xa4c   :  { %v838_v54 = vpop.f32.mrf.mxu0  ;;  %v1129_v36 = vpop.permute.xlu0 %1128  ;;  %v1139_v23 = vmul.f32 %v1137_v2, %v1136_v13 }
 0xa4d   :  { %v839_v20 = vadd.f32 %v2750_v18, %v838_v54  ;;  %v1138_v7 = vmul.f32 %v1137_v2, %v1129_v36 }
 0xa4e   :  { %v1141_v14 = vadd.f32 %v1139_v23, %v1122_v9 }
 0xa4f   :  { %842 = vst.msk [vmem:[#allocation23] sm:$0x3] %vm841_vm14, %v839_v20  ;;  %v1140_v10 = vadd.f32 %v1138_v7, %v1121_v25 }
 0xab2   :  { %v1012_v8 = vpop.f32.mrf.mxu0 }
 0xab3   :  { %v1143_v12 = vrot.slane %v1012_v8, 1  ;;  %v1144_v59 = vperm.slane %v1012_v8, 0 }
 0xab5   :  { %v1145_v18 = vperm.slane %v1143_v12, 0  ;;  %v1148_v54 = vadd.f32 %v1144_v59, %v1140_v10 }
 0xab7   :  { %v1149_v20 = vadd.f32 %v1145_v18, %v1141_v14  ;;  %v1150_v21 = vadd.f32 %v1148_v54, %v3429_v29 }
 0xab9   :  { %v1151_v27 = vadd.f32 %v1149_v20, %v3431_v33  ;;  %2795 = vtanh.f32 %v1150_v21 }
 0xabb   :  { %2797 = vtanh.f32 %v1151_v27 }
 0xabf   :  { %v2796_v30 = vpop.eup %2795 }
 0xac0   :  { %v1154_v32 = vmul.f32 %v2796_v30, %v3438_v37 }
 0xac1   :  { %v2798_v47 = vpop.eup %2797 }
 0xac2   :  { %v1156_v48 = vsel %vm4250_vm15, %v1154_v32, 0.0  ;;  %v1155_v50 = vmul.f32 %v2798_v47, %v3438_v37 }
 0xac3   :  { %1157 = vadd.xlane.f32.xlu2 %v1156_v48 }
 0xac4   :  { %v1159_v22 = vsel %vm4251_vm5, %v1155_v50, 0.0 }
 0xac5   :  { %1160 = vadd.xlane.f32.xlu0 %v1159_v22 }
 0xb36   :  { %v1158_v51 = vpop.xlane.xlu2 %1157 }
 0xb37   :  { %v1162_v57 = vadd.f32 %v1158_v51, %v3447_v45 }
 0xb38   :  { %v1161_v29 = vpop.xlane.xlu0 %1160 }
 0xb39   :  { %1167 = vperm.xlu1 %2731, %v1162_v57   ;;  %v1163_v33 = vadd.f32 %v1161_v29, %v3450_v49 }
 0xb41   :  { %1170 = vperm.xlu1 %2731, %v1163_v33  }
 0xbab   :  { %v1168_v26 = vpop.permute.xlu1 %1167 }
 0xbac   :  { %v1172_v34 = vperm.slane %v1168_v26, %v3454_v52 }
 0xbb3   :  { %v1171_v28 = vpop.permute.xlu1 %1170 }
 0xbb4   :  { %v1173_v35 = vperm.slane %v1171_v28, %v3454_v52 }
 0xbb6   :  { %v1174_v37 = vsel %vm582_vm13, %v1173_v35, %v1172_v34 }
 0xbb7   :  { %v1176_v38 = vsel %vm190_vm9, %v1174_v37, -inf }
 0xbb8   :  { %1177 = vmax.xlane.f32.xlu1 %v1176_v38 }
 0xc2b   :  { %v1178_v39 = vpop.xlane.xlu1 %1177 }
 0xc2c   :  { %v1180_v40 = vperm.slane %v1178_v39, 0  ;;  %v1181_v42 = vperm.slane %v1178_v39, 1 }
 0xc2e   :  { %v1184_v43 = vsub.f32 %v1162_v57, %v1180_v40  ;;  %v1185_v46 = vsub.f32 %v1163_v33, %v1181_v42 }
 0xc30   :  { %v1186_v63 = vmul.f32 1.442695, %v1184_v43  ;;  %v1188_v55 = vmul.f32 1.442695, %v1185_v46  ;;  %v2751_v43 = vld [vmem:[%s4227_s14] ss:$0 sm:$0xff] }
 0xc32   :  { %2799 = vpow2.f32 %v1186_v63 }
 0xc33   :  { %2801 = vpow2.f32 %v1188_v55 }
 0xc38   :  { %v2800_v62 = vpop.eup %2799 }
 0xc39   :  { %v2802_v58 = vpop.eup %2801  ;;  %1193 = vperm.xlu2 %2732, %v2800_v62  }
 0xc3a   :  { %1196 = vperm.xlu0 %2733, %v2802_v58  }
 0xc42   :  { %2734 = vset.pattern.permute.xlu0 %v3376_v61 }
 0xc93   :  { %v1194_v1 = vpop.permute.xlu2 %1193 }
 0xc94   :  { %v1198_v2 = vperm.slane %v1194_v1, %v3454_v52 }
 0xcac   :  { %v1197_v11 = vpop.permute.xlu0 %1196 }
 0xcad   :  { %v1199_v36 = vperm.slane %v1197_v11, %v3454_v52 }
 0xcaf   :  { %v1200_v0 = vsel %vm582_vm13, %v1199_v36, %v1198_v2 }
 0xcb0   :  { %v1202_v3 = vsel %vm190_vm9, %v1200_v0, 0.0 }
 0xcb1   :  { %1203 = vadd.xlane.f32.xlu1 %v1202_v3 }
 0xd24   :  { %v1204_v4 = vpop.xlane.xlu1 %1203 }
 0xd25   :  { %v1206_v13 = vperm.slane %v1204_v4, 0  ;;  %v1207_v60 = vperm.slane %v1204_v4, 1 }
 0xd27   :  { %2803 = vrcp.f32 %v1206_v13  ;;  %v1221_v9 = vand.u32 2147483648, %v1206_v13  ;;  %v1236_v10 = vand.u32 2147483648, %v1207_v60  ;;  %v1219_v59 = vand.u32 2147483647, %v1206_v13 }
 0xd28   :  { %2805 = vrcp.f32 %v1207_v60  ;;  %v1234_v18 = vand.u32 2147483647, %v1207_v60  ;;  %vm1215_vm8 = vweird.f32 %v1206_v13  ;;  %vm1230_vm12 = vweird.f32 %v1207_v60 }
 0xd29   :  { %v1222_v21 = vor.u32 1.1754944e-38, %v1221_v9  ;;  %v1237_v27 = vor.u32 1.1754944e-38, %v1236_v10  ;;  %vm1220_vm11 = vcmp.eq.f32.partialorder %v1219_v59, 8.507059e+37 }
 0xd2a   :  { %vm1235_vm1 = vcmp.eq.f32.partialorder %v1234_v18, 8.507059e+37  ;;  %v1461_v18 = vld [vmem:[#allocation20 + $0x8] sm:$0xff] }
 0xd2d   :  { %v2804_v15 = vpop.eup %2803 }
 0xd2e   :  { %v2806_v7 = vpop.eup %2805  ;;  %v1211_v24 = vmul.f32 %v2804_v15, %v1206_v13  ;;  %vm1216_vm6 = vweird.f32 %v2804_v15 }
 0xd2f   :  { %v1226_v23 = vmul.f32 %v2806_v7, %v1207_v60  ;;  %vm1231_vm7 = vweird.f32 %v2806_v7  ;;  %vm1217_vm15 = vmor %vm1215_vm8, %vm1216_vm6 }
 0xd30   :  { %v1212_v25 = vsub.f32 1.0, %v1211_v24  ;;  %vm1232_vm5 = vmor %vm1230_vm12, %vm1231_vm7  ;;  %v1432_v24 = vld [vmem:[#allocation18] sm:$0xff] }
 0xd31   :  { %v1227_v8 = vsub.f32 1.0, %v1226_v23  ;;  %v1431_v23 = vld [vmem:[#allocation9 + $0x4] sm:$0x3]  ;;  %1451 = vmatpush.msrb.mxu3 %v1432_v24 }
 0xd32   :  { %v1213_v12 = vmul.f32 %v2804_v15, %v1212_v25 }
 0xd33   :  { %v1228_v14 = vmul.f32 %v2806_v7, %v1227_v8 }
 0xd34   :  { %v1214_v54 = vadd.f32 %v2804_v15, %v1213_v12 }
 0xd35   :  { %v1229_v20 = vadd.f32 %v2806_v7, %v1228_v14  ;;  %v1462_v14 = vld [vmem:[#allocation20 + $0x10] sm:$0xff] }
 0xd36   :  { %v1218_v30 = vsel %vm1217_vm15, %v2804_v15, %v1214_v54  ;;  %v3756_v54 = vld [vmem:[%s4221_s8 + $0x58] sm:$0xff] }
 0xd37   :  { %v1233_v32 = vsel %vm1232_vm5, %v2806_v7, %v1229_v20  ;;  %v1223_v47 = vsel %vm1220_vm11, %v1222_v21, %v1218_v30  ;;  %v3761_v20 = vld [vmem:[%s4221_s8 + $0x50] sm:$0xff]  ;;  %v3767_v21 = vld [vmem:[%s4221_s8 + $0x48] sm:$0xff] }
 0xd38   :  { %v1238_v48 = vsel %vm1235_vm1, %v1237_v27, %v1233_v32  ;;  %v1224_v50 = vmul.f32 %v2800_v62, %v1223_v47  ;;  %v3773_v27 = vld [vmem:[%s4221_s8 + $0x40] sm:$0xff] }
 0xd39   :  { %v1239_v22 = vmul.f32 %v2802_v58, %v1238_v48 }
 0xd3a   :  { %1242 = vperm.xlu1 %2731, %v1224_v50   ;;  %v1458_v50 = vld [vmem:[#allocation12 + $0x4] sm:$0x3] }
 0xd3b   :  { %1269 = vperm.xlu2 %2732, %v1239_v22  }
 0xd42   :  { %2735 = vset.pattern.permute.xlu1 %v3376_v61 }
 0xd43   :  { %2736 = vset.pattern.permute.xlu2 %v3376_v61 }
 0xd95   :  { %v3710_v51 = vpop.permute.xlu2 %1269 }
 0xd96   :  { %v1271_v57 = vperm.slane %v3710_v51, %v3454_v52 }
 0xd98   :  { %2674 = vmatmul.msk.f32.vlgmr.msra.gmra.mxu3 %vm209_vm0, %v1271_v57 }
 0xd99   :  { %1519 = vmatpush.msra.mxu3 %v3756_v54 }
 0xd9b   :  { %1520 = vmatpush.msra.mxu3 %v3761_v20 }
 0xd9d   :  { %1521 = vmatpush.msra.mxu3 %v3767_v21 }
 0xd9f   :  { %1522 = vmatpush.msra.mxu3 %v3773_v27 }
 0xda0   :  { %2678 = vmatmul.msk.f32.vlgmr.msrb.gmra.mxu3 %vm209_vm0, %v1431_v23 }
 0xdac   :  { %v3715_v29 = vpop.permute.xlu1 %1242 }
 0xdad   :  { %v1244_v33 = vperm.slane %v3715_v29, %v3454_v52 }
 0xdaf   :  { %v3720_v26 = vsel %vm582_vm13, %v1271_v57, %v1244_v33  ;;  %2673 = vmatmul.msk.f32.vlgmr.msra.gmra.mxu1 %vm209_vm0, %v1244_v33  ;;  %v3784_v57 = vld [vmem:[%s4221_s8 + $0x38] sm:$0xff]  ;;  %v3790_v33 = vld [vmem:[%s4221_s8 + $0x30] sm:$0xff] }
 0xdb0   :  { %1429 = vst.msk [vmem:[#allocation24 + $0x2] sm:$0x3] %vm190_vm9, %v3720_v26  ;;  %1523 = vmatpush.msra.mxu3 %v3784_v57 }
 0xdb2   :  { %1524 = vmatpush.msra.mxu3 %v3790_v33 }
 0xe1b   :  { %v1291_v28 = vpop.f32.mrf.mxu3 }
 0xe1c   :  { %v1300_v34 = vrot.slane %v1291_v28, 7  ;;  %v3796_v28 = vld [vmem:[%s4221_s8 + $0x28] sm:$0xff] }
 0xe1d   :  { %1525 = vmatpush.msra.mxu3 %v3796_v28 }
 0xe23   :  { %v1453_v30 = vpop.f32.mrf.mxu3 }
 0xe24   :  { %v1456_v48 = vmax.f32 %v1453_v30, 0.0 }
 0xe26   :  { %v1459_v22 = vmul.f32 %v1458_v50, %v1456_v48 }
 0xe2c   :  { %v1264_v35 = vpop.f32.mrf.mxu1 }
 0xe2d   :  { %v1301_v37 = vsel %vm582_vm13, %v1300_v34, %v1264_v35  ;;  %v3801_v34 = vld [vmem:[%s4221_s8 + $0x20] sm:$0xff]  ;;  %v3808_v35 = vld [vmem:[%s4221_s8 + $0x18] sm:$0xff] }
 0xe2e   :  { %1302 = vrot.lane.b32.xlu2 %v1301_v37, %s4249_s6  ;;  %1526 = vmatpush.msra.mxu3 %v3801_v34  ;;  %v3814_v37 = vld [vmem:[%s4221_s8 + $0x10] sm:$0xff] }
 0xe30   :  { %1527 = vmatpush.msra.mxu3 %v3808_v35 }
 0xe32   :  { %1528 = vmatpush.msra.mxu3 %v3814_v37 }
 0xe36   :  { %1305 = vrot.lane.b32.xlu2 %v3609_v19, %s3146_s0 }
 0xe88   :  { %v3729_v38 = vpop.permute.xlu2 %1302 }
 0xe89   :  { %v1308_v39 = vsel %vm240_vm2, %v3671_v17, %v3729_v38 }
 0xe90   :  { %v1306_v40 = vpop.permute.xlu2 %1305 }
 0xe91   :  { %v1309_v42 = vsel %vm276_vm3, %v1308_v39, %v1306_v40  ;;  %v3820_v39 = vld [vmem:[%s4221_s8 + $0x8] sm:$0xff]  ;;  %v3826_v40 = vld [vmem:[%s4221_s8] sm:$0xff] }
 0xe92   :  { %2675 = vmatmul.msk.f32.vlgmr.msra.gmra.mxu0 %vm294_vm4, %v1309_v42  ;;  %1529 = vmatpush.msra.mxu3 %v3820_v39  ;;  %v2752_v42 = vld [vmem:[%s4229_s16] ss:$0 sm:$0xff] }
 0xe93   :  { %2034 = vmatpush.msra.mxu0 %v1432_v24 }
 0xe94   :  { %1530 = vmatpush.msra.mxu3 %v3826_v40 }
 0xf0f   :  { %v1346_v46 = vpop.f32.mrf.mxu0 }
 0xf10   :  { %v1347_v63 = vadd.f32 %v2751_v43, %v1346_v46 }
 0xf12   :  { %2807 = vtanh.f32 %v1347_v63  ;;  %v2676_v19 = vmul.f32 -1.442695, %v1347_v63 }
 0xf14   :  { %2809 = vpow2.f32 %v2676_v19 }
 0xf18   :  { %v2808_v55 = vpop.eup %2807 }
 0xf19   :  { %1371 = vrot.lane.b32.xlu0 %v2808_v55, %s3142_s19  ;;  %v1489_v55 = vld [vmem:[#allocation14 + $0x4] sm:$0x3] }
 0xf1a   :  { %v2810_v62 = vpop.eup %2809 }
 0xf1b   :  { %v1352_v58 = vadd.f32 1.0, %v2810_v62 }
 0xf1d   :  { %2811 = vrcp.f32 %v1352_v58  ;;  %v1364_v0 = vand.u32 2147483648, %v1352_v58  ;;  %vm1358_vm1 = vweird.f32 %v1352_v58  ;;  %v1362_v3 = vand.u32 2147483647, %v1352_v58 }
 0xf1f   :  { %v1365_v13 = vor.u32 1.1754944e-38, %v1364_v0  ;;  %vm1363_vm7 = vcmp.eq.f32.partialorder %v1362_v3, 8.507059e+37 }
 0xf23   :  { %v2812_v17 = vpop.eup %2811 }
 0xf24   :  { %v1354_v1 = vmul.f32 %v2812_v17, %v1352_v58  ;;  %vm1359_vm11 = vweird.f32 %v2812_v17 }
 0xf25   :  { %vm1360_vm6 = vmor %vm1358_vm1, %vm1359_vm11  ;;  %vm4252_vm11 = vcmask 1042434   ;;  %vm4253_vm1 = vcmask 56320  }
 0xf26   :  { %v1355_v11 = vsub.f32 1.0, %v1354_v1 }
 0xf28   :  { %v1356_v2 = vmul.f32 %v2812_v17, %v1355_v11  ;;  %v2753_v11 = vld [vmem:[%s4222_s9] ss:$0 sm:$0xff] }
 0xf2a   :  { %v1357_v36 = vadd.f32 %v2812_v17, %v1356_v2 }
 0xf2c   :  { %v1361_v4 = vsel %vm1360_vm6, %v2812_v17, %v1357_v36  ;;  %vm4254_vm6 = vmmov %vm4253_vm1 }
 0xf2d   :  { %v1366_v15 = vsel %vm1363_vm7, %v1365_v13, %v1361_v4  ;;  %vm4255_vm7 = vcmask 130048  }
 0xf2e   :  { %v1369_v25 = vmul.f32 %v1366_v15, %v3600_v41  ;;  %v1460_v41 = vld [vmem:[#allocation20] sm:$0xff] }
 0xf8b   :  { %v1372_v60 = vpop.permute.xlu0 %1371 }
 0xf8c   :  { %v1374_v7 = vmul.f32 %v1372_v60, %v1366_v15 }
 0xf8e   :  { %1376 = vrot.lane.b32.xlu2 %v1374_v7, %s4249_s6 }
 0xf96   :  { %1491 = vrot.lane.b32.xlu2 %v3647_v16, %s3146_s0  ;;  %v1463_v16 = vld [vmem:[#allocation20 + $0x18] sm:$0xff] }
 0xf97   :  { %1479 = vmatpush.msra.mxu1 %v1463_v16  ;;  %2062 = vmatpush.msrb.mxu3 %v1463_v16 }
 0xf99   :  { %1480 = vmatpush.msra.mxu1 %v1462_v14  ;;  %2063 = vmatpush.msrb.mxu3 %v1462_v14  ;;  %v1601_v14 = vperm.slane %v3715_v29, %v3494_v6 }
 0xf9b   :  { %1481 = vmatpush.msra.mxu1 %v1461_v18  ;;  %2064 = vmatpush.msrb.mxu3 %v1461_v18  ;;  %v1602_v18 = vperm.slane %v3710_v51, %v3494_v6 }
 0xf9d   :  { %1482 = vmatpush.msra.mxu1 %v1460_v41  ;;  %2065 = vmatpush.msrb.mxu3 %v1460_v41  ;;  %v3849_v41 = vadd.f32 %v3720_v26, %v3507_v5  ;;  %v1603_v30 = vsel %vm582_vm13, %v1602_v18, %v1601_v14  ;;  %v1677_v5 = vperm.slane %v3715_v29, %v3541_v31  ;;  %v2683_v18 = vld [vmem:[%s4225_s12 + $0x2] sm:$0x3] }
 0xfe8   :  { %v1377_v8 = vpop.permute.xlu2 %1376 }
 0xfe9   :  { %v3745_v9 = vadd.f32 %v1377_v8, %v1369_v25 }
 0xfeb   :  { %2813 = vtanh.f32 %v3745_v9 }
 0xff0   :  { %v1492_v58 = vpop.permute.xlu2 %1491 }
 0xff1   :  { %v2814_v10 = vpop.eup %2813 }
 0xff2   :  { %1382 = vrot.lane.b32.xlu0 %v2814_v10, %s3142_s19 }
0x1064   :  { %v1383_v12 = vpop.permute.xlu0 %1382 }
0x1065   :  { %v3749_v59 = vmul.f32 %v1383_v12, %v1366_v15 }
0x1067   :  { %1387 = vrot.lane.b32.xlu1 %v3749_v59, %s4249_s6 }
0x10d9   :  { %v1388_v32 = vpop.permute.xlu1 %1387 }
0x10da   :  { %v1390_v47 = vsel %vm240_vm2, %v1388_v32, %v3729_v38  ;;  %v1605_v32 = vsel %vm392_vm10, 0.0, %v1603_v30 }
0x10db   :  { %2677 = vmatmul.msk.f32.vlgmr.msrb.gmra.mxu1 %vm276_vm3, %v1390_v47  ;;  %v1619_v47 = vperm.slane %v1605_v32, 1 }
0x10e3   :  { %2679 = vmatmul.msk.f32.vlgmr.msra.gmra.mxu1 %vm240_vm2, %v1459_v22 }
0x1158   :  { %v1423_v43 = vpop.f32.mrf.mxu1 }
0x1159   :  { %v1424_v46 = vadd.f32 %v2752_v42, %v1423_v43 }
0x115b   :  { %1427 = vst.msk [vmem:[#allocation23 + $0x2] sm:$0x3] %vm841_vm14, %v1424_v46  ;;  %v1678_v46 = vperm.slane %v3710_v51, %v3541_v31 }
0x1160   :  { %v1484_v63 = vpop.f32.mrf.mxu1 }
0x1161   :  { %v1487_v19 = vmax.f32 %v1484_v63, 0.0 }
0x1163   :  { %v1490_v62 = vmul.f32 %v1489_v55, %v1487_v19 }
0x1165   :  { %v1494_v17 = vsel %vm240_vm2, %v1490_v62, %v3729_v38 }
0x1166   :  { %v1495_v1 = vsel %vm276_vm3, %v1494_v17, %v1492_v58  ;;  %v1658_v58 = vperm.slane %v3849_v41, 0 }
0x1167   :  { %2680 = vmatmul.msk.f32.vlgmr.msra.gmra.mxu3 %vm294_vm4, %v1495_v1 }
0x1168   :  { %2428 = vmatpush.msra.mxu3 %v3477_v56 }
0x11ea   :  { %v1532_v2 = vpop.f32.mrf.mxu3 }
0x11eb   :  { %v1533_v36 = vadd.f32 %v2753_v11, %v1532_v2  ;;  %v3878_v2 = vld [vmem:[%s4223_s10 + $0x18] sm:$0xff] }
0x11ec   :  { %1593 = vmatpush.msrb.mxu1 %v3878_v2 }
0x11ed   :  { %2815 = vtanh.f32 %v1533_v36  ;;  %v2681_v3 = vmul.f32 -1.442695, %v1533_v36  ;;  %v3883_v36 = vld [vmem:[%s4223_s10 + $0x10] sm:$0xff] }
0x11ee   :  { %1594 = vmatpush.msrb.mxu1 %v3883_v36 }
0x11ef   :  { %2817 = vpow2.f32 %v2681_v3  ;;  %v3895_v3 = vld [vmem:[%s4223_s10] sm:$0xff] }
0x11f3   :  { %v2816_v0 = vpop.eup %2815 }
0x11f4   :  { %1557 = vrot.lane.b32.xlu0 %v2816_v0, %s3142_s19  ;;  %v3889_v0 = vld [vmem:[%s4223_s10 + $0x8] sm:$0xff] }
0x11f5   :  { %v2818_v4 = vpop.eup %2817  ;;  %1595 = vmatpush.msrb.mxu1 %v3889_v0 }
0x11f6   :  { %v1538_v38 = vadd.f32 1.0, %v2818_v4 }
0x11f7   :  { %1596 = vmatpush.msrb.mxu1 %v3895_v3 }
0x11f8   :  { %2819 = vrcp.f32 %v1538_v38  ;;  %v1550_v24 = vand.u32 2147483648, %v1538_v38  ;;  %vm1544_vm12 = vweird.f32 %v1538_v38  ;;  %v1548_v23 = vand.u32 2147483647, %v1538_v38 }
0x11fa   :  { %v1551_v8 = vor.u32 1.1754944e-38, %v1550_v24  ;;  %vm1549_vm5 = vcmp.eq.f32.partialorder %v1548_v23, 8.507059e+37 }
0x11fe   :  { %v2820_v13 = vpop.eup %2819 }
0x11ff   :  { %v1540_v60 = vmul.f32 %v2820_v13, %v1538_v38  ;;  %vm1545_vm8 = vweird.f32 %v2820_v13 }
0x1200   :  { %vm1546_vm15 = vmor %vm1544_vm12, %vm1545_vm8 }
0x1201   :  { %v1541_v15 = vsub.f32 1.0, %v1540_v60  ;;  %vm4256_vm8 = vmmov %vm4255_vm7 }
0x1203   :  { %v1542_v7 = vmul.f32 %v2820_v13, %v1541_v15  ;;  %v1665_v15 = vperm.slane %v3849_v41, 1 }
0x1205   :  { %v1543_v56 = vadd.f32 %v2820_v13, %v1542_v7 }
0x1207   :  { %v1547_v25 = vsel %vm1546_vm15, %v2820_v13, %v1543_v56  ;;  %v1612_v13 = vperm.slane %v1605_v32, 0 }
0x1208   :  { %v1552_v12 = vsel %vm1549_vm5, %v1551_v8, %v1547_v25  ;;  %v1611_v8 = vld [vmem:[%s4225_s12] sm:$0x3] }
0x1209   :  { %v1555_v48 = vmul.f32 %v1552_v12, %v3605_v53  ;;  %v1679_v53 = vsel %vm4252_vm11, %v1678_v46, %v1677_v5  ;;  %v1653_v5 = vperm.slane %v2683_v18, 0 }
0x120a   :  { %v1681_v55 = vsel %vm4253_vm1, %v1679_v53, 0.0 }
0x120b   :  { %v1687_v19 = vperm.slane %v1681_v55, 1  ;;  %v1694_v17 = vperm.slane %v1681_v55, 2  ;;  %v1654_v46 = vmul.f32 %v1653_v5, %v3715_v29 }
0x1266   :  { %v1558_v10 = vpop.permute.xlu0 %1557 }
0x1267   :  { %v1560_v16 = vmul.f32 %v1558_v10, %v1552_v12 }
0x1269   :  { %1562 = vrot.lane.b32.xlu1 %v1560_v16, %s4249_s6  ;;  %v1645_v16 = vperm.slane %v1611_v8, 1 }
0x1271   :  { %1607 = vrot.lane.b32.xlu1 %v3849_v41, %s3143_s30 }
0x1279   :  { %1624 = vperm.xlu1 %2735, %v1619_v47  }
0x12db   :  { %v1563_v50 = vpop.permute.xlu1 %1562 }
0x12dc   :  { %v3856_v22 = vadd.f32 %v1563_v50, %v1555_v48 }
0x12de   :  { %2821 = vtanh.f32 %v3856_v22 }
0x12e3   :  { %v1608_v26 = vpop.permute.xlu1 %1607 }
0x12e4   :  { %v2822_v42 = vpop.eup %2821  ;;  %v1610_v43 = vsel %vm392_vm10, 0.0, %v1608_v26 }
0x12e5   :  { %v1638_v63 = vperm.slane %v1610_v43, 1  ;;  %1568 = vrot.lane.b32.xlu2 %v2822_v42, %s3142_s19  ;;  %v1631_v62 = vperm.slane %v1610_v43, 0  ;;  %v1672_v42 = vperm.slane %v2683_v18, 1 }
0x12e7   :  { %1643 = vperm.xlu1 %2735, %v1638_v63   ;;  %v2684_v63 = vld [vmem:[%s4225_s12 + $0x4] sm:$0x3] }
0x12eb   :  { %v1625_v24 = vpop.permute.xlu1 %1624 }
0x12ed   :  { %1682 = vrot.lane.b32.xlu2 %v3849_v41, %s3144_s17 }
0x12ef   :  { %1692 = vperm.xlu1 %2735, %v1687_v19   ;;  %v1655_v19 = vmul.f32 %v1653_v5, %v3710_v51  ;;  %v3921_v5 = vld [vmem:[#allocation15 + $0x8] sm:$0xff] }
0x12f5   :  { %1636 = vperm.xlu2 %2736, %v1631_v62  }
0x12fd   :  { %1663 = vperm.xlu2 %2736, %v1658_v58  }
0x1305   :  { %1699 = vperm.xlu2 %2736, %v1694_v17   ;;  %v1701_v17 = vperm.slane %v2684_v63, 0 }
0x130d   :  { %2738 = vset.pattern.permute.xlu2 %v3145_v44 }
0x133f   :  { %v1569_v1 = vpop.permute.xlu2 %1568 }
0x1340   :  { %v3871_v11 = vmul.f32 %v1569_v1, %v1552_v12  ;;  %v1626_v12 = vperm.slane %v1611_v8, 0 }
0x1342   :  { %1577 = vrot.lane.b32.xlu0 %v3871_v11, %s4249_s6  ;;  %v1628_v50 = vmul.f32 %v1626_v12, %v1625_v24 }
0x1347   :  { %v1683_v4 = vpop.permute.xlu2 %1682 }
0x1348   :  { %v1685_v38 = vsel %vm4254_vm6, %v1683_v4, 0.0 }
0x1349   :  { %v1713_v60 = vperm.slane %v1685_v38, 1  ;;  %v1706_v7 = vperm.slane %v1685_v38, 0 }
0x134a   :  { %1617 = vperm.xlu0 %2734, %v1612_v13   ;;  %v1720_v13 = vperm.slane %v2684_v63, 1 }
0x134b   :  { %1718 = vperm.xlu1 %2735, %v1713_v60  }
0x134f   :  { %v1637_v23 = vpop.permute.xlu2 %1636 }
0x1350   :  { %v1646_v47 = vmul.f32 %v1645_v16, %v1637_v23 }
0x1352   :  { %1670 = vperm.xlu0 %2734, %v1665_v15  }
0x1353   :  { %2737 = vset.pattern.permute.xlu1 %v3145_v44 }
0x1357   :  { %v1664_v30 = vpop.permute.xlu2 %1663 }
0x1358   :  { %v1673_v58 = vmul.f32 %v1672_v42, %v1664_v30 }
0x1359   :  { %v1644_v10 = vpop.permute.xlu1 %1643 }
0x135a   :  { %1711 = vperm.xlu0 %2734, %v1706_v7   ;;  %v1647_v48 = vmul.f32 %v1645_v16, %v1644_v10 }
0x135c   :  { %v1649_v43 = vadd.f32 %v1647_v48, %v1628_v50  ;;  %v3918_v48 = vld [vmem:[#allocation15] sm:$0xff] }
0x135e   :  { %v1657_v1 = vadd.f32 %v1655_v19, %v1649_v43  ;;  %v3927_v43 = vld [vmem:[%s4224_s11] ss:$0 sm:$0xff] }
0x135f   :  { %v1700_v4 = vpop.permute.xlu2 %1699 }
0x1360   :  { %v1703_v7 = vmul.f32 %v1701_v17, %v1700_v4 }
0x1361   :  { %v1693_v53 = vpop.permute.xlu1 %1692 }
0x1362   :  { %2739 = vset.pattern.permute.xlu0 %v3145_v44  ;;  %v1702_v24 = vmul.f32 %v1701_v17, %v1693_v53 }
0x13b4   :  { %v3903_v56 = vpop.permute.xlu0 %1577 }
0x13b5   :  { %2682 = vmatmul.msk.f32.vlgmr.msrb.gmra.mxu1 %vm240_vm2, %v3903_v56 }
0x13bc   :  { %v1618_v25 = vpop.permute.xlu0 %1617 }
0x13bd   :  { %v1627_v14 = vmul.f32 %v1626_v12, %v1618_v25  ;;  %v1719_v23 = vpop.permute.xlu1 %1718 }
0x13be   :  { %v1722_v12 = vmul.f32 %v1720_v13, %v1719_v23 }
0x13bf   :  { %v1648_v26 = vadd.f32 %v1646_v47, %v1627_v14 }
0x13c1   :  { %v1656_v55 = vadd.f32 %v1654_v46, %v1648_v26 }
0x13c3   :  { %v1675_v15 = vadd.f32 %v1673_v58, %v1656_v55 }
0x13c4   :  { %v1671_v32 = vpop.permute.xlu0 %1670 }
0x13c5   :  { %v1674_v62 = vmul.f32 %v1672_v42, %v1671_v32  ;;  %v1704_v8 = vadd.f32 %v1702_v24, %v1675_v15 }
0x13c7   :  { %v1676_v60 = vadd.f32 %v1674_v62, %v1657_v1 }
0x13c9   :  { %v1705_v25 = vadd.f32 %v1703_v7, %v1676_v60 }
0x13cb   :  { %v1724_v18 = vadd.f32 %v1722_v12, %v1705_v25 }
0x13cc   :  { %v1712_v38 = vpop.permute.xlu0 %1711 }
0x13cd   :  { %v1721_v29 = vmul.f32 %v1720_v13, %v1712_v38 }
0x13cf   :  { %v1723_v16 = vadd.f32 %v1721_v29, %v1704_v8 }
0x1432   :  { %v1598_v10 = vpop.f32.mrf.mxu1 }
0x1433   :  { %v1726_v14 = vrot.slane %v1598_v10, 1  ;;  %v1727_v51 = vperm.slane %v1598_v10, 0 }
0x1435   :  { %v1728_v30 = vperm.slane %v1726_v14, 0  ;;  %v1731_v32 = vadd.f32 %v1727_v51, %v1723_v16 }
0x1437   :  { %v1732_v47 = vadd.f32 %v1728_v30, %v1724_v18  ;;  %v1733_v50 = vadd.f32 %v3918_v48, %v1731_v32 }
0x1439   :  { %v1734_v26 = vadd.f32 %v3921_v5, %v1732_v47  ;;  %2823 = vtanh.f32 %v1733_v50 }
0x143b   :  { %2825 = vtanh.f32 %v1734_v26 }
0x143f   :  { %v2824_v42 = vpop.eup %2823 }
0x1440   :  { %v1737_v46 = vmul.f32 %v3927_v43, %v2824_v42 }
0x1441   :  { %v2826_v63 = vpop.eup %2825 }
0x1442   :  { %v1739_v53 = vsel %vm4255_vm7, %v1737_v46, 0.0  ;;  %v1738_v55 = vmul.f32 %v3927_v43, %v2826_v63 }
0x1443   :  { %1740 = vadd.xlane.f32.xlu2 %v1739_v53 }
0x1444   :  { %v1742_v19 = vsel %vm4256_vm8, %v1738_v55, 0.0 }
0x1445   :  { %1743 = vadd.xlane.f32.xlu0 %v1742_v19 }
0x14b6   :  { %v1741_v62 = vpop.xlane.xlu2 %1740 }
0x14b7   :  { %v1745_v58 = vadd.f32 %v1741_v62, %v3447_v45 }
0x14b8   :  { %v1744_v17 = vpop.xlane.xlu0 %1743 }
0x14b9   :  { %1750 = vperm.xlu1 %2737, %v1745_v58   ;;  %v1746_v1 = vadd.f32 %v1744_v17, %v3450_v49 }
0x14c1   :  { %1753 = vperm.xlu1 %2737, %v1746_v1  }
0x152b   :  { %v1751_v4 = vpop.permute.xlu1 %1750 }
0x152c   :  { %v1755_v13 = vperm.slane %v1751_v4, %v3454_v52 }
0x1533   :  { %v1754_v38 = vpop.permute.xlu1 %1753 }
0x1534   :  { %v1756_v60 = vperm.slane %v1754_v38, %v3454_v52 }
0x1536   :  { %v1757_v15 = vsel %vm582_vm13, %v1756_v60, %v1755_v13 }
0x1537   :  { %v1759_v7 = vsel %vm190_vm9, %v1757_v15, -inf }
0x1538   :  { %1760 = vmax.xlane.f32.xlu1 %v1759_v7 }
0x15ab   :  { %v1761_v24 = vpop.xlane.xlu1 %1760 }
0x15ac   :  { %v1763_v29 = vperm.slane %v1761_v24, 0  ;;  %v1764_v23 = vperm.slane %v1761_v24, 1 }
0x15ae   :  { %v1767_v25 = vsub.f32 %v1745_v58, %v1763_v29  ;;  %v1768_v8 = vsub.f32 %v1746_v1, %v1764_v23 }
0x15b0   :  { %v1769_v10 = vmul.f32 1.442695, %v1767_v25  ;;  %v1771_v12 = vmul.f32 1.442695, %v1768_v8 }
0x15b2   :  { %2827 = vpow2.f32 %v1769_v10 }
0x15b3   :  { %2829 = vpow2.f32 %v1771_v12 }
0x15b8   :  { %v2828_v16 = vpop.eup %2827 }
0x15b9   :  { %v2830_v14 = vpop.eup %2829  ;;  %1776 = vperm.xlu2 %2738, %v2828_v16  }
0x15ba   :  { %1779 = vperm.xlu0 %2739, %v2830_v14  }
0x15c2   :  { %2074 = vrot.lane.b32.xlu0 %v3871_v11, %s3146_s0 }
0x15c3   :  { %2740 = vset.pattern.permute.xlu0 %v3376_v61 }
0x1613   :  { %v1777_v51 = vpop.permute.xlu2 %1776 }
0x1614   :  { %v1781_v30 = vperm.slane %v1777_v51, %v3454_v52 }
0x162c   :  { %v1780_v18 = vpop.permute.xlu0 %1779 }
0x162d   :  { %v1782_v32 = vperm.slane %v1780_v18, %v3454_v52 }
0x162f   :  { %v1783_v47 = vsel %vm582_vm13, %v1782_v32, %v1781_v30  ;;  %v2014_v30 = vld [vmem:[#allocation9 + $0x6] sm:$0x3] }
0x1630   :  { %v1785_v50 = vsel %vm190_vm9, %v1783_v47, 0.0 }
0x1631   :  { %1786 = vadd.xlane.f32.xlu1 %v1785_v50 }
0x16a4   :  { %v1787_v26 = vpop.xlane.xlu1 %1786 }
0x16a5   :  { %v1789_v42 = vperm.slane %v1787_v26, 0  ;;  %v1790_v46 = vperm.slane %v1787_v26, 1  ;;  %v4002_v26 = vld [vmem:[#allocation21 + $0x20] sm:$0xff] }
0x16a7   :  { %2831 = vrcp.f32 %v1789_v42  ;;  %v1804_v58 = vand.u32 2147483648, %v1789_v42  ;;  %v1819_v17 = vand.u32 2147483648, %v1790_v46  ;;  %v1802_v4 = vand.u32 2147483647, %v1789_v42 }
0x16a8   :  { %2833 = vrcp.f32 %v1790_v46  ;;  %v1817_v13 = vand.u32 2147483647, %v1790_v46  ;;  %vm1798_vm5 = vweird.f32 %v1789_v42  ;;  %vm1813_vm11 = vweird.f32 %v1790_v46 }
0x16a9   :  { %v1805_v7 = vor.u32 1.1754944e-38, %v1804_v58  ;;  %v1820_v24 = vor.u32 1.1754944e-38, %v1819_v17  ;;  %vm1803_vm7 = vcmp.eq.f32.partialorder %v1802_v4, 8.507059e+37  ;;  %v2072_v17 = vld [vmem:[#allocation14 + $0x6] sm:$0x3] }
0x16aa   :  { %vm1818_vm8 = vcmp.eq.f32.partialorder %v1817_v13, 8.507059e+37 }
0x16ad   :  { %v2832_v63 = vpop.eup %2831 }
0x16ae   :  { %v2834_v11 = vpop.eup %2833  ;;  %v1794_v53 = vmul.f32 %v2832_v63, %v1789_v42  ;;  %vm1799_vm12 = vweird.f32 %v2832_v63  ;;  %v4004_v42 = vld [vmem:[#allocation21 + $0x18] sm:$0xff] }
0x16af   :  { %v1809_v55 = vmul.f32 %v2834_v11, %v1790_v46  ;;  %vm1814_vm15 = vweird.f32 %v2834_v11  ;;  %vm1800_vm1 = vmor %vm1798_vm5, %vm1799_vm12  ;;  %v4007_v46 = vld [vmem:[#allocation21 + $0x10] sm:$0xff] }
0x16b0   :  { %v1795_v19 = vsub.f32 1.0, %v1794_v53  ;;  %vm1815_vm6 = vmor %vm1813_vm11, %vm1814_vm15 }
0x16b1   :  { %v1810_v62 = vsub.f32 1.0, %v1809_v55 }
0x16b2   :  { %v1796_v1 = vmul.f32 %v2832_v63, %v1795_v19 }
0x16b3   :  { %v1811_v38 = vmul.f32 %v2834_v11, %v1810_v62 }
0x16b4   :  { %v1797_v60 = vadd.f32 %v2832_v63, %v1796_v1 }
0x16b5   :  { %v1812_v15 = vadd.f32 %v2834_v11, %v1811_v38  ;;  %v2075_v38 = vpop.permute.xlu0 %2074 }
0x16b6   :  { %v1801_v29 = vsel %vm1800_vm1, %v2832_v63, %v1797_v60  ;;  %v4010_v63 = vld [vmem:[#allocation21 + $0x8] sm:$0xff] }
0x16b7   :  { %v1816_v23 = vsel %vm1815_vm6, %v2834_v11, %v1812_v15  ;;  %v1806_v25 = vsel %vm1803_vm7, %v1805_v7, %v1801_v29  ;;  %v4014_v11 = vld [vmem:[#allocation21] sm:$0xff] }
0x16b8   :  { %v1821_v8 = vsel %vm1818_vm8, %v1820_v24, %v1816_v23  ;;  %v1807_v10 = vmul.f32 %v2828_v16, %v1806_v25  ;;  %v3991_v16 = vld [vmem:[#allocation21 + $0x30] sm:$0xff]  ;;  %v2755_v29 = vld [vmem:[%s4222_s9] ss:$0 sm:$0xff] }
0x16b9   :  { %v1822_v12 = vmul.f32 %v2830_v14, %v1821_v8  ;;  %v3994_v14 = vld [vmem:[#allocation21 + $0x28] sm:$0xff] }
0x16ba   :  { %1825 = vperm.xlu1 %2737, %v1807_v10  }
0x16bb   :  { %1852 = vperm.xlu2 %2738, %v1822_v12  }
0x16c2   :  { %2742 = vset.pattern.permute.xlu1 %v3376_v61 }
0x16c3   :  { %2741 = vset.pattern.permute.xlu2 %v3376_v61 }
0x1715   :  { %v3948_v51 = vpop.permute.xlu2 %1852 }
0x1716   :  { %v1854_v18 = vperm.slane %v3948_v51, %v3454_v52 }
0x1718   :  { %2686 = vmatmul.msk.f32.vlgmr.msrb.gmra.mxu0 %vm209_vm0, %v1854_v18 }
0x1719   :  { %2102 = vmatpush.msrb.mxu0 %v3756_v54 }
0x171b   :  { %2103 = vmatpush.msrb.mxu0 %v3761_v20 }
0x171d   :  { %2104 = vmatpush.msrb.mxu0 %v3767_v21 }
0x171f   :  { %2105 = vmatpush.msrb.mxu0 %v3773_v27  ;;  %v3976_v27 = vld [vmem:[#allocation21 + $0x58] sm:$0xff] }
0x1720   :  { %2690 = vmatmul.msk.f32.vlgmr.msra.gmra.mxu0 %vm209_vm0, %v2014_v30  ;;  %1916 = vmatpush.msra.mxu1 %v3976_v27 }
0x1721   :  { %2106 = vmatpush.msrb.mxu0 %v3784_v57  ;;  %v3978_v57 = vld [vmem:[#allocation21 + $0x50] sm:$0xff] }
0x1722   :  { %1917 = vmatpush.msra.mxu1 %v3978_v57 }
0x1723   :  { %2107 = vmatpush.msrb.mxu0 %v3790_v33 }
0x1725   :  { %2108 = vmatpush.msrb.mxu0 %v3796_v28  ;;  %v2041_v28 = vld [vmem:[#allocation12 + $0x6] sm:$0x3] }
0x1727   :  { %2109 = vmatpush.msrb.mxu0 %v3801_v34 }
0x1729   :  { %2110 = vmatpush.msrb.mxu0 %v3808_v35  ;;  %v3981_v35 = vld [vmem:[#allocation21 + $0x48] sm:$0xff] }
0x172a   :  { %1918 = vmatpush.msra.mxu1 %v3981_v35 }
0x172b   :  { %2111 = vmatpush.msrb.mxu0 %v3814_v37 }
0x172c   :  { %v3964_v61 = vpop.permute.xlu1 %1825 }
0x172d   :  { %v1827_v54 = vperm.slane %v3964_v61, %v3454_v52  ;;  %2112 = vmatpush.msrb.mxu0 %v3820_v39  ;;  %v3984_v39 = vld [vmem:[#allocation21 + $0x40] sm:$0xff] }
0x172e   :  { %1919 = vmatpush.msra.mxu1 %v3984_v39 }
0x172f   :  { %v3970_v20 = vsel %vm582_vm13, %v1854_v18, %v1827_v54  ;;  %2685 = vmatmul.msk.f32.vlgmr.msra.gmra.mxu2 %vm209_vm0, %v1827_v54  ;;  %2113 = vmatpush.msrb.mxu0 %v3826_v40  ;;  %v3988_v40 = vld [vmem:[#allocation21 + $0x38] sm:$0xff] }
0x1730   :  { %2012 = vst.msk [vmem:[#allocation24 + $0x4] sm:$0x3] %vm190_vm9, %v3970_v20  ;;  %1920 = vmatpush.msra.mxu1 %v3988_v40 }
0x1732   :  { %1921 = vmatpush.msra.mxu1 %v3991_v16 }
0x1734   :  { %1922 = vmatpush.msra.mxu1 %v3994_v14 }
0x1736   :  { %1923 = vmatpush.msra.mxu1 %v4002_v26 }
0x1738   :  { %1924 = vmatpush.msra.mxu1 %v4004_v42 }
0x173a   :  { %1925 = vmatpush.msra.mxu1 %v4007_v46 }
0x173c   :  { %1926 = vmatpush.msra.mxu1 %v4010_v63 }
0x173e   :  { %1927 = vmatpush.msra.mxu1 %v4014_v11 }
0x1795   :  { %v1874_v21 = vpop.f32.mrf.mxu0 }
0x1796   :  { %v1883_v32 = vrot.slane %v1874_v21, 7 }
0x179d   :  { %v2036_v33 = vpop.f32.mrf.mxu0 }
0x179e   :  { %v2039_v34 = vmax.f32 %v2036_v33, 0.0 }
0x17a0   :  { %v2042_v37 = vmul.f32 %v2041_v28, %v2039_v34 }
0x17a2   :  { %2691 = vmatmul.msk.f32.vlgmr.msrb.gmra.mxu3 %vm240_vm2, %v2042_v37 }
0x17b2   :  { %v1847_v47 = vpop.f32.mrf.mxu2 }
0x17b3   :  { %v1884_v50 = vsel %vm582_vm13, %v1883_v32, %v1847_v47 }
0x17b4   :  { %1885 = vrot.lane.b32.xlu2 %v1884_v50, %s4249_s6 }
0x17bc   :  { %1888 = vrot.lane.b32.xlu2 %v3749_v59, %s3146_s0  ;;  %v2874_v59 = vld [vmem:[%s4216_s3 + $0x8] sm:$0xff] }
0x17bd   :  { %2455 = vmatpush.msrb.mxu1 %v2874_v59 }
0x180e   :  { %v4020_v53 = vpop.permute.xlu2 %1885 }
0x180f   :  { %v1891_v55 = vsel %vm240_vm2, %v3903_v56, %v4020_v53  ;;  %v2754_v56 = vld [vmem:[%s4227_s14] ss:$0 sm:$0xff] }
0x1816   :  { %v1889_v19 = vpop.permute.xlu2 %1888 }
0x1817   :  { %v1892_v62 = vsel %vm276_vm3, %v1891_v55, %v1889_v19 }
0x1818   :  { %2687 = vmatmul.msk.f32.vlgmr.msra.gmra.mxu1 %vm294_vm4, %v1892_v62 }
0x1825   :  { %v2067_v58 = vpop.f32.mrf.mxu3 }
0x1826   :  { %v2070_v1 = vmax.f32 %v2067_v58, 0.0 }
0x1828   :  { %v2073_v4 = vmul.f32 %v2072_v17, %v2070_v1 }
0x182a   :  { %v2077_v13 = vsel %vm240_vm2, %v2073_v4, %v4020_v53 }
0x182b   :  { %v2078_v60 = vsel %vm276_vm3, %v2077_v13, %v2075_v38 }
0x182c   :  { %2692 = vmatmul.msk.f32.vlgmr.msrb.gmra.mxu0 %vm294_vm4, %v2078_v60 }
0x1895   :  { %v1929_v15 = vpop.f32.mrf.mxu1 }
0x1896   :  { %v1930_v7 = vadd.f32 %v2754_v56, %v1929_v15 }
0x1898   :  { %2835 = vtanh.f32 %v1930_v7  ;;  %v2688_v10 = vmul.f32 -1.442695, %v1930_v7 }
0x189e   :  { %v2836_v24 = vpop.eup %2835 }
0x189f   :  { %1954 = vrot.lane.b32.xlu2 %v2836_v24, %s3142_s19 }
0x18a9   :  { %v2115_v23 = vpop.f32.mrf.mxu0 }
0x18aa   :  { %v2116_v25 = vadd.f32 %v2755_v29, %v2115_v23 }
0x18ac   :  { %2837 = vtanh.f32 %v2116_v25  ;;  %v2693_v50 = vmul.f32 -1.442695, %v2116_v25 }
0x18ad   :  { %2839 = vpow2.f32 %v2688_v10 }
0x18b2   :  { %v2838_v8 = vpop.eup %2837 }
0x18b3   :  { %2140 = vrot.lane.b32.xlu0 %v2838_v8, %s3142_s19  ;;  %v2840_v12 = vpop.eup %2839 }
0x18b4   :  { %v1935_v18 = vadd.f32 1.0, %v2840_v12 }
0x18b6   :  { %2841 = vrcp.f32 %v1935_v18  ;;  %v1947_v34 = vand.u32 2147483648, %v1935_v18  ;;  %vm1941_vm15 = vweird.f32 %v1935_v18  ;;  %v1945_v37 = vand.u32 2147483647, %v1935_v18 }
0x18b7   :  { %2843 = vpow2.f32 %v2693_v50 }
0x18b8   :  { %v1948_v47 = vor.u32 1.1754944e-38, %v1947_v34  ;;  %vm1946_vm11 = vcmp.eq.f32.partialorder %v1945_v37, 8.507059e+37 }
0x18bc   :  { %v2842_v30 = vpop.eup %2841 }
0x18bd   :  { %v1937_v54 = vmul.f32 %v2842_v30, %v1935_v18  ;;  %vm1942_vm12 = vweird.f32 %v2842_v30  ;;  %v2844_v62 = vpop.eup %2843 }
0x18be   :  { %vm1943_vm5 = vmor %vm1941_vm15, %vm1942_vm12  ;;  %v2121_v58 = vadd.f32 1.0, %v2844_v62  ;;  %v1976_v62 = vld [vmem:[%s4228_s15 + $0x10] sm:$0xff]  ;;  %vm4257_vm12 = vcmask 1042434   ;;  %vm4258_vm15 = vcmask 56320  }
0x18bf   :  { %v1938_v21 = vsub.f32 1.0, %v1937_v54 }
0x18c0   :  { %2845 = vrcp.f32 %v2121_v58  ;;  %v2133_v60 = vand.u32 2147483648, %v2121_v58  ;;  %vm2127_vm6 = vweird.f32 %v2121_v58  ;;  %v2131_v56 = vand.u32 2147483647, %v2121_v58 }
0x18c1   :  { %v1939_v33 = vmul.f32 %v2842_v30, %v1938_v21 }
0x18c2   :  { %v2134_v7 = vor.u32 1.1754944e-38, %v2133_v60  ;;  %vm2132_vm8 = vcmp.eq.f32.partialorder %v2131_v56, 8.507059e+37 }
0x18c3   :  { %v1940_v28 = vadd.f32 %v2842_v30, %v1939_v33  ;;  %v2185_v33 = vperm.slane %v3948_v51, %v3494_v6 }
0x18c5   :  { %v1944_v32 = vsel %vm1943_vm5, %v2842_v30, %v1940_v28  ;;  %v4057_v28 = vadd.f32 %v3970_v20, %v3849_v41  ;;  %v1980_v41 = vld [vmem:[%s4228_s15 + $0x30] sm:$0xff]  ;;  %v1979_v20 = vld [vmem:[%s4228_s15 + $0x28] sm:$0xff]  ;;  %vm4260_vm5 = vcmask 254976  }
0x18c6   :  { %v1949_v55 = vsel %vm1946_vm11, %v1948_v47, %v1944_v32  ;;  %v2846_v17 = vpop.eup %2845  ;;  %vm4261_vm11 = vcmask 130048  }
0x18c7   :  { %v2123_v1 = vmul.f32 %v2846_v17, %v2121_v58  ;;  %vm2128_vm1 = vweird.f32 %v2846_v17  ;;  %v1952_v25 = vmul.f32 %v1949_v55, %v3745_v9  ;;  %v2184_v9 = vperm.slane %v3964_v61, %v3494_v6  ;;  %v1981_v6 = vld [vmem:[%s4228_s15 + $0x38] sm:$0xff]  ;;  %v1975_v58 = vld [vmem:[%s4228_s15 + $0x8] sm:$0xff] }
0x18c8   :  { %vm2129_vm7 = vmor %vm2127_vm6, %vm2128_vm1  ;;  %1997 = vmatpush.msrb.mxu2 %v1981_v6  ;;  %2580 = vmatpush.msrb.mxu3 %v1981_v6 }
0x18c9   :  { %v2124_v4 = vsub.f32 1.0, %v2123_v1  ;;  %vm4262_vm1 = vmmov %vm4261_vm11 }
0x18ca   :  { %1998 = vmatpush.msrb.mxu2 %v1980_v41  ;;  %2581 = vmatpush.msrb.mxu3 %v1980_v41 }
0x18cb   :  { %v2125_v38 = vmul.f32 %v2846_v17, %v2124_v4 }
0x18cc   :  { %1999 = vmatpush.msrb.mxu2 %v1979_v20  ;;  %2582 = vmatpush.msrb.mxu3 %v1979_v20 }
0x18cd   :  { %v2126_v13 = vadd.f32 %v2846_v17, %v2125_v38 }
0x18cf   :  { %v2130_v15 = vsel %vm2129_vm7, %v2846_v17, %v2126_v13  ;;  %v2260_v17 = vperm.slane %v3964_v61, %v3541_v31  ;;  %v2261_v13 = vperm.slane %v3948_v51, %v3541_v31  ;;  %v1974_v31 = vld [vmem:[%s4228_s15] sm:$0xff] }
0x18d0   :  { %v2135_v29 = vsel %vm2132_vm8, %v2134_v7, %v2130_v15 }
0x18d1   :  { %v2138_v18 = vmul.f32 %v2135_v29, %v3856_v22  ;;  %v2186_v22 = vsel %vm582_vm13, %v2185_v33, %v2184_v9  ;;  %v2262_v15 = vsel %vm4257_vm12, %v2261_v13, %v2260_v17 }
0x18d2   :  { %v2188_v34 = vsel %vm392_vm10, 0.0, %v2186_v22  ;;  %v2264_v7 = vsel %vm4258_vm15, %v2262_v15, 0.0 }
0x18d3   :  { %v2202_v37 = vperm.slane %v2188_v34, 1  ;;  %v2195_v38 = vperm.slane %v2188_v34, 0 }
0x18f9   :  { %v1955_v59 = vpop.permute.xlu2 %1954 }
0x18fa   :  { %v1957_v19 = vmul.f32 %v1955_v59, %v1949_v55  ;;  %v1978_v59 = vld [vmem:[%s4228_s15 + $0x20] sm:$0xff] }
0x18fb   :  { %2000 = vmatpush.msrb.mxu2 %v1978_v59  ;;  %2583 = vmatpush.msrb.mxu3 %v1978_v59 }
0x18fc   :  { %1959 = vrot.lane.b32.xlu2 %v1957_v19, %s4249_s6  ;;  %v1977_v19 = vld [vmem:[%s4228_s15 + $0x18] sm:$0xff] }
0x18fd   :  { %2001 = vmatpush.msrb.mxu2 %v1977_v19  ;;  %2584 = vmatpush.msrb.mxu3 %v1977_v19 }
0x18ff   :  { %2002 = vmatpush.msrb.mxu2 %v1976_v62  ;;  %2585 = vmatpush.msrb.mxu3 %v1976_v62 }
0x1901   :  { %2003 = vmatpush.msrb.mxu2 %v1975_v58  ;;  %2586 = vmatpush.msrb.mxu3 %v1975_v58 }
0x1903   :  { %2004 = vmatpush.msrb.mxu2 %v1974_v31  ;;  %2587 = vmatpush.msrb.mxu3 %v1974_v31 }
0x1905   :  { %2176 = vmatpush.msra.mxu2 %v3878_v2 }
0x1907   :  { %2177 = vmatpush.msra.mxu2 %v3883_v36 }
0x1909   :  { %2178 = vmatpush.msra.mxu2 %v3889_v0 }
0x190b   :  { %2179 = vmatpush.msra.mxu2 %v3895_v3 }
0x1925   :  { %v2141_v24 = vpop.permute.xlu0 %2140 }
0x1926   :  { %v2143_v23 = vmul.f32 %v2141_v24, %v2135_v29  ;;  %v2248_v24 = vperm.slane %v4057_v28, 1 }
0x1928   :  { %2145 = vrot.lane.b32.xlu1 %v2143_v23, %s4249_s6  ;;  %v2241_v23 = vperm.slane %v4057_v28, 0 }
0x1956   :  { %v1960_v8 = vpop.permute.xlu2 %1959 }
0x1957   :  { %v4042_v10 = vadd.f32 %v1960_v8, %v1952_v25  ;;  %v2277_v25 = vperm.slane %v2264_v7, 2 }
0x1959   :  { %2847 = vtanh.f32 %v4042_v10 }
0x195f   :  { %v2848_v12 = vpop.eup %2847 }
0x1960   :  { %1965 = vrot.lane.b32.xlu0 %v2848_v12, %s3142_s19 }
0x199a   :  { %v2146_v30 = vpop.permute.xlu1 %2145 }
0x199b   :  { %v4047_v54 = vadd.f32 %v2146_v30, %v2138_v18 }
0x199d   :  { %2849 = vtanh.f32 %v4047_v54 }
0x19a3   :  { %v2850_v21 = vpop.eup %2849 }
0x19a4   :  { %2151 = vrot.lane.b32.xlu2 %v2850_v21, %s3142_s19 }
0x19ac   :  { %2190 = vrot.lane.b32.xlu2 %v4057_v28, %s3143_s30 }
0x19b4   :  { %2207 = vperm.xlu2 %2741, %v2202_v37   ;;  %v2696_v37 = vld [vmem:[%s4225_s12 + $0x4] sm:$0x3] }
0x19d2   :  { %v1966_v32 = vpop.permute.xlu0 %1965 }
0x19d3   :  { %v4063_v47 = vmul.f32 %v1966_v32, %v1949_v55 }
0x19d5   :  { %1970 = vrot.lane.b32.xlu1 %v4063_v47, %s4249_s6 }
0x19dd   :  { %2265 = vrot.lane.b32.xlu1 %v4057_v28, %s3144_s17 }
0x19fe   :  { %v2152_v50 = vpop.permute.xlu2 %2151 }
0x19ff   :  { %v2154_v55 = vmul.f32 %v2152_v50, %v2135_v29  ;;  %v2270_v29 = vperm.slane %v2264_v7, 1  ;;  %v2284_v50 = vperm.slane %v2696_v37, 0 }
0x1a01   :  { %2160 = vrot.lane.b32.xlu0 %v2154_v55, %s4249_s6 }
0x1a06   :  { %v2191_v1 = vpop.permute.xlu2 %2190 }
0x1a07   :  { %v2193_v4 = vsel %vm392_vm10, 0.0, %v2191_v1  ;;  %vm4259_vm10 = vmmov %vm4258_vm15  ;;  %v2303_v1 = vperm.slane %v2696_v37, 1 }
0x1a08   :  { %v2214_v60 = vperm.slane %v2193_v4, 0  ;;  %v2221_v56 = vperm.slane %v2193_v4, 1 }
0x1a09   :  { %2200 = vperm.xlu0 %2740, %v2195_v38  }
0x1a0a   :  { %2226 = vperm.xlu2 %2741, %v2221_v56   ;;  %2219 = vperm.xlu1 %2742, %v2214_v60  }
0x1a11   :  { %2253 = vperm.xlu0 %2740, %v2248_v24  }
0x1a12   :  { %2275 = vperm.xlu2 %2741, %v2270_v29   ;;  %2246 = vperm.xlu1 %2742, %v2241_v23  }
0x1a1a   :  { %2282 = vperm.xlu1 %2742, %v2277_v25  }
0x1a22   :  { %2744 = vset.pattern.permute.xlu1 %v3145_v44 }
0x1a47   :  { %v1971_v8 = vpop.permute.xlu1 %1970 }
0x1a48   :  { %v1973_v12 = vsel %vm240_vm2, %v1971_v8, %v4020_v53  ;;  %v2695_v53 = vld [vmem:[%s4225_s12 + $0x2] sm:$0x3] }
0x1a49   :  { %2689 = vmatmul.msk.f32.vlgmr.msrb.gmra.mxu2 %vm276_vm3, %v1973_v12  ;;  %v2255_v21 = vperm.slane %v2695_v53, 1  ;;  %v2236_v34 = vperm.slane %v2695_v53, 0 }
0x1a4a   :  { %2499 = vmatpush.msrb.mxu2 %v3976_v27  ;;  %v2756_v27 = vld [vmem:[%s4229_s16] ss:$0 sm:$0xff] }
0x1a4b   :  { %v2237_v6 = vmul.f32 %v2236_v34, %v3964_v61  ;;  %v2238_v62 = vmul.f32 %v2236_v34, %v3948_v51 }
0x1a4c   :  { %2500 = vmatpush.msrb.mxu2 %v3978_v57 }
0x1a4e   :  { %2501 = vmatpush.msrb.mxu2 %v3981_v35  ;;  %v2208_v35 = vpop.permute.xlu2 %2207 }
0x1a4f   :  { %v2266_v18 = vpop.permute.xlu1 %2265 }
0x1a50   :  { %v2268_v2 = vsel %vm4259_vm10, %v2266_v18, 0.0  ;;  %2502 = vmatpush.msrb.mxu2 %v3984_v39 }
0x1a51   :  { %v2289_v36 = vperm.slane %v2268_v2, 0  ;;  %v2296_v0 = vperm.slane %v2268_v2, 1 }
0x1a52   :  { %2503 = vmatpush.msrb.mxu2 %v3988_v40 }
0x1a53   :  { %2301 = vperm.xlu2 %2741, %v2296_v0   ;;  %2294 = vperm.xlu0 %2740, %v2289_v36  }
0x1a54   :  { %2504 = vmatpush.msrb.mxu2 %v3991_v16 }
0x1a56   :  { %2505 = vmatpush.msrb.mxu2 %v3994_v14  ;;  %v2194_v14 = vld [vmem:[%s4225_s12] sm:$0x3] }
0x1a58   :  { %2506 = vmatpush.msrb.mxu2 %v4002_v26  ;;  %v2209_v26 = vperm.slane %v2194_v14, 0 }
0x1a5a   :  { %2507 = vmatpush.msrb.mxu2 %v4004_v42  ;;  %v2228_v42 = vperm.slane %v2194_v14, 1  ;;  %v2211_v32 = vmul.f32 %v2209_v26, %v2208_v35 }
0x1a5b   :  { %2743 = vset.pattern.permute.xlu2 %v3145_v44  ;;  %2745 = vset.pattern.permute.xlu0 %v3145_v44 }
0x1a5c   :  { %2508 = vmatpush.msrb.mxu2 %v4007_v46 }
0x1a5e   :  { %2509 = vmatpush.msrb.mxu2 %v4010_v63 }
0x1a60   :  { %2510 = vmatpush.msrb.mxu2 %v4014_v11 }
0x1a64   :  { %v2227_v16 = vpop.permute.xlu2 %2226 }
0x1a65   :  { %v2230_v33 = vmul.f32 %v2228_v42, %v2227_v16 }
0x1a67   :  { %v2232_v20 = vadd.f32 %v2230_v33, %v2211_v32 }
0x1a69   :  { %v2240_v13 = vadd.f32 %v2238_v62, %v2232_v20 }
0x1a6c   :  { %v2276_v9 = vpop.permute.xlu2 %2275 }
0x1a6d   :  { %v2285_v38 = vmul.f32 %v2284_v50, %v2276_v9 }
0x1a73   :  { %v4126_v3 = vpop.permute.xlu0 %2160 }
0x1a74   :  { %2597 = vst.msk [vmem:[#allocation2] sm:$0x3] %vm4260_vm5, %v4126_v3  ;;  %2694 = vmatmul.msk.f32.vlgmr.msra.gmra.mxu2 %vm240_vm2, %v4126_v3 }
0x1a7b   :  { %v2201_v40 = vpop.permute.xlu0 %2200 }
0x1a7c   :  { %v2220_v39 = vpop.permute.xlu1 %2219  ;;  %v2210_v63 = vmul.f32 %v2209_v26, %v2201_v40 }
0x1a7d   :  { %v2229_v11 = vmul.f32 %v2228_v42, %v2220_v39 }
0x1a7f   :  { %v2231_v22 = vadd.f32 %v2229_v11, %v2210_v63 }
0x1a81   :  { %v2239_v59 = vadd.f32 %v2237_v6, %v2231_v22 }
0x1a83   :  { %v2254_v30 = vpop.permute.xlu0 %2253 }
0x1a84   :  { %v2247_v46 = vpop.permute.xlu1 %2246  ;;  %v2257_v58 = vmul.f32 %v2255_v21, %v2254_v30 }
0x1a85   :  { %v2256_v41 = vmul.f32 %v2255_v21, %v2247_v46 }
0x1a86   :  { %v2259_v15 = vadd.f32 %v2257_v58, %v2240_v13 }
0x1a87   :  { %v2258_v17 = vadd.f32 %v2256_v41, %v2239_v59 }
0x1a89   :  { %v2287_v24 = vadd.f32 %v2285_v38, %v2258_v17 }
0x1a8c   :  { %v2283_v55 = vpop.permute.xlu1 %2282 }
0x1a8d   :  { %v2286_v60 = vmul.f32 %v2284_v50, %v2283_v55 }
0x1a8f   :  { %v2288_v29 = vadd.f32 %v2286_v60, %v2259_v15 }
0x1aad   :  { %v2302_v4 = vpop.permute.xlu2 %2301 }
0x1aae   :  { %v2305_v7 = vmul.f32 %v2303_v1, %v2302_v4 }
0x1ab0   :  { %v2307_v8 = vadd.f32 %v2305_v7, %v2288_v29 }
0x1ac5   :  { %v2295_v19 = vpop.permute.xlu0 %2294 }
0x1ac6   :  { %v2304_v56 = vmul.f32 %v2303_v1, %v2295_v19 }
0x1ac8   :  { %v2306_v23 = vadd.f32 %v2304_v56, %v2287_v24 }
0x1acc   :  { %v2006_v57 = vpop.f32.mrf.mxu2 }
0x1acd   :  { %v2007_v44 = vadd.f32 %v2756_v27, %v2006_v57 }
0x1acf   :  { %2010 = vst.msk [vmem:[#allocation23 + $0x4] sm:$0x3] %vm841_vm14, %v2007_v44 }
0x1af7   :  { %v2181_v61 = vpop.f32.mrf.mxu2 }
0x1af8   :  { %v2309_v25 = vrot.slane %v2181_v61, 1  ;;  %v2310_v31 = vperm.slane %v2181_v61, 0 }
0x1afa   :  { %v2311_v12 = vperm.slane %v2309_v25, 0  ;;  %v2314_v18 = vadd.f32 %v2310_v31, %v2306_v23 }
0x1afc   :  { %v2315_v51 = vadd.f32 %v2311_v12, %v2307_v8  ;;  %v2316_v2 = vadd.f32 %v3918_v48, %v2314_v18 }
0x1afe   :  { %v2317_v36 = vadd.f32 %v3921_v5, %v2315_v51  ;;  %2851 = vtanh.f32 %v2316_v2 }
0x1b00   :  { %2853 = vtanh.f32 %v2317_v36 }
0x1b04   :  { %v2852_v0 = vpop.eup %2851 }
0x1b05   :  { %v2320_v27 = vmul.f32 %v3927_v43, %v2852_v0 }
0x1b06   :  { %v2854_v57 = vpop.eup %2853 }
0x1b07   :  { %v2322_v44 = vsel %vm4261_vm11, %v2320_v27, 0.0  ;;  %v2321_v35 = vmul.f32 %v3927_v43, %v2854_v57 }
0x1b08   :  { %2323 = vadd.xlane.f32.xlu1 %v2322_v44 }
0x1b09   :  { %v2325_v39 = vsel %vm4262_vm1, %v2321_v35, 0.0  ;;  %vm4263_vm1 = vcmask 254976  }
0x1b0a   :  { %2326 = vadd.xlane.f32.xlu0 %v2325_v39 }
0x1b7b   :  { %v2324_v40 = vpop.xlane.xlu1 %2323 }
0x1b7c   :  { %v2328_v16 = vadd.f32 %v2324_v40, %v3447_v45 }
0x1b7d   :  { %v2327_v48 = vpop.xlane.xlu0 %2326 }
0x1b7e   :  { %2333 = vperm.xlu2 %2743, %v2328_v16   ;;  %v2329_v5 = vadd.f32 %v2327_v48, %v3450_v49 }
0x1b86   :  { %2336 = vperm.xlu2 %2743, %v2329_v5  }
0x1bd8   :  { %v2334_v14 = vpop.permute.xlu2 %2333 }
0x1bd9   :  { %v2338_v42 = vperm.slane %v2334_v14, %v3454_v52  ;;  %v2757_v14 = vld [vmem:[%s4227_s14] ss:$0 sm:$0xff]  ;;  %s3147_s14 = smov [#allocation24]  }
0x1bda   :  { %s2630_s29 = sshll.u32 %s3147_s14, 4  ;;  %s2631_s29 = int_to_ptr.vmem [resolvable:$true] %s2630_s29 }
0x1be0   :  { %v2337_v26 = vpop.permute.xlu2 %2336 }
0x1be1   :  { %v2339_v46 = vperm.slane %v2337_v26, %v3454_v52 }
0x1be3   :  { %v2340_v43 = vsel %vm582_vm13, %v2339_v46, %v2338_v42 }
0x1be4   :  { %v2342_v63 = vsel %vm190_vm9, %v2340_v43, -inf }
0x1be5   :  { %2343 = vmax.xlane.f32.xlu2 %v2342_v63 }
0x1c58   :  { %v2344_v11 = vpop.xlane.xlu2 %2343 }
0x1c59   :  { %v2346_v53 = vperm.slane %v2344_v11, 0  ;;  %v2347_v30 = vperm.slane %v2344_v11, 1 }
0x1c5b   :  { %v2350_v45 = vsub.f32 %v2328_v16, %v2346_v53  ;;  %v2351_v21 = vsub.f32 %v2329_v5, %v2347_v30 }
0x1c5d   :  { %v2352_v9 = vmul.f32 1.442695, %v2350_v45  ;;  %v2354_v33 = vmul.f32 1.442695, %v2351_v21 }
0x1c5f   :  { %2855 = vpow2.f32 %v2352_v9 }
0x1c60   :  { %2857 = vpow2.f32 %v2354_v33 }
0x1c65   :  { %v2856_v49 = vpop.eup %2855 }
0x1c66   :  { %v2858_v22 = vpop.eup %2857  ;;  %2359 = vperm.xlu1 %2744, %v2856_v49  }
0x1c67   :  { %2362 = vperm.xlu0 %2745, %v2858_v22  }
0x1cd8   :  { %v2360_v34 = vpop.permute.xlu1 %2359 }
0x1cd9   :  { %v2363_v37 = vpop.permute.xlu0 %2362  ;;  %v2364_v32 = vperm.slane %v2360_v34, %v3454_v52 }
0x1cda   :  { %v2365_v6 = vperm.slane %v2363_v37, %v3454_v52 }
0x1cdc   :  { %v2366_v41 = vsel %vm582_vm13, %v2365_v6, %v2364_v32 }
0x1cdd   :  { %v2368_v20 = vsel %vm190_vm9, %v2366_v41, 0.0 }
0x1cde   :  { %2369 = vadd.xlane.f32.xlu2 %v2368_v20 }
0x1d51   :  { %v2370_v50 = vpop.xlane.xlu2 %2369 }
0x1d52   :  { %v2372_v59 = vperm.slane %v2370_v50, 0  ;;  %v2373_v55 = vperm.slane %v2370_v50, 1 }
0x1d54   :  { %2859 = vrcp.f32 %v2372_v59  ;;  %v2387_v38 = vand.u32 2147483648, %v2372_v59  ;;  %v2402_v13 = vand.u32 2147483648, %v2373_v55  ;;  %v2385_v56 = vand.u32 2147483647, %v2372_v59 }
0x1d55   :  { %2861 = vrcp.f32 %v2373_v55  ;;  %v2400_v7 = vand.u32 2147483647, %v2373_v55  ;;  %vm2381_vm8 = vweird.f32 %v2372_v59  ;;  %vm2396_vm12 = vweird.f32 %v2373_v55 }
0x1d56   :  { %v2388_v29 = vor.u32 1.1754944e-38, %v2387_v38  ;;  %v2403_v23 = vor.u32 1.1754944e-38, %v2402_v13  ;;  %vm2386_vm5 = vcmp.eq.f32.partialorder %v2385_v56, 8.507059e+37 }
0x1d57   :  { %vm2401_vm11 = vcmp.eq.f32.partialorder %v2400_v7, 8.507059e+37 }
0x1d5a   :  { %v2860_v19 = vpop.eup %2859 }
0x1d5b   :  { %v2862_v62 = vpop.eup %2861  ;;  %v2377_v58 = vmul.f32 %v2860_v19, %v2372_v59  ;;  %vm2382_vm6 = vweird.f32 %v2860_v19 }
0x1d5c   :  { %v2392_v17 = vmul.f32 %v2862_v62, %v2373_v55  ;;  %vm2397_vm7 = vweird.f32 %v2862_v62  ;;  %vm2383_vm15 = vmor %vm2381_vm8, %vm2382_vm6 }
0x1d5d   :  { %v2378_v1 = vsub.f32 1.0, %v2377_v58  ;;  %vm2398_vm10 = vmor %vm2396_vm12, %vm2397_vm7 }
0x1d5e   :  { %v2393_v4 = vsub.f32 1.0, %v2392_v17  ;;  %vm4264_vm6 = vmmov %vm4263_vm1 }
0x1d5f   :  { %v2379_v60 = vmul.f32 %v2860_v19, %v2378_v1  ;;  %vm4265_vm7 = vmmov %vm4263_vm1 }
0x1d60   :  { %v2394_v15 = vmul.f32 %v2862_v62, %v2393_v4  ;;  %vm4266_vm8 = vmmov %vm4263_vm1 }
0x1d61   :  { %v2380_v24 = vadd.f32 %v2860_v19, %v2379_v60 }
0x1d62   :  { %v2395_v61 = vadd.f32 %v2862_v62, %v2394_v15 }
0x1d63   :  { %v2384_v25 = vsel %vm2383_vm15, %v2860_v19, %v2380_v24 }
0x1d64   :  { %v2399_v31 = vsel %vm2398_vm10, %v2862_v62, %v2395_v61  ;;  %v2389_v8 = vsel %vm2386_vm5, %v2388_v29, %v2384_v25  ;;  %v2758_v62 = vld [vmem:[%s4229_s16] ss:$0 sm:$0xff] }
0x1d65   :  { %v2404_v12 = vsel %vm2401_vm11, %v2403_v23, %v2399_v31  ;;  %v2390_v18 = vmul.f32 %v2856_v49, %v2389_v8 }
0x1d66   :  { %v2405_v51 = vmul.f32 %v2858_v22, %v2404_v12 }
0x1d67   :  { %2408 = vperm.xlu1 %2744, %v2390_v18  }
0x1d68   :  { %2435 = vperm.xlu2 %2743, %v2405_v51  }
0x1dc2   :  { %v2436_v2 = vpop.permute.xlu2 %2435 }
0x1dc3   :  { %v2437_v36 = vperm.slane %v2436_v2, %v3454_v52 }
0x1dc5   :  { %2698 = vmatmul.msk.f32.vlgmr.msrb.gmra.mxu1 %vm209_vm0, %v2437_v36 }
0x1dd9   :  { %v2409_v0 = vpop.permute.xlu1 %2408 }
0x1dda   :  { %v2410_v27 = vperm.slane %v2409_v0, %v3454_v52 }
0x1ddc   :  { %v2460_v57 = vsel %vm582_vm13, %v2437_v36, %v2410_v27  ;;  %2697 = vmatmul.msk.f32.vlgmr.msra.gmra.mxu3 %vm209_vm0, %v2410_v27 }
0x1ddd   :  { %v2462_v44 = vadd.f32 %v2460_v57, %v4057_v28  ;;  %2595 = vst.msk [vmem:[#allocation24 + $0x6] sm:$0x3] %vm190_vm9, %v2460_v57 }
0x1dde   :  { %2609 = vst.msk [vmem:[#allocation6] sm:$0x3] %vm190_vm9, %v2460_v57 }
0x1ddf   :  { %2610 = vst.msk [vmem:[#allocation7] sm:$0x3] %vm190_vm9, %v2462_v44 }
0x1e42   :  { %v2457_v35 = vpop.f32.mrf.mxu1 }
0x1e43   :  { %v2466_v39 = vrot.slane %v2457_v35, 7 }
0x1e5f   :  { %v2430_v40 = vpop.f32.mrf.mxu3 }
0x1e60   :  { %v2467_v16 = vsel %vm582_vm13, %v2466_v39, %v2430_v40 }
0x1e61   :  { %2468 = vrot.lane.b32.xlu1 %v2467_v16, %s4249_s6  ;;  %2612 = vst.msk [vmem:[#allocation8] sm:$0x3] %vm4263_vm1, %v2467_v16 }
0x1e69   :  { %2471 = vrot.lane.b32.xlu1 %v4063_v47, %s3146_s0 }
0x1ed3   :  { %v2469_v52 = vpop.permute.xlu1 %2468 }
0x1ed4   :  { %v2474_v28 = vsel %vm240_vm2, %v4126_v3, %v2469_v52 }
0x1edb   :  { %v2472_v48 = vpop.permute.xlu1 %2471 }
0x1edc   :  { %v2475_v5 = vsel %vm276_vm3, %v2474_v28, %v2472_v48 }
0x1edd   :  { %2699 = vmatmul.msk.f32.vlgmr.msrb.gmra.mxu2 %vm294_vm4, %v2475_v5 }
0x1f60   :  { %v2512_v26 = vpop.f32.mrf.mxu2 }
0x1f61   :  { %v2513_v42 = vadd.f32 %v2757_v14, %v2512_v26 }
0x1f63   :  { %2863 = vtanh.f32 %v2513_v42  ;;  %v2700_v47 = vmul.f32 -1.442695, %v2513_v42 }
0x1f65   :  { %2865 = vpow2.f32 %v2700_v47 }
0x1f69   :  { %v2864_v46 = vpop.eup %2863 }
0x1f6a   :  { %2537 = vrot.lane.b32.xlu0 %v2864_v46, %s3142_s19 }
0x1f6b   :  { %v2866_v43 = vpop.eup %2865 }
0x1f6c   :  { %v2518_v63 = vadd.f32 1.0, %v2866_v43 }
0x1f6e   :  { %2867 = vrcp.f32 %v2518_v63  ;;  %v2530_v21 = vand.u32 2147483648, %v2518_v63  ;;  %vm2524_vm4 = vweird.f32 %v2518_v63  ;;  %v2528_v9 = vand.u32 2147483647, %v2518_v63 }
0x1f70   :  { %v2531_v49 = vor.u32 1.1754944e-38, %v2530_v21  ;;  %vm2529_vm13 = vcmp.eq.f32.partialorder %v2528_v9, 8.507059e+37 }
0x1f74   :  { %v2868_v3 = vpop.eup %2867 }
0x1f75   :  { %v2520_v11 = vmul.f32 %v2868_v3, %v2518_v63  ;;  %vm2525_vm0 = vweird.f32 %v2868_v3 }
0x1f76   :  { %vm2526_vm9 = vmor %vm2524_vm4, %vm2525_vm0 }
0x1f77   :  { %v2521_v53 = vsub.f32 1.0, %v2520_v11 }
0x1f79   :  { %v2522_v30 = vmul.f32 %v2868_v3, %v2521_v53 }
0x1f7b   :  { %v2523_v45 = vadd.f32 %v2868_v3, %v2522_v30 }
0x1f7d   :  { %v2527_v33 = vsel %vm2526_vm9, %v2868_v3, %v2523_v45 }
0x1f7e   :  { %v2532_v34 = vsel %vm2529_vm13, %v2531_v49, %v2527_v33 }
0x1f7f   :  { %v2535_v32 = vmul.f32 %v2532_v34, %v4042_v10 }
0x1fdc   :  { %v2538_v22 = vpop.permute.xlu0 %2537 }
0x1fdd   :  { %v2540_v37 = vmul.f32 %v2538_v22, %v2532_v34 }
0x1fdf   :  { %2542 = vrot.lane.b32.xlu1 %v2540_v37, %s4249_s6 }
0x1fe7   :  { %2599 = vrot.lane.b32.xlu1 %v4047_v54, %s3146_s0 }
0x2051   :  { %v2543_v6 = vpop.permute.xlu1 %2542 }
0x2052   :  { %v2545_v41 = vadd.f32 %v2543_v6, %v2535_v32 }
0x2054   :  { %2869 = vtanh.f32 %v2545_v41 }
0x2059   :  { %v2600_v20 = vpop.permute.xlu1 %2599 }
0x205a   :  { %v2870_v50 = vpop.eup %2869  ;;  %2602 = vst.msk [vmem:[#allocation3] sm:$0x3] %vm4264_vm6, %v2600_v20 }
0x205b   :  { %2548 = vrot.lane.b32.xlu0 %v2870_v50, %s3142_s19 }
0x2063   :  { %2605 = vrot.lane.b32.xlu0 %v2545_v41, %s3146_s0  ;;  %s2632_s0 = sshll.u32 %s4267_s1, 4  ;;  %s2633_s0 = int_to_ptr.hbm [resolvable:$true] %s2632_s0 }
0x2064   :  { %2638 = dma.vmem_to_hbm [thread:$0]  %s2631_s29, 128, %s2633_s0, [#allocation25], %s4249_s6, %s4249_s6, %s4248_s24  }
0x20cd   :  { %v2549_v59 = vpop.permute.xlu0 %2548 }
0x20ce   :  { %v2551_v55 = vmul.f32 %v2549_v59, %v2532_v34 }
0x20d0   :  { %2553 = vrot.lane.b32.xlu2 %v2551_v55, %s4249_s6 }
0x20d5   :  { %v2606_v19 = vpop.permute.xlu0 %2605 }
0x20d6   :  { %2608 = vst.msk [vmem:[#allocation5] sm:$0x3] %vm4265_vm7, %v2606_v19 }
0x212a   :  { %v2554_v54 = vpop.permute.xlu2 %2553 }
0x212b   :  { %v2556_v10 = vsel %vm240_vm2, %v2554_v54, %v2469_v52  ;;  %2603 = vst.msk [vmem:[#allocation4] sm:$0x3] %vm4266_vm8, %v2554_v54 }
0x212c   :  { %2701 = vmatmul.msk.f32.vlgmr.msrb.gmra.mxu3 %vm276_vm3, %v2556_v10 }
0x21af   :  { %v2589_v58 = vpop.f32.mrf.mxu3 }
0x21b0   :  { %v2590_v17 = vadd.f32 %v2758_v62, %v2589_v58 }
0x21b2   :  { %2593 = vst.msk [vmem:[#allocation23 + $0x6] sm:$0x3] %vm841_vm14, %v2590_v17 }
0x21b3   :  { %2625 = dma.vmem_to_hbm [thread:$0]  %s2618_s22, 128, %s2620_s20, [#allocation11], %s4249_s6, %s4249_s6, %s4248_s24  }
0x21b4   :  { %3125 = dma.done.wait [#allocation11], 128  }
0x21b5   :  { %3126 = vsyncadd [#allocation11], 4294967168 }
0x21b6   :  { %3127 = dma.done.wait [#allocation25], 128  }
0x21b7   :  { %3128 = vsyncadd [#allocation25], 4294967168 }
0x21b8   :  { %2647 = vsyncpa [#allocation10], 1 }
0x21b9   :  { %2648 = vsyncpa [#allocation13], 1 }
0x21ba   :  { %2649 = vsyncpa [#allocation16], 1 }
0x21bb   :  { %2650 = vsyncpa [#allocation19], 1 }
0x21bc   :  { %2651 = vsyncpa [#allocation22], 1 }
0x21bd   :  { %2652 = vsyncpa [#allocation11], 1 }
0x21be   :  { %2653 = vsyncpa [#allocation25], 1 }

</bundles_post_ra>
